<compile_context>
chip_gen: v6e
topology: v6e:2x2x1
jax: 0.10.0
libtpu: 0.0.40
codegen_flags: <defaults>
</compile_context>

<pallas_src>
import functools

import jax
import jax.numpy as jnp
from jax import lax
from jax.experimental import pallas as pl
from jax.experimental.pallas import tpu as pltpu

BN_EPS = 1e-5
HID = 16            # fc1 output width (fixed by the module)
TILE_N1 = 1024      # pass-1 row tile: 1024 * K * 4B = 512 KiB at K=128; double-buffered this is
                    # far under every generation's scoped-VMEM budget and near the HBM roofline.
TILE_N2 = 4096      # pass-2 column tile of hT (only HID=16 rows tall -> 256 KiB per tile).
NUM_SHARDS = 2      # leading 'parallel' axis of pass 1: megacore sharding of the stats
                    # reduction on v7x; harmless serial outer loop on v5e/v6e.


def _stats_kernel(x_ref, w1_ref, ht_ref, sum_ref, sumsq_ref, *,
                  n, tile_n, tiles_per_shard):
    """fc1 on the MXU; emit hT = (x @ w1).T lane-dense; accumulate per-feature sum / sumsq."""
    shard = pl.program_id(0)
    step = pl.program_id(1)

    @pl.when(step == 0)
    def _():
        sum_ref[...] = jnp.zeros_like(sum_ref)
        sumsq_ref[...] = jnp.zeros_like(sumsq_ref)

    h = jnp.dot(x_ref[...], w1_ref[...], preferred_element_type=jnp.float32)  # (tile_n, HID)

    # Row-validity mask for the ragged last tile (and for the clamped duplicate tile when
    # num_tiles is not a multiple of NUM_SHARDS): replaces the wrapper-side jnp.pad of x.
    tile_idx = shard * tiles_per_shard + step
    row = tile_idx * tile_n + lax.broadcasted_iota(jnp.int32, (tile_n, 1), 0)
    hm = jnp.where(row < n, h, 0.0)

    # TODO(synk): plain sum / sum-of-squares accumulation loses precision if fc1 outputs have a
    # large mean relative to their std; a shifted/Welford accumulation would be more robust.
    sum_ref[...] += jnp.sum(hm, axis=0, keepdims=True)[None]       # broadcast over 8 sublanes
    sumsq_ref[...] += jnp.sum(hm * hm, axis=0, keepdims=True)[None]

    # Feature-major h so pass 2 never touches x and its output is a lane-dense (1, T) slab.
    # Written unmasked on purpose: OOB columns of a partial block are dropped by Pallas, and a
    # clamped duplicate iteration rewrites the identical in-bounds data (idempotent).
    ht_ref[...] = h.T


def _apply_kernel(ht_ref, scale_ref, shift_ref, w2_ref, b2_ref, o_ref):
    """BN(batch stats) -> ReLU -> fc2, all on the VPU with the batch on the lane axis."""
    h = ht_ref[...] * scale_ref[...] + shift_ref[...]                    # (HID, T)
    h = jnp.maximum(h, 0.0)                                              # ReLU
    # fc2 (16 -> 1) as VPU multiply + sublane reduce; lane-dense (1, T) store.
    o_ref[...] = jnp.sum(h * w2_ref[...], axis=0, keepdims=True) + b2_ref[...]


def scale_prediction(x, w1, b1, gamma, beta, w2, b2):
    """Forward pass of ScalePrediction (training-mode BatchNorm over batch statistics).

    b1 is accepted for interface parity but is mathematically absorbed by training-mode
    BatchNorm (it cancels in h - mean(h)), so it never needs to reach the device kernels.
    """
    del b1
    n, k = x.shape
    hid = w1.shape[1]

    # ---- pass 1: fc1 + streaming BN statistics; x is read from HBM exactly once ----
    tile_n1 = TILE_N1 if n >= TILE_N1 else n          # full-dim block for tiny batches
    num_tiles = pl.cdiv(n, tile_n1)
    num_shards = NUM_SHARDS if num_tiles >= NUM_SHARDS else 1
    tiles_per_shard = pl.cdiv(num_tiles, num_shards)

    def x_map(c, i):
        # Clamp so a trailing duplicate iteration (odd tile count) re-reads the last real tile;
        # its stats contribution is masked out in-kernel and its hT write is idempotent.
        return (jnp.minimum(c * tiles_per_shard + i, num_tiles - 1), 0)

    def ht_map(c, i):
        return (0, jnp.minimum(c * tiles_per_shard + i, num_tiles - 1))

    ht, s_acc, ss_acc = pl.pallas_call(
        functools.partial(_stats_kernel, n=n, tile_n=tile_n1,
                          tiles_per_shard=tiles_per_shard),
        out_shape=(jax.ShapeDtypeStruct((hid, n), jnp.float32),
                   jax.ShapeDtypeStruct((num_shards, 8, hid), jnp.float32),
                   jax.ShapeDtypeStruct((num_shards, 8, hid), jnp.float32)),
        grid=(num_shards, tiles_per_shard),
        in_specs=[pl.BlockSpec((tile_n1, k), x_map),
                  pl.BlockSpec((k, hid), lambda c, i: (0, 0))],          # weight stays resident
        out_specs=(pl.BlockSpec((hid, tile_n1), ht_map),                 # lane-dense hT tiles
                   pl.BlockSpec((1, 8, hid), lambda c, i: (c, 0, 0)),    # per-shard accumulators
                   pl.BlockSpec((1, 8, hid), lambda c, i: (c, 0, 0))),
        compiler_params=pltpu.CompilerParams(
            dimension_semantics=("parallel", "arbitrary"),
            vmem_limit_bytes=32 * 1024 * 1024),
    )(x, w1)

    # ---- host glue: fold batch mean/var + gamma/beta into per-feature scale/shift ----
    s_tot = s_acc[:, 0, :].sum(axis=0)                  # (HID,)  all 8 sublanes carry the same value
    ss_tot = ss_acc[:, 0, :].sum(axis=0)
    mean = s_tot / n
    var = jnp.maximum(ss_tot / n - mean * mean, 0.0)    # biased variance (PyTorch BN train mode)
    inv = gamma.reshape(-1) * lax.rsqrt(var + BN_EPS)
    scale_t = inv.reshape(hid, 1).astype(jnp.float32)
    shift_t = (beta.reshape(-1) - mean * inv).reshape(hid, 1).astype(jnp.float32)
    # TODO(synk): nn.BatchNorm1d running_mean/running_var momentum updates (training-state side
    # effect, unbiased variance) are not produced; only the forward output is computed.

    # ---- pass 2: BN -> ReLU -> fc2 over hT tiles only (no x re-read, no MXU, megacore parallel) ----
    tile_n2 = TILE_N2 if n >= TILE_N2 else n
    num_tiles2 = pl.cdiv(n, tile_n2)

    out_row = pl.pallas_call(
        _apply_kernel,
        out_shape=jax.ShapeDtypeStruct((1, n), jnp.float32),
        grid=(num_tiles2,),
        in_specs=[pl.BlockSpec((hid, tile_n2), lambda i: (0, i)),
                  pl.BlockSpec((hid, 1), lambda i: (0, 0)),              # resident params
                  pl.BlockSpec((hid, 1), lambda i: (0, 0)),
                  pl.BlockSpec((hid, 1), lambda i: (0, 0)),
                  pl.BlockSpec((1, 1), lambda i: (0, 0))],
        out_specs=pl.BlockSpec((1, tile_n2), lambda i: (0, i)),
        compiler_params=pltpu.CompilerParams(
            dimension_semantics=("parallel",),
            vmem_limit_bytes=32 * 1024 * 1024),
    )(ht, scale_t, shift_t, w2, b2)

    return out_row.reshape(n, 1)


def reference(x, w1, b1, gamma, beta, w2, b2):
    h = jnp.dot(x, w1, precision=jax.lax.Precision.HIGHEST) + b1
    mean = h.mean(axis=0, keepdims=True)
    var = ((h - mean) ** 2).mean(axis=0, keepdims=True)
    h = (h - mean) / jnp.sqrt(var + BN_EPS) * gamma + beta
    h = jnp.maximum(h, 0.0)
    return jnp.dot(h, w2, precision=jax.lax.Precision.HIGHEST) + b2


if __name__ == "__main__":
    # Multi-tile, ragged shapes: N=2000 (two 1024-row tiles, last one partial), dim_in=128.
    N, DIM_IN = 2000, 128

    key = jax.random.PRNGKey(0)
    kx, kw1, kb1, kg, kbeta, kw2 = jax.random.split(key, 6)

    x = jax.random.normal(kx, (N, DIM_IN), dtype=jnp.float32)

    # Deterministic parameter init (shapes from the module __init__).
    w1 = jax.random.normal(kw1, (DIM_IN, HID), dtype=jnp.float32) / jnp.sqrt(DIM_IN)
    b1 = jax.random.normal(kb1, (1, HID), dtype=jnp.float32) * 0.1
    gamma = 1.0 + 0.1 * jax.random.normal(kg, (1, HID), dtype=jnp.float32)
    beta = 0.1 * jax.random.normal(kbeta, (1, HID), dtype=jnp.float32)
    w2 = jax.random.normal(kw2, (HID, 1), dtype=jnp.float32) / jnp.sqrt(HID)
    b2 = jnp.full((1, 1), 9.0, dtype=jnp.float32)   # fc2.bias initialized to 9

    out = scale_prediction(x, w1, b1, gamma, beta, w2, b2)
    out = jax.block_until_ready(out)

    ref = reference(x, w1, b1, gamma, beta, w2, b2)
    assert out.shape == (N, 1)
    assert jnp.allclose(out, ref, atol=1e-3, rtol=1e-3), float(jnp.max(jnp.abs(out - ref)))
    print("KERNEL_OK")
</pallas_src>

<mosaic_0001>
module attributes {stable_mosaic.version = 11 : i64} {
  func.func @_stats_kernel(%arg0: i32, %arg1: i32, %arg2: memref<1024x128xf32, #tpu.memory_space<vmem>>, %arg3: memref<128x16xf32, #tpu.memory_space<vmem>>, %arg4: memref<16x1024xf32, #tpu.memory_space<vmem>>, %arg5: memref<1x8x16xf32, #tpu.memory_space<vmem>>, %arg6: memref<1x8x16xf32, #tpu.memory_space<vmem>>) attributes {dimension_semantics = [#tpu.dimension_semantics<parallel>, #tpu.dimension_semantics<arbitrary>], iteration_bounds = array<i64: 2, 1>, scalar_prefetch = 0 : i64, scratch_operands = 0 : i64, tpu.core_type = #tpu.core_type<tc>, window_params = [{transform_indices = @transform_0, window_bounds = array<i64: 1024, 128>}, {pipeline_mode = #tpu.pipeline_mode<synchronous>, transform_indices = @transform_1, window_bounds = array<i64: 128, 16>}, {transform_indices = @transform_2, window_bounds = array<i64: 16, 1024>}, {transform_indices = @transform_3, window_bounds = array<i64: 1, 8, 16>}, {transform_indices = @transform_4, window_bounds = array<i64: 1, 8, 16>}]} {
    %c0_i32 = arith.constant 0 : i32
    %0 = arith.cmpi eq, %arg1, %c0_i32 : i32
    %1 = arith.extui %0 : i1 to i32
    %c0_i32_0 = arith.constant 0 : i32
    %2 = arith.cmpi ne, %1, %c0_i32_0 : i32
    scf.if %2 {
      %cst_21 = arith.constant 0.000000e+00 : f32
      %35 = vector.broadcast %cst_21 : f32 to vector<1x8x16xf32>
      %c0_22 = arith.constant 0 : index
      %c0_23 = arith.constant 0 : index
      %c0_24 = arith.constant 0 : index
      %36 = vector.load %arg5[%c0_22, %c0_23, %c0_24] : memref<1x8x16xf32, #tpu.memory_space<vmem>>, vector<1x8x16xf32>
      tpu.vector_store %arg5[%c0_22, %c0_23, %c0_24], %35 {strides = array<i32>} : memref<1x8x16xf32, #tpu.memory_space<vmem>>, vector<1x8x16xf32>,
      %cst_25 = arith.constant 0.000000e+00 : f32
      %37 = vector.broadcast %cst_25 : f32 to vector<1x8x16xf32>
      %c0_26 = arith.constant 0 : index
      %c0_27 = arith.constant 0 : index
      %c0_28 = arith.constant 0 : index
      %38 = vector.load %arg6[%c0_26, %c0_27, %c0_28] : memref<1x8x16xf32, #tpu.memory_space<vmem>>, vector<1x8x16xf32>
      tpu.vector_store %arg6[%c0_26, %c0_27, %c0_28], %37 {strides = array<i32>} : memref<1x8x16xf32, #tpu.memory_space<vmem>>, vector<1x8x16xf32>,
    } else {
    }
    %c0 = arith.constant 0 : index
    %c0_1 = arith.constant 0 : index
    %3 = vector.load %arg2[%c0, %c0_1] : memref<1024x128xf32, #tpu.memory_space<vmem>>, vector<1024x128xf32>
    %c0_2 = arith.constant 0 : index
    %c0_3 = arith.constant 0 : index
    %4 = vector.load %arg3[%c0_2, %c0_3] : memref<128x16xf32, #tpu.memory_space<vmem>>, vector<128x16xf32>
    %cst = arith.constant dense<0.000000e+00> : vector<1024x16xf32>
    %5 = tpu.matmul %3, %4, %cst {dimension_numbers = #tpu.dot_dimension_numbers<[1], [0], [0], [1], [0, 0, 1, 1], [], []>} : vector<1024x128xf32>, vector<128x16xf32>, vector<1024x16xf32> -> vector<1024x16xf32>
    %c1_i32 = arith.constant 1 : i32
    %6 = arith.muli %arg0, %c1_i32 : i32
    %7 = arith.addi %6, %arg1 : i32
    %c1024_i32 = arith.constant 1024 : i32
    %8 = arith.muli %7, %c1024_i32 : i32
    %9 = tpu.iota {dimensions = array<i32: 0>} : vector<1024x1xi32>
    %10 = vector.broadcast %8 : i32 to vector<1024x1xi32>
    %11 = arith.addi %10, %9 : vector<1024x1xi32>
    %c2000_i32 = arith.constant 2000 : i32
    %12 = vector.broadcast %c2000_i32 : i32 to vector<1024x1xi32>
    %13 = arith.cmpi slt, %11, %12 : vector<1024x1xi32>
    %cst_4 = arith.constant 0.000000e+00 : f32
    %14 = vector.shape_cast %13 : vector<1024x1xi1> to vector<1024x1xi1>
    %15 = vector.broadcast %14 : vector<1024x1xi1> to vector<1024x16xi1>
    %16 = vector.broadcast %cst_4 : f32 to vector<1024x16xf32>
    %17 = arith.select %15, %5, %16 : vector<1024x16xi1>, vector<1024x16xf32>
    %c0_5 = arith.constant 0 : index
    %c0_6 = arith.constant 0 : index
    %c0_7 = arith.constant 0 : index
    %18 = vector.load %arg5[%c0_5, %c0_6, %c0_7] : memref<1x8x16xf32, #tpu.memory_space<vmem>>, vector<1x8x16xf32>
    %cst_8 = arith.constant dense<0.000000e+00> : vector<16xf32>
    %19 = vector.multi_reduction <add>, %17, %cst_8 [0] : vector<1024x16xf32> to vector<16xf32>
    %20 = vector.shape_cast %19 : vector<16xf32> to vector<1x16xf32>
    %21 = vector.shape_cast %20 : vector<1x16xf32> to vector<1x1x16xf32>
    %22 = vector.broadcast %21 : vector<1x1x16xf32> to vector<1x8x16xf32>
    %23 = arith.addf %18, %22 : vector<1x8x16xf32>
    %c0_9 = arith.constant 0 : index
    %c0_10 = arith.constant 0 : index
    %c0_11 = arith.constant 0 : index
    %24 = vector.load %arg5[%c0_9, %c0_10, %c0_11] : memref<1x8x16xf32, #tpu.memory_space<vmem>>, vector<1x8x16xf32>
    tpu.vector_store %arg5[%c0_9, %c0_10, %c0_11], %23 {strides = array<i32>} : memref<1x8x16xf32, #tpu.memory_space<vmem>>, vector<1x8x16xf32>,
    %c0_12 = arith.constant 0 : index
    %c0_13 = arith.constant 0 : index
    %c0_14 = arith.constant 0 : index
    %25 = vector.load %arg6[%c0_12, %c0_13, %c0_14] : memref<1x8x16xf32, #tpu.memory_space<vmem>>, vector<1x8x16xf32>
    %26 = arith.mulf %17, %17 : vector<1024x16xf32>
    %cst_15 = arith.constant dense<0.000000e+00> : vector<16xf32>
    %27 = vector.multi_reduction <add>, %26, %cst_15 [0] : vector<1024x16xf32> to vector<16xf32>
    %28 = vector.shape_cast %27 : vector<16xf32> to vector<1x16xf32>
    %29 = vector.shape_cast %28 : vector<1x16xf32> to vector<1x1x16xf32>
    %30 = vector.broadcast %29 : vector<1x1x16xf32> to vector<1x8x16xf32>
    %31 = arith.addf %25, %30 : vector<1x8x16xf32>
    %c0_16 = arith.constant 0 : index
    %c0_17 = arith.constant 0 : index
    %c0_18 = arith.constant 0 : index
    %32 = vector.load %arg6[%c0_16, %c0_17, %c0_18] : memref<1x8x16xf32, #tpu.memory_space<vmem>>, vector<1x8x16xf32>
    tpu.vector_store %arg6[%c0_16, %c0_17, %c0_18], %31 {strides = array<i32>} : memref<1x8x16xf32, #tpu.memory_space<vmem>>, vector<1x8x16xf32>,
    %33 = tpu.transpose %5, [1, 0] : vector<1024x16xf32> -> vector<16x1024xf32>
    %c0_19 = arith.constant 0 : index
    %c0_20 = arith.constant 0 : index
    %34 = vector.load %arg4[%c0_19, %c0_20] : memref<16x1024xf32, #tpu.memory_space<vmem>>, vector<16x1024xf32>
    tpu.vector_store %arg4[%c0_19, %c0_20], %33 {strides = array<i32>} : memref<16x1024xf32, #tpu.memory_space<vmem>>, vector<16x1024xf32>,
    return
  }
  func.func @transform_0(%arg0: i32, %arg1: i32) -> (i32, i32) {
    %c1_i32 = arith.constant 1 : i32
    %0 = arith.muli %arg0, %c1_i32 : i32
    %1 = arith.addi %0, %arg1 : i32
    %c1_i32_0 = arith.constant 1 : i32
    %2 = arith.minsi %1, %c1_i32_0 : i32
    %c0_i32 = arith.constant 0 : i32
    %c0_i32_1 = arith.constant 0 : i32
    return %2, %c0_i32 : i32, i32
  }
  func.func @transform_1(%arg0: i32, %arg1: i32) -> (i32, i32) {
    %c0_i32 = arith.constant 0 : i32
    %c0_i32_0 = arith.constant 0 : i32
    %c0_i32_1 = arith.constant 0 : i32
    return %c0_i32, %c0_i32_0 : i32, i32
  }
  func.func @transform_2(%arg0: i32, %arg1: i32) -> (i32, i32) {
    %c1_i32 = arith.constant 1 : i32
    %0 = arith.muli %arg0, %c1_i32 : i32
    %1 = arith.addi %0, %arg1 : i32
    %c1_i32_0 = arith.constant 1 : i32
    %2 = arith.minsi %1, %c1_i32_0 : i32
    %c0_i32 = arith.constant 0 : i32
    %c0_i32_1 = arith.constant 0 : i32
    return %c0_i32, %2 : i32, i32
  }
  func.func @transform_3(%arg0: i32, %arg1: i32) -> (i32, i32, i32) {
    %c0_i32 = arith.constant 0 : i32
    %c0_i32_0 = arith.constant 0 : i32
    %c0_i32_1 = arith.constant 0 : i32
    return %arg0, %c0_i32, %c0_i32_0 : i32, i32, i32
  }
  func.func @transform_4(%arg0: i32, %arg1: i32) -> (i32, i32, i32) {
    %c0_i32 = arith.constant 0 : i32
    %c0_i32_0 = arith.constant 0 : i32
    %c0_i32_1 = arith.constant 0 : i32
    return %arg0, %c0_i32, %c0_i32_0 : i32, i32, i32
  }
}

</mosaic_0001>

<bundles_post_ra>
// kernel: tpu_custom_call.1
= control target key start
LH: loop header
LB: loop body
LE: loop exit
PB: predicated region body
PF: predicated region fallthrough
CT: control target
= control target key end

     0   :  { %s5826_s0 = inlined_call_operand.hbm [shape: f32[2000,128], index: 0, kind: input, shape index: {}]   ;;  %s5827_s1 = inlined_call_operand.vmem [shape: f32[128,16], index: 1, kind: input, shape index: {}]   ;;  %s5828_s2 = inlined_call_operand.hbm [shape: f32[16,2000], index: 2, kind: output, shape index: {0}]   ;;  %s5829_s3 = inlined_call_operand.hbm [shape: f32[2,8,16], index: 3, kind: output, shape index: {1}]   ;;  %s5830_s4 = inlined_call_operand.hbm [shape: f32[2,8,16], index: 4, kind: output, shape index: {2}]  }
   0x1   :  { %5886 = sst [smem:[#allocation62_spill]] %s5826_s0 }
   0x2   :  { %5887 = sst [smem:[#allocation63_spill]] %s5827_s1 }
   0x3   :  { %10 = vsyncpa [#allocation3], 0 }
   0x4   :  { %12 = vsyncpa [#allocation3 + $0x1], 0 }
   0x5   :  { %13 = vsyncpa [#allocation4], 0 }
   0x6   :  { %15 = vsyncpa [#allocation4 + $0x1], 0 }
   0x7   :  { %16 = vsyncpa [#allocation7], 0 }
   0x8   :  { %18 = vsyncpa [#allocation7 + $0x1], 0  ;;  %s3778_s15 = smov 0   ;;  %s3780_s16 = smov 0  }
   0x9   :  { %s3782_s17 = smov 0   ;;  %s3784_s18 = smov 0  }
   0xa   :  { %s3786_s19 = smov 0   ;;  %s3788_s20 = smov 0  }
   0xb   :  { %s3790_s21 = smov 0   ;;  %s3792_s22 = smov 0  }
   0xc   :  { %s3794_s23 = smov 0  }
   0xd LB: > { %5888 = sst [smem:[#allocation12_spill]] %s3729_s20  ;;  %s3824_s24 = sadd.s32 4294967295, %s3741_s23   ;;  %s3741_s23 = sphi %s3794_s23, %s24_s23   ;;  %s3737_s22 = sphi %s3792_s22, %s6008_s22   ;;  %s3733_s21 = sphi %s3790_s21, %s6007_s21   ;;  %s3729_s20 = sphi %s3788_s20, %s6006_s20   ;;  %s3725_s19 = sphi %s3786_s19, %s6013_s19   ;;  %s3721_s18 = sphi %s3784_s18, %s6012_s18   ;;  %s3717_s17 = sphi %s3782_s17, %s6011_s17   ;;  %s3713_s16 = sphi %s3780_s16, %s6010_s16   ;;  %s3709_s15 = sphi %s3778_s15, %s6009_s15  }
   0xe   : > { %5889 = sst [smem:[#allocation13_spill]] %s3737_s22  ;;  %s5831_s25 = sadd.s32 4294967294, %s3741_s23  }
   0xf   : > { %s36_s26 = sadd.s32 1, %s3737_s22  ;;  %p41_p0 = scmp.lt.s32.totalorder %s3737_s22, 1 }
  0x10   : > { %p38_p1 = scmp.ge.s32.totalorder %s36_s26, 2  ;;  %s49_s27 = sadd.s32 1, %s3729_s20 }
  0x11   : > { %s3831_s28 = scalar_select %p41_p0, %s3737_s22, 1 }
  0x12   : > { %s6015_s26 = smov (%p38_p1, %s36_s26), 0  ;;  %p56_p2 = scmp.ne.s32.totalorder %s3729_s20, %s3725_s19 }
  0x13   : > { %5890 = sst [smem:[#allocation14_spill]] %s6015_s26  ;;  %p57_p3 = scmp.eq.s32.totalorder %s3741_s23, 0 }
  0x14   : > { %p44_p4 = scmp.lt.s32.totalorder %s6015_s26, 1  ;;  %p62_p5 = scmp.ne.s32.totalorder %s3725_s19, %s3721_s18 }
  0x15   : > { %p3841_p6 = por %p57_p3, %p56_p2  ;;  %p63_p7 = scmp.eq.s32.totalorder %s3824_s24, 0 }
  0x16   : > { %s45_s30 = scalar_select %p44_p4, %s6015_s26, 1 }
  0x17   : > { %p3847_p8 = por %p63_p7, %p62_p5  ;;  %p113_p9 = scmp.eq.s32.totalorder %s3824_s24, 1 }
  0x18   : > { %s46_s6 = ssub.s32 %s3831_s28, %s45_s30  ;;  %p119_p10 = scmp.eq.s32.totalorder %s5831_s25, 1 }
  0x19   : > { %p47_p11 = scmp.eq.s32.totalorder %s46_s6, 0  ;;  %p3857_p12 = por %p113_p9, %p56_p2 }
  0x1a   : > { %p3861_p13 = por %p119_p10, %p62_p5  ;;  %s125_s9 = ssub.s32 %s3737_s22, %s6015_s26 }
  0x1b   : > { %s3868_s10 = scalar_select %p47_p11, %s3729_s20, %s49_s27  }
  0x1c   : > { %s5894_s8 = scalar_select %p3861_p13, 1, 0 }
  0x1d   : > { %5895 = sst [smem:[#allocation15_spill]] %s3868_s10  ;;  %p126_p0 = scmp.eq.s32.totalorder %s125_s9, 0 }
  0x1e   : > { %s128_s11 = sadd.s32 1, %s3717_s17  ;;  %p138_p1 = scmp.ne.s32.totalorder %s3717_s17, %s3713_s16 }
  0x1f   : > { %p144_p3 = scmp.ne.s32.totalorder %s3713_s16, %s3709_s15  ;;  %p5835_p5 = scmp.ge.s32.totalorder %s3741_s23, 2 }
  0x20   : > { %s3876_s12 = scalar_select %p126_p0, %s3717_s17, %s128_s11  }
  0x21   : > { %p3880_p4 = por %p138_p1, %p113_p9  ;;  %p3884_p2 = por %p144_p3, %p119_p10 }
  0x22   : > { %190 = sbr.rel (%p5835_p5) target bundleno = 77 (0x4d), region = 20 }
  0x23   : > { %s5897_s14 = scalar_select %p3884_p2, 1, 0 }
  0x27   : > { %193 = sbr.rel (!%p3841_p6) target bundleno = 77 (0x4d), region = 24  ;;  %s194_s15 = sand.u32 (%p3841_p6), 1, %s3729_s20  }
  0x28   : > { %s3036_s27 = sshll.u32 (%p3841_p6), %s3831_s28, 7  ;;  %s3035_s30 = sshll.u32 (%p3841_p6), %s194_s15, 10 }
  0x29   : > { %s203_s6 = ssub.s32 (%p3841_p6), 250, %s3036_s27  ;;  %s3898_s25 = scalar_lea.sflag (%p3841_p6), [#allocation3], %s194_s15 }
  0x2a   : > { %p204_p7 = scmp.lt.s32.totalorder (%p3841_p6), %s203_s6, 128  ;;  %s198_s26 = scalar_lea.vmem (%p3841_p6), [#allocation2], %s3035_s30 }
  0x2c   : > { %s6017_s6 = smov (!%p204_p7, %s203_s6), 128 }
  0x2d   : > { %s3895_s9 = sshll.u32 %s6017_s6, 7 }
  0x2e   : > { %s208_s11 = ssub.s32 16384, %s3895_s9 }
  0x2f   : > { %209 = vsyncadd %s3898_s25, %s208_s11  ;;  %p3038_p6 = scmp.ne.s32.totalorder %s3895_s9, 0  ;;  %s3057_s29 = sshll.u32 %s3831_s28, 14 }
  0x30   : > { %s5898_s0 = sld [smem:[#allocation62_spill]]  ;;  %s214_s6 = sshll.u32 %s198_s26, 4  ;;  %s3908_s6 = int_to_ptr.vmem [resolvable:$true] %s214_s6 }
  0x36   : > { %s3906_s27 = scalar_lea.hbm %s5898_s0, %s3057_s29  ;;  %s3559_s20 = scalar_lea.hbm %s5898_s0, 32000 }
  0x37   : > { %s3555_s15 = scalar_lea.hbm %s3906_s27, %s3895_s9 }
  0x38   : > { %p3556_p9 = scmp.ne.s32.totalorder %s3906_s27, %s3555_s15  ;;  %p3561_p0 = scmp.lt.s32.totalorder %s3559_s20, %s3555_s15 }
  0x3a   : > { %p3557_p10 = pnand %p3556_p9, %p3038_p6 }
  0x3c   : > { %p3558_p11 = pneg %p3557_p10 }
  0x3e   : > { %p3563_p1 = pnand %p3561_p0, %p3558_p11 }
  0x40   : > { %3566 = shalt.err (!%p3563_p1)
}
  0x41   : > { %s3567_s22 = scalar_lea.vmem %s3908_s6, %s3895_s9  ;;  %s3743_s26 = smov [#allocation2]  }
  0x42   : > { %p3568_p3 = scmp.ne.s32.totalorder %s3908_s6, %s3567_s22  ;;  %s3571_s28 = sshll.u32 %s3743_s26, 4  ;;  %s3572_s28 = int_to_ptr.vmem [resolvable:$false] %s3571_s28 }
  0x43   : > { %s3573_s10 = scalar_lea.vmem %s3572_s28, 32768  ;;  %p3574_p9 = scmp.lt.s32.totalorder %s3908_s6, %s3572_s28 }
  0x44   : > { %p3569_p7 = pnand %p3568_p3, %p3038_p6  ;;  %p3575_p10 = scmp.lt.s32.totalorder %s3573_s10, %s3567_s22 }
  0x46   : > { %p3570_p5 = pneg %p3569_p7  ;;  %p3576_p2 = por %p3575_p10, %p3574_p9 }
  0x48   : > { %p3577_p13 = pnand %p3576_p2, %p3570_p5 }
  0x4a   : > { %3580 = shalt.err (!%p3577_p13)
}
  0x4b   : > { %s3744_s20 = smov 128   ;;  %s3745_s29 = smov 8  }
  0x4c   : > { %220 = dma.hbm_to_vmem [thread:$0]  (%p3038_p6), %s3906_s27, %s3895_s9, %s3908_s6, %s3898_s25, %s3744_s20, %s3744_s20, %s3745_s29  }
  0x4d PF: > { %p3042_p11 = scmp.ge.s32.totalorder %s3741_s23, 1  ;;  %p222_p0 = scmp.lt.s32.totalorder %s3741_s23, 3 }
  0x4f   : > { %p223_p1 = pnand %p3042_p11, %p222_p0 }
  0x51   : > { %226 = sbr.rel (%p223_p1) target bundleno = 735 (0x2df), region = 28 }
  0x56   : > { %s3933_s15 = sand.u32 1, %s3725_s19  }
  0x57   : > { %s3043_s30 = sshll.u32 %s3933_s15, 10  ;;  %s229_s11 = scalar_lea.sflag [#allocation3], %s3933_s15 }
  0x58   : > { %s3937_s22 = scalar_lea.vmem [#allocation2], %s3043_s30 }
  0x59   : > { %3696 = dma.done.wait (%p3847_p8), %s229_s11, 16384  }
  0x5a   : > { %3698 = vsyncadd (%p3847_p8), %s229_s11, 4294950912  ;;  %s5899_s1 = sld [smem:[#allocation63_spill]]  ;;  %v286_v4 = vld [vmem:[%s3937_s22] sm:$0xff]  ;;  %v287_v17 = vld [vmem:[%s3937_s22 + $0x8] sm:$0xff]  ;;  %s3047_s20 = sshll.u32 %s3733_s21, 10  ;;  %vm283_vm3 = vcmask 130048  }
  0x5b   : > { %3235 = vmatprep.mubr.f32.mxu0 %v286_v4  ;;  %v288_v18 = vld [vmem:[%s3937_s22 + $0x10] sm:$0xff]  ;;  %v350_v19 = vld [vmem:[%s3937_s22 + $0x200] sm:$0xff]  ;;  %v351_v20 = vld [vmem:[%s3937_s22 + $0x208] sm:$0xff]  ;;  %s257_s30 = sand.u32 1, %s3713_s16   ;;  %s2841_s27 = sand.u32 1, %s3824_s24  }
  0x5c   : > { %v352_v21 = vld [vmem:[%s3937_s22 + $0x210] sm:$0xff]  ;;  %v289_v22 = vld [vmem:[%s3937_s22 + $0x18] sm:$0xff]  ;;  %3331 = vmatprep.mubr.f32.mxu1 %v350_v19  ;;  %v290_v23 = vld [vmem:[%s3937_s22 + $0x20] sm:$0xff]  ;;  %s5476_s11 = sshll.u32 %s257_s30, 3  ;;  %s3053_s6 = sshll.u32 %s3733_s21, 7 }
  0x5d   : > { %v353_v24 = vld [vmem:[%s3937_s22 + $0x218] sm:$0xff]  ;;  %v354_v25 = vld [vmem:[%s3937_s22 + $0x220] sm:$0xff]  ;;  %v291_v26 = vld [vmem:[%s3937_s22 + $0x28] sm:$0xff]  ;;  %s5507_s25 = scalar_lea.vmem [#allocation6], %s5476_s11  ;;  %s5512_s9 = scalar_lea.vmem [#allocation8], %s5476_s11 }
  0x5e   : > { %v292_v27 = vld [vmem:[%s3937_s22 + $0x30] sm:$0xff]  ;;  %v355_v28 = vld [vmem:[%s3937_s22 + $0x228] sm:$0xff]  ;;  %v293_v30 = vld [vmem:[%s3937_s22 + $0x38] sm:$0xff]  ;;  %s2879_s26 = sshll.u32 %s5507_s25, 4  ;;  %s2892_s28 = sshll.u32 %s5512_s9, 4  ;;  %s5688_s26 = int_to_ptr.vmem [resolvable:$true] %s2879_s26  ;;  %s5698_s28 = int_to_ptr.vmem [resolvable:$true] %s2892_s28 }
  0x5f   : > { %v356_v29 = vld [vmem:[%s3937_s22 + $0x230] sm:$0xff]  ;;  %v294_v31 = vld [vmem:[%s3937_s22 + $0x40] sm:$0xff]  ;;  %v357_v32 = vld [vmem:[%s3937_s22 + $0x238] sm:$0xff]  ;;  %s5696_s30 = scalar_lea.hbm %s5830_s4, %s3053_s6  ;;  %s5700_s11 = scalar_lea.sflag [#allocation7], %s2841_s27 }
  0x60   : > { %v429_v0 = vld [vmem:[%s5899_s1 + $0x78] sm:$0xff]  ;;  %v428_v1 = vld [vmem:[%s5899_s1 + $0x70] sm:$0xff]  ;;  %v427_v2 = vld [vmem:[%s5899_s1 + $0x68] sm:$0xff]  ;;  %s3581_s5 = scalar_lea.vmem %s5688_s26, 128  ;;  %s3747_s10 = smov [#allocation6]  }
  0x61   : > { %3203 = vmatprep.subr.mxu0 %v429_v0  ;;  %3427 = vmatprep.subr.mxu1 %v429_v0  ;;  %v426_v3 = vld [vmem:[%s5899_s1 + $0x60] sm:$0xff]  ;;  %v425_v5 = vld [vmem:[%s5899_s1 + $0x58] sm:$0xff]  ;;  %v424_v6 = vld [vmem:[%s5899_s1 + $0x50] sm:$0xff]  ;;  %p3582_p8 = scmp.ne.s32.totalorder %s5688_s26, %s3581_s5  ;;  %s3585_s0 = sshll.u32 %s3747_s10, 4  ;;  %s3586_s0 = int_to_ptr.vmem [resolvable:$false] %s3585_s0 }
  0x62   : > { %3204 = vmatpush3.msra.mxu0 %v429_v0  ;;  %3443 = vmatpush3.msra.mxu1 %v429_v0  ;;  %v423_v7 = vld [vmem:[%s5899_s1 + $0x48] sm:$0xff]  ;;  %v422_v8 = vld [vmem:[%s5899_s1 + $0x40] sm:$0xff]  ;;  %v421_v9 = vld [vmem:[%s5899_s1 + $0x38] sm:$0xff]  ;;  %p3588_p5 = scmp.lt.s32.totalorder %s5688_s26, %s3586_s0 }
  0x63   : > { %3205 = vmatprep.subr.mxu0 %v428_v1  ;;  %3428 = vmatprep.subr.mxu1 %v428_v1  ;;  %v420_v10 = vld [vmem:[%s5899_s1 + $0x30] sm:$0xff]  ;;  %v419_v11 = vld [vmem:[%s5899_s1 + $0x28] sm:$0xff]  ;;  %v418_v12 = vld [vmem:[%s5899_s1 + $0x20] sm:$0xff]  ;;  %p3583_p13 = pnand %p3582_p8, %p3880_p4 }
  0x64   : > { %3206 = vmatpush3.msra.mxu0 %v428_v1  ;;  %3444 = vmatpush3.msra.mxu1 %v428_v1  ;;  %v417_v13 = vld [vmem:[%s5899_s1 + $0x18] sm:$0xff]  ;;  %v416_v14 = vld [vmem:[%s5899_s1 + $0x10] sm:$0xff]  ;;  %v415_v15 = vld [vmem:[%s5899_s1 + $0x8] sm:$0xff] }
  0x65   : > { %3207 = vmatprep.subr.mxu0 %v427_v2  ;;  %3429 = vmatprep.subr.mxu1 %v427_v2  ;;  %v414_v16 = vld [vmem:[%s5899_s1] sm:$0xff]  ;;  %v295_v34 = vld [vmem:[%s3937_s22 + $0x48] sm:$0xff]  ;;  %v296_v35 = vld [vmem:[%s3937_s22 + $0x50] sm:$0xff]  ;;  %p3584_p2 = pneg %p3583_p13  ;;  %s3587_s1 = scalar_lea.vmem %s3586_s0, 256 }
  0x66   : > { %3208 = vmatpush3.msra.mxu0 %v427_v2  ;;  %3445 = vmatpush3.msra.mxu1 %v427_v2  ;;  %v358_v33 = vld [vmem:[%s3937_s22 + $0x240] sm:$0xff]  ;;  %v359_v36 = vld [vmem:[%s3937_s22 + $0x248] sm:$0xff]  ;;  %v360_v37 = vld [vmem:[%s3937_s22 + $0x250] sm:$0xff]  ;;  %p3589_p6 = scmp.lt.s32.totalorder %s3587_s1, %s3581_s5 }
  0x67   : > { %3209 = vmatprep.subr.mxu0 %v426_v3  ;;  %3430 = vmatprep.subr.mxu1 %v426_v3  ;;  %v297_v38 = vld [vmem:[%s3937_s22 + $0x58] sm:$0xff]  ;;  %v298_v39 = vld [vmem:[%s3937_s22 + $0x60] sm:$0xff]  ;;  %v299_v42 = vld [vmem:[%s3937_s22 + $0x68] sm:$0xff] }
  0x68   : > { %3210 = vmatpush3.msra.mxu0 %v426_v3  ;;  %3446 = vmatpush3.msra.mxu1 %v426_v3  ;;  %v361_v40 = vld [vmem:[%s3937_s22 + $0x258] sm:$0xff]  ;;  %v362_v41 = vld [vmem:[%s3937_s22 + $0x260] sm:$0xff]  ;;  %v300_v43 = vld [vmem:[%s3937_s22 + $0x70] sm:$0xff]  ;;  %p3590_p3 = por %p3589_p6, %p3588_p5 }
  0x69   : > { %3211 = vmatprep.subr.mxu0 %v425_v5  ;;  %3431 = vmatprep.subr.mxu1 %v425_v5  ;;  %v363_v44 = vld [vmem:[%s3937_s22 + $0x268] sm:$0xff]  ;;  %v364_v45 = vld [vmem:[%s3937_s22 + $0x270] sm:$0xff]  ;;  %v301_v46 = vld [vmem:[%s3937_s22 + $0x78] sm:$0xff] }
  0x6a   : > { %3212 = vmatpush3.msra.mxu0 %v425_v5  ;;  %3447 = vmatpush3.msra.mxu1 %v425_v5  ;;  %v302_v47 = vld [vmem:[%s3937_s22 + $0x80] sm:$0xff]  ;;  %v365_v48 = vld [vmem:[%s3937_s22 + $0x278] sm:$0xff]  ;;  %v303_v50 = vld [vmem:[%s3937_s22 + $0x88] sm:$0xff]  ;;  %p3591_p7 = pnand %p3590_p3, %p3584_p2 }
  0x6b   : > { %3213 = vmatprep.subr.mxu0 %v424_v6  ;;  %3432 = vmatprep.subr.mxu1 %v424_v6  ;;  %v366_v49 = vld [vmem:[%s3937_s22 + $0x280] sm:$0xff]  ;;  %v304_v51 = vld [vmem:[%s3937_s22 + $0x90] sm:$0xff]  ;;  %v367_v52 = vld [vmem:[%s3937_s22 + $0x288] sm:$0xff] }
  0x6c   : > { %3214 = vmatpush3.msra.mxu0 %v424_v6  ;;  %3448 = vmatpush3.msra.mxu1 %v424_v6  ;;  %v368_v53 = vld [vmem:[%s3937_s22 + $0x290] sm:$0xff]  ;;  %v305_v54 = vld [vmem:[%s3937_s22 + $0x98] sm:$0xff]  ;;  %v306_v55 = vld [vmem:[%s3937_s22 + $0xa0] sm:$0xff] }
  0x6d   : > { %3215 = vmatprep.subr.mxu0 %v423_v7  ;;  %3433 = vmatprep.subr.mxu1 %v423_v7  ;;  %v369_v56 = vld [vmem:[%s3937_s22 + $0x298] sm:$0xff]  ;;  %v370_v57 = vld [vmem:[%s3937_s22 + $0x2a0] sm:$0xff]  ;;  %v307_v58 = vld [vmem:[%s3937_s22 + $0xa8] sm:$0xff] }
  0x6e   : > { %3216 = vmatpush3.msra.mxu0 %v423_v7  ;;  %3449 = vmatpush3.msra.mxu1 %v423_v7  ;;  %v308_v59 = vld [vmem:[%s3937_s22 + $0xb0] sm:$0xff]  ;;  %v371_v60 = vld [vmem:[%s3937_s22 + $0x2a8] sm:$0xff]  ;;  %v309_v62 = vld [vmem:[%s3937_s22 + $0xb8] sm:$0xff] }
  0x6f   : > { %3217 = vmatprep.subr.mxu0 %v422_v8  ;;  %3434 = vmatprep.subr.mxu1 %v422_v8  ;;  %v372_v61 = vld [vmem:[%s3937_s22 + $0x2b0] sm:$0xff]  ;;  %v310_v63 = vld [vmem:[%s3937_s22 + $0xc0] sm:$0xff]  ;;  %v373_v0 = vld [vmem:[%s3937_s22 + $0x2b8] sm:$0xff] }
  0x70   : > { %3218 = vmatpush3.msra.mxu0 %v422_v8  ;;  %3450 = vmatpush3.msra.mxu1 %v422_v8  ;;  %v374_v1 = vld [vmem:[%s3937_s22 + $0x2c0] sm:$0xff]  ;;  %v311_v2 = vld [vmem:[%s3937_s22 + $0xc8] sm:$0xff]  ;;  %v312_v3 = vld [vmem:[%s3937_s22 + $0xd0] sm:$0xff] }
  0x71   : > { %3219 = vmatprep.subr.mxu0 %v421_v9  ;;  %3435 = vmatprep.subr.mxu1 %v421_v9  ;;  %v375_v4 = vld [vmem:[%s3937_s22 + $0x2c8] sm:$0xff]  ;;  %v376_v5 = vld [vmem:[%s3937_s22 + $0x2d0] sm:$0xff]  ;;  %v313_v6 = vld [vmem:[%s3937_s22 + $0xd8] sm:$0xff] }
  0x72   : > { %3220 = vmatpush3.msra.mxu0 %v421_v9  ;;  %3451 = vmatpush3.msra.mxu1 %v421_v9  ;;  %v314_v7 = vld [vmem:[%s3937_s22 + $0xe0] sm:$0xff]  ;;  %v377_v8 = vld [vmem:[%s3937_s22 + $0x2d8] sm:$0xff]  ;;  %v320_v19 = vld [vmem:[%s3937_s22 + $0x110] sm:$0xff] }
  0x73   : > { %3221 = vmatprep.subr.mxu0 %v420_v10  ;;  %3436 = vmatprep.subr.mxu1 %v420_v10  ;;  %v378_v9 = vld [vmem:[%s3937_s22 + $0x2e0] sm:$0xff] }
  0x74   : > { %3222 = vmatpush3.msra.mxu0 %v420_v10  ;;  %3452 = vmatpush3.msra.mxu1 %v420_v10  ;;  %v315_v10 = vld [vmem:[%s3937_s22 + $0xe8] sm:$0xff] }
  0x75   : > { %3223 = vmatprep.subr.mxu0 %v419_v11  ;;  %3437 = vmatprep.subr.mxu1 %v419_v11 }
  0x76   : > { %3224 = vmatpush3.msra.mxu0 %v419_v11  ;;  %3453 = vmatpush3.msra.mxu1 %v419_v11  ;;  %v316_v11 = vld [vmem:[%s3937_s22 + $0xf0] sm:$0xff] }
  0x77   : > { %3225 = vmatprep.subr.mxu0 %v418_v12  ;;  %3438 = vmatprep.subr.mxu1 %v418_v12 }
  0x78   : > { %3226 = vmatpush3.msra.mxu0 %v418_v12  ;;  %3454 = vmatpush3.msra.mxu1 %v418_v12  ;;  %v379_v12 = vld [vmem:[%s3937_s22 + $0x2e8] sm:$0xff] }
  0x79   : > { %3227 = vmatprep.subr.mxu0 %v417_v13  ;;  %3439 = vmatprep.subr.mxu1 %v417_v13 }
  0x7a   : > { %3228 = vmatpush3.msra.mxu0 %v417_v13  ;;  %3455 = vmatpush3.msra.mxu1 %v417_v13  ;;  %v380_v13 = vld [vmem:[%s3937_s22 + $0x2f0] sm:$0xff] }
  0x7b   : > { %3229 = vmatprep.subr.mxu0 %v416_v14  ;;  %3440 = vmatprep.subr.mxu1 %v416_v14 }
  0x7c   : > { %3230 = vmatpush3.msra.mxu0 %v416_v14  ;;  %3456 = vmatpush3.msra.mxu1 %v416_v14  ;;  %v317_v14 = vld [vmem:[%s3937_s22 + $0xf8] sm:$0xff] }
  0x7d   : > { %3231 = vmatprep.subr.mxu0 %v415_v15  ;;  %3441 = vmatprep.subr.mxu1 %v415_v15 }
  0x7e   : > { %3232 = vmatpush3.msra.mxu0 %v415_v15  ;;  %3457 = vmatpush3.msra.mxu1 %v415_v15  ;;  %v318_v15 = vld [vmem:[%s3937_s22 + $0x100] sm:$0xff] }
  0x7f   : > { %3233 = vmatprep.subr.mxu0 %v414_v16  ;;  %3442 = vmatprep.subr.mxu1 %v414_v16 }
  0x80   : > { %3234 = vmatpush3.msra.mxu0 %v414_v16  ;;  %3458 = vmatpush3.msra.mxu1 %v414_v16  ;;  %v381_v16 = vld [vmem:[%s3937_s22 + $0x2f8] sm:$0xff] }
  0x81   : > { %3236 = vmatmul.mubr.f32.vlgmr.msra.gmra.mxu0 %v287_v17  ;;  %3332 = vmatmul.mubr.f32.vlgmr.msra.gmra.mxu1 %v351_v20  ;;  %v382_v17 = vld [vmem:[%s3937_s22 + $0x300] sm:$0xff]  ;;  %v383_v20 = vld [vmem:[%s3937_s22 + $0x308] sm:$0xff] }
  0x82   : > { %3238 = vmatprep.mubr.f32.mxu0 %v288_v18  ;;  %3334 = vmatprep.mubr.f32.mxu1 %v352_v21  ;;  %v319_v18 = vld [vmem:[%s3937_s22 + $0x108] sm:$0xff]  ;;  %v384_v21 = vld [vmem:[%s3937_s22 + $0x310] sm:$0xff] }
  0x85   : > { %3239 = vmatmul.mubr.f32.gmra.mxu0 %v289_v22  ;;  %3335 = vmatmul.mubr.f32.gmra.mxu1 %v353_v24  ;;  %v321_v22 = vld [vmem:[%s3937_s22 + $0x118] sm:$0xff] }
  0x86   : > { %3241 = vmatprep.mubr.f32.mxu0 %v290_v23  ;;  %3337 = vmatprep.mubr.f32.mxu1 %v354_v25  ;;  %v322_v23 = vld [vmem:[%s3937_s22 + $0x120] sm:$0xff]  ;;  %v385_v24 = vld [vmem:[%s3937_s22 + $0x318] sm:$0xff] }
  0x87   : > { %v386_v25 = vld [vmem:[%s3937_s22 + $0x320] sm:$0xff] }
  0x89   : > { %3242 = vmatmul.mubr.f32.gmra.mxu0 %v291_v26  ;;  %3338 = vmatmul.mubr.f32.gmra.mxu1 %v355_v28  ;;  %v323_v26 = vld [vmem:[%s3937_s22 + $0x128] sm:$0xff] }
  0x8a   : > { %3244 = vmatprep.mubr.f32.mxu0 %v292_v27  ;;  %3340 = vmatprep.mubr.f32.mxu1 %v356_v29  ;;  %v324_v27 = vld [vmem:[%s3937_s22 + $0x130] sm:$0xff]  ;;  %v387_v28 = vld [vmem:[%s3937_s22 + $0x328] sm:$0xff] }
  0x8b   : > { %v388_v29 = vld [vmem:[%s3937_s22 + $0x330] sm:$0xff] }
  0x8d   : > { %3245 = vmatmul.mubr.f32.gmra.mxu0 %v293_v30  ;;  %3341 = vmatmul.mubr.f32.gmra.mxu1 %v357_v32  ;;  %v325_v30 = vld [vmem:[%s3937_s22 + $0x138] sm:$0xff] }
  0x8e   : > { %3247 = vmatprep.mubr.f32.mxu0 %v294_v31  ;;  %3343 = vmatprep.mubr.f32.mxu1 %v358_v33  ;;  %v326_v31 = vld [vmem:[%s3937_s22 + $0x140] sm:$0xff]  ;;  %v389_v32 = vld [vmem:[%s3937_s22 + $0x338] sm:$0xff] }
  0x8f   : > { %v390_v33 = vld [vmem:[%s3937_s22 + $0x340] sm:$0xff] }
  0x91   : > { %3248 = vmatmul.mubr.f32.gmra.mxu0 %v295_v34  ;;  %3344 = vmatmul.mubr.f32.gmra.mxu1 %v359_v36  ;;  %v327_v34 = vld [vmem:[%s3937_s22 + $0x148] sm:$0xff] }
  0x92   : > { %3250 = vmatprep.mubr.f32.mxu0 %v296_v35  ;;  %3346 = vmatprep.mubr.f32.mxu1 %v360_v37  ;;  %v328_v35 = vld [vmem:[%s3937_s22 + $0x150] sm:$0xff]  ;;  %v391_v36 = vld [vmem:[%s3937_s22 + $0x348] sm:$0xff] }
  0x93   : > { %v392_v37 = vld [vmem:[%s3937_s22 + $0x350] sm:$0xff] }
  0x95   : > { %3251 = vmatmul.mubr.f32.gmra.mxu0 %v297_v38  ;;  %3347 = vmatmul.mubr.f32.gmra.mxu1 %v361_v40  ;;  %v329_v38 = vld [vmem:[%s3937_s22 + $0x158] sm:$0xff] }
  0x96   : > { %3253 = vmatprep.mubr.f32.mxu0 %v298_v39  ;;  %3349 = vmatprep.mubr.f32.mxu1 %v362_v41  ;;  %v330_v39 = vld [vmem:[%s3937_s22 + $0x160] sm:$0xff]  ;;  %v393_v40 = vld [vmem:[%s3937_s22 + $0x358] sm:$0xff] }
  0x97   : > { %v394_v41 = vld [vmem:[%s3937_s22 + $0x360] sm:$0xff] }
  0x99   : > { %3254 = vmatmul.mubr.f32.gmra.mxu0 %v299_v42  ;;  %3350 = vmatmul.mubr.f32.gmra.mxu1 %v363_v44  ;;  %v331_v42 = vld [vmem:[%s3937_s22 + $0x168] sm:$0xff] }
  0x9a   : > { %3256 = vmatprep.mubr.f32.mxu0 %v300_v43  ;;  %3352 = vmatprep.mubr.f32.mxu1 %v364_v45  ;;  %v332_v43 = vld [vmem:[%s3937_s22 + $0x170] sm:$0xff]  ;;  %v395_v44 = vld [vmem:[%s3937_s22 + $0x368] sm:$0xff] }
  0x9b   : > { %v396_v45 = vld [vmem:[%s3937_s22 + $0x370] sm:$0xff] }
  0x9d   : > { %3257 = vmatmul.mubr.f32.gmra.mxu0 %v301_v46  ;;  %3353 = vmatmul.mubr.f32.gmra.mxu1 %v365_v48  ;;  %v333_v46 = vld [vmem:[%s3937_s22 + $0x178] sm:$0xff] }
  0x9e   : > { %3259 = vmatprep.mubr.f32.mxu0 %v302_v47  ;;  %3355 = vmatprep.mubr.f32.mxu1 %v366_v49  ;;  %v334_v47 = vld [vmem:[%s3937_s22 + $0x180] sm:$0xff]  ;;  %v397_v48 = vld [vmem:[%s3937_s22 + $0x378] sm:$0xff] }
  0x9f   : > { %v398_v49 = vld [vmem:[%s3937_s22 + $0x380] sm:$0xff] }
  0xa1   : > { %3260 = vmatmul.mubr.f32.gmra.mxu0 %v303_v50  ;;  %3356 = vmatmul.mubr.f32.gmra.mxu1 %v367_v52  ;;  %v335_v50 = vld [vmem:[%s3937_s22 + $0x188] sm:$0xff] }
  0xa2   : > { %3262 = vmatprep.mubr.f32.mxu0 %v304_v51  ;;  %3358 = vmatprep.mubr.f32.mxu1 %v368_v53  ;;  %v336_v51 = vld [vmem:[%s3937_s22 + $0x190] sm:$0xff]  ;;  %v399_v52 = vld [vmem:[%s3937_s22 + $0x388] sm:$0xff]  ;;  %v337_v53 = vld [vmem:[%s3937_s22 + $0x198] sm:$0xff] }
  0xa5   : > { %3263 = vmatmul.mubr.f32.gmra.mxu0 %v305_v54  ;;  %3359 = vmatmul.mubr.f32.gmra.mxu1 %v369_v56  ;;  %v338_v54 = vld [vmem:[%s3937_s22 + $0x1a0] sm:$0xff]  ;;  %v401_v56 = vld [vmem:[%s3937_s22 + $0x398] sm:$0xff] }
  0xa6   : > { %3265 = vmatprep.mubr.f32.mxu0 %v306_v55  ;;  %3361 = vmatprep.mubr.f32.mxu1 %v370_v57  ;;  %v400_v55 = vld [vmem:[%s3937_s22 + $0x390] sm:$0xff]  ;;  %v339_v57 = vld [vmem:[%s3937_s22 + $0x1a8] sm:$0xff] }
  0xa9   : > { %3266 = vmatmul.mubr.f32.gmra.mxu0 %v307_v58  ;;  %3362 = vmatmul.mubr.f32.gmra.mxu1 %v371_v60  ;;  %v340_v58 = vld [vmem:[%s3937_s22 + $0x1b0] sm:$0xff]  ;;  %v403_v60 = vld [vmem:[%s3937_s22 + $0x3a8] sm:$0xff] }
  0xaa   : > { %3268 = vmatprep.mubr.f32.mxu0 %v308_v59  ;;  %3364 = vmatprep.mubr.f32.mxu1 %v372_v61  ;;  %v402_v59 = vld [vmem:[%s3937_s22 + $0x3a0] sm:$0xff]  ;;  %v341_v61 = vld [vmem:[%s3937_s22 + $0x1b8] sm:$0xff] }
  0xad   : > { %3269 = vmatmul.mubr.f32.gmra.mxu0 %v309_v62  ;;  %3365 = vmatmul.mubr.f32.gmra.mxu1 %v373_v0  ;;  %v342_v62 = vld [vmem:[%s3937_s22 + $0x1c0] sm:$0xff]  ;;  %v405_v0 = vld [vmem:[%s3937_s22 + $0x3b8] sm:$0xff] }
  0xae   : > { %3271 = vmatprep.mubr.f32.mxu0 %v310_v63  ;;  %3367 = vmatprep.mubr.f32.mxu1 %v374_v1  ;;  %v404_v63 = vld [vmem:[%s3937_s22 + $0x3b0] sm:$0xff]  ;;  %v343_v1 = vld [vmem:[%s3937_s22 + $0x1c8] sm:$0xff] }
  0xb1   : > { %3272 = vmatmul.mubr.f32.gmra.mxu0 %v311_v2  ;;  %3368 = vmatmul.mubr.f32.gmra.mxu1 %v375_v4  ;;  %v344_v2 = vld [vmem:[%s3937_s22 + $0x1d0] sm:$0xff]  ;;  %v407_v4 = vld [vmem:[%s3937_s22 + $0x3c8] sm:$0xff] }
  0xb2   : > { %3274 = vmatprep.mubr.f32.mxu0 %v312_v3  ;;  %3370 = vmatprep.mubr.f32.mxu1 %v376_v5  ;;  %v406_v3 = vld [vmem:[%s3937_s22 + $0x3c0] sm:$0xff]  ;;  %v345_v5 = vld [vmem:[%s3937_s22 + $0x1d8] sm:$0xff] }
  0xb5   : > { %3275 = vmatmul.mubr.f32.gmra.mxu0 %v313_v6  ;;  %3371 = vmatmul.mubr.f32.gmra.mxu1 %v377_v8  ;;  %v346_v6 = vld [vmem:[%s3937_s22 + $0x1e0] sm:$0xff]  ;;  %v409_v8 = vld [vmem:[%s3937_s22 + $0x3d8] sm:$0xff] }
  0xb6   : > { %3277 = vmatprep.mubr.f32.mxu0 %v314_v7  ;;  %3373 = vmatprep.mubr.f32.mxu1 %v378_v9  ;;  %v408_v7 = vld [vmem:[%s3937_s22 + $0x3d0] sm:$0xff]  ;;  %v347_v9 = vld [vmem:[%s3937_s22 + $0x1e8] sm:$0xff] }
  0xb9   : > { %3278 = vmatmul.mubr.f32.gmra.mxu0 %v315_v10  ;;  %3374 = vmatmul.mubr.f32.gmra.mxu1 %v379_v12  ;;  %v348_v10 = vld [vmem:[%s3937_s22 + $0x1f0] sm:$0xff]  ;;  %v411_v12 = vld [vmem:[%s3937_s22 + $0x3e8] sm:$0xff] }
  0xba   : > { %3280 = vmatprep.mubr.f32.mxu0 %v316_v11  ;;  %3376 = vmatprep.mubr.f32.mxu1 %v380_v13  ;;  %v410_v11 = vld [vmem:[%s3937_s22 + $0x3e0] sm:$0xff]  ;;  %v349_v13 = vld [vmem:[%s3937_s22 + $0x1f8] sm:$0xff] }
  0xbd   : > { %3281 = vmatmul.mubr.f32.gmra.mxu0 %v317_v14  ;;  %3377 = vmatmul.mubr.f32.gmra.mxu1 %v381_v16  ;;  %v412_v14 = vld [vmem:[%s3937_s22 + $0x3f0] sm:$0xff]  ;;  %v1137_v16 = vlaneseq }
  0xbe   : > { %3283 = vmatprep.mubr.f32.mxu0 %v318_v15  ;;  %3379 = vmatprep.mubr.f32.mxu1 %v382_v17  ;;  %v413_v15 = vld [vmem:[%s3937_s22 + $0x3f8] sm:$0xff]  ;;  %s3044_s22 = sshll.u32 %s3933_s15, 7 }
  0xbf   : > { %v4119_v17 = vshrl.u32 %v1137_v16, 7  ;;  %s5269_s29 = scalar_lea.vmem [#allocation5], %s3044_s22 }
  0xc1   : > { %3284 = vmatmul.mubr.f32.gmra.mxu0 %v319_v18  ;;  %3380 = vmatmul.mubr.f32.gmra.mxu1 %v383_v20  ;;  %v1139_v18 = vadd.s32 8, %v4119_v17  ;;  %v1141_v20 = vadd.s32 24, %v4119_v17 }
  0xc2   : > { %3286 = vmatprep.mubr.f32.mxu0 %v320_v19  ;;  %3382 = vmatprep.mubr.f32.mxu1 %v384_v21  ;;  %v4123_v19 = vstv %s3047_s20  ;;  %s5686_s20 = scalar_lea.hbm %s5829_s3, %s3053_s6 }
  0xc3   : > { %v1268_v21 = vadd.s32 %v4123_v19, %v1139_v18 }
  0xc5   : > { %3287 = vmatmul.mubr.f32.gmra.mxu0 %v321_v22  ;;  %3383 = vmatmul.mubr.f32.gmra.mxu1 %v385_v24  ;;  %v1140_v22 = vadd.s32 16, %v4119_v17  ;;  %v1143_v24 = vadd.s32 40, %v4119_v17  ;;  %vm1396_vm0 = vcmp.lt.s32.totalorder %v1268_v21, 2000  ;;  %v1202_v21 = vadd.s32 512, %v4119_v17 }
  0xc6   : > { %3289 = vmatprep.mubr.f32.mxu0 %v322_v23  ;;  %3385 = vmatprep.mubr.f32.mxu1 %v386_v25  ;;  %v4130_v23 = vadd.s32 %v4123_v19, %v4119_v17  ;;  %v1142_v25 = vadd.s32 32, %v4119_v17 }
  0xc8   : > { %vm1395_vm1 = vcmp.lt.s32.totalorder %v4130_v23, 2000 }
  0xc9   : > { %3290 = vmatmul.mubr.f32.gmra.mxu0 %v323_v26  ;;  %3386 = vmatmul.mubr.f32.gmra.mxu1 %v387_v28  ;;  %v1145_v26 = vadd.s32 56, %v4119_v17  ;;  %v4137_v28 = vadd.s32 %v4123_v19, %v1141_v20 }
  0xca   : > { %3292 = vmatprep.mubr.f32.mxu0 %v324_v27  ;;  %3388 = vmatprep.mubr.f32.mxu1 %v388_v29  ;;  %v1144_v27 = vadd.s32 48, %v4119_v17  ;;  %v1147_v29 = vadd.s32 72, %v4119_v17 }
  0xcb   : > { %vm1398_vm2 = vcmp.lt.s32.totalorder %v4137_v28, 2000 }
  0xcd   : > { %3293 = vmatmul.mubr.f32.gmra.mxu0 %v325_v30  ;;  %3389 = vmatmul.mubr.f32.gmra.mxu1 %v389_v32  ;;  %v1146_v30 = vadd.s32 64, %v4119_v17  ;;  %v1149_v32 = vadd.s32 88, %v4119_v17 }
  0xce   : > { %3295 = vmatprep.mubr.f32.mxu0 %v326_v31  ;;  %3391 = vmatprep.mubr.f32.mxu1 %v390_v33  ;;  %v4142_v31 = vadd.s32 %v4123_v19, %v1140_v22  ;;  %v1148_v33 = vadd.s32 80, %v4119_v17 }
  0xd0   : > { %vm1397_vm4 = vcmp.lt.s32.totalorder %v4142_v31, 2000 }
  0xd1   : > { %3296 = vmatmul.mubr.f32.gmra.mxu0 %v327_v34  ;;  %3392 = vmatmul.mubr.f32.gmra.mxu1 %v391_v36  ;;  %v4148_v34 = vadd.s32 %v4123_v19, %v1143_v24  ;;  %v4154_v36 = vadd.s32 %v4123_v19, %v1145_v26 }
  0xd2   : > { %3298 = vmatprep.mubr.f32.mxu0 %v328_v35  ;;  %3394 = vmatprep.mubr.f32.mxu1 %v392_v37  ;;  %v4151_v35 = vadd.s32 %v4123_v19, %v1142_v25  ;;  %v1151_v37 = vadd.s32 104, %v4119_v17 }
  0xd3   : > { %vm1400_vm5 = vcmp.lt.s32.totalorder %v4148_v34, 2000  ;;  %vm1402_vm7 = vcmp.lt.s32.totalorder %v4154_v36, 2000 }
  0xd4   : > { %vm1399_vm6 = vcmp.lt.s32.totalorder %v4151_v35, 2000 }
  0xd5   : > { %3299 = vmatmul.mubr.f32.gmra.mxu0 %v329_v38  ;;  %3395 = vmatmul.mubr.f32.gmra.mxu1 %v393_v40  ;;  %v4158_v38 = vadd.s32 %v4123_v19, %v1144_v27  ;;  %v1153_v40 = vadd.s32 120, %v4119_v17 }
  0xd6   : > { %3301 = vmatprep.mubr.f32.mxu0 %v330_v39  ;;  %3397 = vmatprep.mubr.f32.mxu1 %v394_v41  ;;  %v1150_v39 = vadd.s32 96, %v4119_v17  ;;  %v1152_v41 = vadd.s32 112, %v4119_v17 }
  0xd7   : > { %vm1401_vm8 = vcmp.lt.s32.totalorder %v4158_v38, 2000 }
  0xd9   : > { %3302 = vmatmul.mubr.f32.gmra.mxu0 %v331_v42  ;;  %3398 = vmatmul.mubr.f32.gmra.mxu1 %v395_v44  ;;  %v4165_v42 = vadd.s32 %v4123_v19, %v1147_v29  ;;  %v1155_v44 = vadd.s32 136, %v4119_v17 }
  0xda   : > { %3304 = vmatprep.mubr.f32.mxu0 %v332_v43  ;;  %3400 = vmatprep.mubr.f32.mxu1 %v396_v45  ;;  %v4168_v43 = vadd.s32 %v4123_v19, %v1146_v30  ;;  %v1154_v45 = vadd.s32 128, %v4119_v17 }
  0xdb   : > { %vm1404_vm9 = vcmp.lt.s32.totalorder %v4165_v42, 2000 }
  0xdc   : > { %vm1403_vm10 = vcmp.lt.s32.totalorder %v4168_v43, 2000 }
  0xdd   : > { %3305 = vmatmul.mubr.f32.gmra.mxu0 %v333_v46  ;;  %3401 = vmatmul.mubr.f32.gmra.mxu1 %v397_v48  ;;  %v4173_v46 = vadd.s32 %v4123_v19, %v1149_v32  ;;  %v1157_v48 = vadd.s32 152, %v4119_v17  ;;  %v1170_v32 = vadd.s32 256, %v4119_v17 }
  0xde   : > { %3307 = vmatprep.mubr.f32.mxu0 %v334_v47  ;;  %3403 = vmatprep.mubr.f32.mxu1 %v398_v49  ;;  %v4176_v47 = vadd.s32 %v4123_v19, %v1148_v33  ;;  %v1156_v49 = vadd.s32 144, %v4119_v17 }
  0xdf   : > { %vm1406_vm11 = vcmp.lt.s32.totalorder %v4173_v46, 2000 }
  0xe0   : > { %vm1405_vm12 = vcmp.lt.s32.totalorder %v4176_v47, 2000 }
  0xe1   : > { %3308 = vmatmul.mubr.f32.gmra.mxu0 %v335_v50  ;;  %3404 = vmatmul.mubr.f32.gmra.mxu1 %v399_v52  ;;  %v4182_v50 = vadd.s32 %v4123_v19, %v1151_v37  ;;  %v1158_v52 = vadd.s32 160, %v4119_v17 }
  0xe2   : > { %3310 = vmatprep.mubr.f32.mxu0 %v336_v51  ;;  %3406 = vmatprep.mubr.f32.mxu1 %v400_v55  ;;  %v1159_v51 = vadd.s32 168, %v4119_v17  ;;  %v4191_v55 = vadd.s32 %v4123_v19, %v1153_v40 }
  0xe3   : > { %vm1408_vm13 = vcmp.lt.s32.totalorder %v4182_v50, 2000 }
  0xe4   : > { %vm1410_vm15 = vcmp.lt.s32.totalorder %v4191_v55, 2000 }
  0xe5   : > { %3311 = vmatmul.mubr.f32.gmra.mxu0 %v337_v53  ;;  %3407 = vmatmul.mubr.f32.gmra.mxu1 %v401_v56  ;;  %v1160_v53 = vadd.s32 176, %v4119_v17  ;;  %v4194_v56 = vadd.s32 %v4123_v19, %v1152_v41 }
  0xe6   : > { %3313 = vmatprep.mubr.f32.mxu0 %v338_v54  ;;  %3409 = vmatprep.mubr.f32.mxu1 %v402_v59  ;;  %v4188_v54 = vadd.s32 %v4123_v19, %v1150_v39  ;;  %v4202_v59 = vadd.s32 %v4123_v19, %v1154_v45  ;;  %v1171_v45 = vadd.s32 264, %v4119_v17 }
  0xe8   : > { %vm1407_vm14 = vcmp.lt.s32.totalorder %v4188_v54, 2000 }
  0xe9   : > { %3314 = vmatmul.mubr.f32.gmra.mxu0 %v339_v57  ;;  %3410 = vmatmul.mubr.f32.gmra.mxu1 %v403_v60  ;;  %v1161_v57 = vadd.s32 184, %v4119_v17  ;;  %v1163_v60 = vadd.s32 200, %v4119_v17 }
  0xea   : > { %3316 = vmatprep.mubr.f32.mxu0 %v340_v58  ;;  %3412 = vmatprep.mubr.f32.mxu1 %v404_v63  ;;  %v4199_v58 = vadd.s32 %v4123_v19, %v1155_v44  ;;  %v4210_v63 = vadd.s32 %v4123_v19, %v1156_v49 }
  0xed   : > { %3317 = vmatmul.mubr.f32.gmra.mxu0 %v341_v61  ;;  %3413 = vmatmul.mubr.f32.gmra.mxu1 %v405_v0  ;;  %v1162_v61 = vadd.s32 192, %v4119_v17  ;;  %v1165_v0 = vadd.s32 216, %v4119_v17 }
  0xee   : > { %3319 = vmatprep.mubr.f32.mxu0 %v342_v62  ;;  %3415 = vmatprep.mubr.f32.mxu1 %v406_v3  ;;  %v4207_v62 = vadd.s32 %v4123_v19, %v1157_v48  ;;  %v4216_v3 = vadd.s32 %v4123_v19, %v1159_v51  ;;  %v4276_v48 = vadd.s32 %v4123_v19, %v1202_v21 }
  0xef   : > { %v4243_v18 = vadd.s32 %v4123_v19, %v1165_v0  ;;  %v4287_v0 = vadd.s32 %v4123_v19, %v1170_v32 }
  0xf1   : > { %3320 = vmatmul.mubr.f32.gmra.mxu0 %v343_v1  ;;  %3416 = vmatmul.mubr.f32.gmra.mxu1 %v407_v4  ;;  %v1164_v1 = vadd.s32 208, %v4119_v17  ;;  %v4219_v4 = vadd.s32 %v4123_v19, %v1158_v52 }
  0xf2   : > { %3322 = vmatprep.mubr.f32.mxu0 %v344_v2  ;;  %3418 = vmatprep.mubr.f32.mxu1 %v408_v7 }
  0xf3   : > { %v4246_v20 = vadd.s32 %v4123_v19, %v1164_v1 }
  0xf5   : > { %3323 = vmatmul.mubr.f32.gmra.mxu0 %v345_v5  ;;  %3419 = vmatmul.mubr.f32.gmra.mxu1 %v409_v8  ;;  %v4222_v5 = vadd.s32 %v4123_v19, %v1160_v53  ;;  %v4227_v8 = vadd.s32 %v4123_v19, %v1161_v57 }
  0xf6   : > { %3325 = vmatprep.mubr.f32.mxu0 %v346_v6  ;;  %3421 = vmatprep.mubr.f32.mxu1 %v410_v11  ;;  %v1166_v6 = vadd.s32 224, %v4119_v17 }
  0xf8   : > { %v4252_v27 = vadd.s32 %v4123_v19, %v1166_v6 }
  0xf9   : > { %3326 = vmatmul.mubr.f32.gmra.mxu0 %v347_v9  ;;  %3422 = vmatmul.mubr.f32.gmra.mxu1 %v411_v12  ;;  %v1167_v9 = vadd.s32 232, %v4119_v17  ;;  %v4233_v12 = vadd.s32 %v4123_v19, %v1163_v60 }
  0xfa   : > { %3328 = vmatprep.mubr.f32.mxu0 %v348_v10  ;;  %3424 = vmatprep.mubr.f32.mxu1 %v412_v14  ;;  %v1168_v10 = vadd.s32 240, %v4119_v17  ;;  %v1169_v14 = vadd.s32 248, %v4119_v17 }
  0xfb   : > { %v4257_v29 = vadd.s32 %v4123_v19, %v1167_v9  ;;  %v1204_v9 = vadd.s32 528, %v4119_v17 }
  0xfc   : > { %v4260_v30 = vadd.s32 %v4123_v19, %v1168_v10  ;;  %v4267_v40 = vadd.s32 %v4123_v19, %v1169_v14  ;;  %v4297_v14 = vadd.s32 %v4123_v19, %v1171_v45 }
  0xfd   : > { %3329 = vmatmul.mubr.f32.gmra.mxu0 %v349_v13  ;;  %3425 = vmatmul.mubr.f32.gmra.mxu1 %v413_v15  ;;  %v4236_v13 = vadd.s32 %v4123_v19, %v1162_v61  ;;  %v1203_v15 = vadd.s32 520, %v4119_v17  ;;  %v4319_v45 = vadd.s32 %v4123_v19, %v1204_v9 }
  0xff   : > { %v4270_v28 = vadd.s32 %v4123_v19, %v1203_v15 }
 0x141   : > { %v3237_v2 = vpop.f32.mrf.mxu0 }
 0x142   : > { %v1780_v7 = vsel %vm1396_vm0, %v3237_v2, 0.0  ;;  %vm1409_vm0 = vcmp.lt.s32.totalorder %v4194_v56, 2000 }
 0x143   : > { %v496_v11 = vpop.f32.mrf.mxu0  ;;  %v2174_v22 = vmul.f32 %v1780_v7, %v1780_v7  ;;  %v1910_v33 = vsel %vm283_vm3, %v1780_v7, 0.0  ;;  %v1205_v7 = vadd.s32 536, %v4119_v17 }
 0x144   : > { %v1779_v16 = vsel %vm1395_vm1, %v496_v11, 0.0  ;;  %2564 = vxpose.xlu0.b32.start [1/16] (narrow) %v496_v11, 16  ;;  %vm1412_vm1 = vcmp.lt.s32.totalorder %v4199_v58, 2000 }
 0x145   : > { %v1909_v24 = vsel %vm283_vm3, %v1779_v16, 0.0  ;;  %v2173_v25 = vmul.f32 %v1779_v16, %v1779_v16  ;;  %v3240_v26 = vpop.f32.mrf.mxu0  ;;  %v2302_v49 = vsel %vm283_vm3, %v2174_v22, 0.0 }
 0x146   : > { %v1782_v23 = vsel %vm1398_vm2, %v3240_v26, 0.0  ;;  %v1911_v41 = vadd.f32 %v1910_v33, %v1909_v24  ;;  %v1172_v33 = vadd.s32 272, %v4119_v17  ;;  %vm1411_vm2 = vcmp.lt.s32.totalorder %v4202_v59, 2000 }
 0x147   : > { %v2301_v37 = vsel %vm283_vm3, %v2173_v25, 0.0  ;;  %v506_v39 = vpop.f32.mrf.mxu0  ;;  %v2176_v51 = vmul.f32 %v1782_v23, %v1782_v23  ;;  %v1914_v1 = vsel %vm283_vm3, %v1782_v23, 0.0  ;;  %v4304_v25 = vpop.f32.mrf.mxu1 }
 0x148   : > { %v1781_v44 = vsel %vm1397_vm4, %v506_v39, 0.0  ;;  %2565 = vxpose.xlu0.b32.cont [2/16] (narrow) %v3237_v2, 16  ;;  %v2303_v60 = vadd.f32 %v2302_v49, %v2301_v37  ;;  %vm1414_vm4 = vcmp.lt.s32.totalorder %v4207_v62, 2000 }
 0x149   : > { %v1912_v52 = vsel %vm283_vm3, %v1781_v44, 0.0  ;;  %v2175_v53 = vmul.f32 %v1781_v44, %v1781_v44  ;;  %v4280_v57 = vpop.f32.mrf.mxu0  ;;  %v2306_v15 = vsel %vm283_vm3, %v2176_v51, 0.0  ;;  %v4316_v44 = vadd.s32 %v4123_v19, %v1205_v7 }
 0x14a   : > { %v1913_v61 = vadd.f32 %v1912_v52, %v1911_v41  ;;  %v1784_v31 = vsel %vm1400_vm5, %v4280_v57, 0.0  ;;  %v1173_v52 = vadd.s32 280, %v4119_v17  ;;  %vm1413_vm5 = vcmp.lt.s32.totalorder %v4210_v63, 2000 }
 0x14b   : > { %v2304_v2 = vsel %vm283_vm3, %v2175_v53, 0.0  ;;  %v516_v6 = vpop.f32.mrf.mxu0  ;;  %v2178_v16 = vmul.f32 %v1784_v31, %v1784_v31  ;;  %v1918_v37 = vsel %vm283_vm3, %v1784_v31, 0.0 }
 0x14c   : > { %v1915_v10 = vadd.f32 %v1914_v1, %v1913_v61  ;;  %v2305_v11 = vadd.f32 %v2304_v2, %v2303_v60  ;;  %v1783_v34 = vsel %vm1399_vm6, %v516_v6, 0.0  ;;  %2566 = vxpose.xlu0.b32.cont [3/16] (narrow) %v506_v39, 16  ;;  %v4330_v2 = vpop.f32.mrf.mxu1  ;;  %vm1416_vm6 = vcmp.lt.s32.totalorder %v4216_v3, 2000 }
 0x14d   : > { %v1916_v21 = vsel %vm283_vm3, %v1783_v34, 0.0  ;;  %v2177_v22 = vmul.f32 %v1783_v34, %v1783_v34  ;;  %v4301_v24 = vpop.f32.mrf.mxu0  ;;  %v2310_v53 = vsel %vm283_vm3, %v2178_v16, 0.0  ;;  %v1206_v16 = vadd.s32 544, %v4119_v17 }
 0x14e   : > { %v2307_v23 = vadd.f32 %v2306_v15, %v2305_v11  ;;  %v1917_v32 = vadd.f32 %v1916_v21, %v1915_v10  ;;  %v1786_v35 = vsel %vm1402_vm7, %v4301_v24, 0.0  ;;  %v1207_v15 = vadd.s32 552, %v4119_v17 }
 0x14f   : > { %v2308_v39 = vsel %vm283_vm3, %v2177_v22, 0.0  ;;  %v4312_v41 = vpop.f32.mrf.mxu0  ;;  %v2180_v60 = vmul.f32 %v1786_v35, %v1786_v35  ;;  %v1922_v10 = vsel %vm283_vm3, %v1786_v35, 0.0  ;;  %vm1415_vm7 = vcmp.lt.s32.totalorder %v4219_v4, 2000 }
 0x150   : > { %v1919_v49 = vadd.f32 %v1918_v37, %v1917_v32  ;;  %v2309_v51 = vadd.f32 %v2308_v39, %v2307_v23  ;;  %v1785_v36 = vsel %vm1401_vm8, %v4312_v41, 0.0  ;;  %2567 = vxpose.xlu0.b32.cont [4/16] (narrow) %v3240_v26, 16  ;;  %v4336_v26 = vadd.s32 %v4123_v19, %v1172_v33 }
 0x151   : > { %v1920_v61 = vsel %vm283_vm3, %v1785_v36, 0.0  ;;  %v2179_v31 = vmul.f32 %v1785_v36, %v1785_v36  ;;  %v4327_v1 = vpop.f32.mrf.mxu0  ;;  %v4349_v23 = vadd.s32 %v4123_v19, %v1173_v52  ;;  %v2314_v32 = vsel %vm283_vm3, %v2180_v60, 0.0 }
 0x152   : > { %v2311_v7 = vadd.f32 %v2310_v53, %v2309_v51  ;;  %v1921_v9 = vadd.f32 %v1920_v61, %v1919_v49  ;;  %v1788_v38 = vsel %vm1404_vm9, %v4327_v1, 0.0  ;;  %v4356_v49 = vpop.f32.mrf.mxu1  ;;  %v1174_v36 = vadd.s32 288, %v4119_v17 }
 0x153   : > { %v2312_v11 = vsel %vm283_vm3, %v2179_v31, 0.0  ;;  %v4340_v34 = vpop.f32.mrf.mxu0  ;;  %v2182_v35 = vmul.f32 %v1788_v38, %v1788_v38  ;;  %v1926_v52 = vsel %vm283_vm3, %v1788_v38, 0.0  ;;  %v4368_v61 = vadd.s32 %v4123_v19, %v1207_v15 }
 0x154   : > { %v2313_v21 = vadd.f32 %v2312_v11, %v2311_v7  ;;  %v1787_v42 = vsel %vm1403_vm10, %v4340_v34, 0.0  ;;  %v1923_v22 = vadd.f32 %v1922_v10, %v1921_v9  ;;  %2568 = vxpose.xlu0.b32.cont [5/16] (narrow) %v516_v6, 16  ;;  %v4371_v31 = vadd.s32 %v4123_v19, %v1206_v16  ;;  %v4383_v16 = vpop.f32.mrf.mxu1 }
 0x155   : > { %v1924_v33 = vsel %vm283_vm3, %v1787_v42, 0.0  ;;  %v2181_v37 = vmul.f32 %v1787_v42, %v1787_v42  ;;  %v4353_v39 = vpop.f32.mrf.mxu0  ;;  %v1175_v38 = vadd.s32 296, %v4119_v17  ;;  %v2318_v10 = vsel %vm283_vm3, %v2182_v35, 0.0 }
 0x156   : > { %v1925_v51 = vadd.f32 %v1924_v33, %v1923_v22  ;;  %v2315_v43 = vadd.f32 %v2314_v32, %v2313_v21  ;;  %v1790_v6 = vsel %vm1406_vm11, %v4353_v39, 0.0  ;;  %5900 = vst [vmem:[#allocation16_spill] sm:$0xff] %v4371_v31  ;;  %v4389_v32 = vadd.s32 %v4123_v19, %v1174_v36 }
 0x157   : > { %v2316_v53 = vsel %vm283_vm3, %v2181_v37, 0.0  ;;  %v4364_v60 = vpop.f32.mrf.mxu0  ;;  %v2184_v11 = vmul.f32 %v1790_v6, %v1790_v6  ;;  %v1930_v35 = vsel %vm283_vm3, %v1790_v6, 0.0  ;;  %v4403_v6 = vadd.s32 %v4123_v19, %v1175_v38 }
 0x158   : > { %v2317_v7 = vadd.f32 %v2316_v53, %v2315_v43  ;;  %v1789_v46 = vsel %vm1405_vm12, %v4364_v60, 0.0  ;;  %v1927_v9 = vadd.f32 %v1926_v52, %v1925_v51  ;;  %2569 = vxpose.xlu0.b32.cont [6/16] (narrow) %v4280_v57, 16  ;;  %v1209_v51 = vadd.s32 568, %v4119_v17 }
 0x159   : > { %v1928_v21 = vsel %vm283_vm3, %v1789_v46, 0.0  ;;  %v2183_v15 = vmul.f32 %v1789_v46, %v1789_v46  ;;  %v4380_v42 = vpop.f32.mrf.mxu0  ;;  %v1208_v43 = vadd.s32 560, %v4119_v17  ;;  %v2322_v36 = vsel %vm283_vm3, %v2184_v11, 0.0 }
 0x15a   : > { %v1929_v22 = vadd.f32 %v1928_v21, %v1927_v9  ;;  %v2319_v47 = vadd.f32 %v2318_v10, %v2317_v7  ;;  %v1792_v57 = vsel %vm1408_vm13, %v4380_v42, 0.0  ;;  %v4410_v21 = vpop.f32.mrf.mxu1  ;;  %v1176_v38 = vadd.s32 304, %v4119_v17 }
 0x15b   : > { %v2320_v33 = vsel %vm283_vm3, %v2183_v15, 0.0  ;;  %v4393_v37 = vpop.f32.mrf.mxu0  ;;  %v2186_v7 = vmul.f32 %v1792_v57, %v1792_v57  ;;  %v1934_v11 = vsel %vm283_vm3, %v1792_v57, 0.0  ;;  %v1177_v57 = vadd.s32 312, %v4119_v17 }
 0x15c   : > { %v2321_v52 = vadd.f32 %v2320_v33, %v2319_v47  ;;  %v1791_v50 = vsel %vm1407_vm14, %v4393_v37, 0.0  ;;  %v1931_v53 = vadd.f32 %v1930_v35, %v1929_v22  ;;  %2570 = vxpose.xlu0.b32.cont [7/16] (narrow) %v4312_v41, 16  ;;  %v4422_v35 = vadd.s32 %v4123_v19, %v1209_v51 }
 0x15d   : > { %v1932_v46 = vsel %vm283_vm3, %v1791_v50, 0.0  ;;  %v2185_v9 = vmul.f32 %v1791_v50, %v1791_v50  ;;  %v4407_v10 = vpop.f32.mrf.mxu0  ;;  %v4425_v33 = vadd.s32 %v4123_v19, %v1208_v43  ;;  %v4435_v43 = vpop.f32.mrf.mxu1  ;;  %vm1418_vm8 = vcmp.lt.s32.totalorder %v4227_v8, 2000 }
 0x15e   : > { %v1933_v54 = vadd.f32 %v1932_v46, %v1931_v53  ;;  %v2323_v15 = vadd.f32 %v2322_v36, %v2321_v52  ;;  %v1794_v41 = vsel %vm1410_vm15, %v4407_v10, 0.0  ;;  %5901 = vst [vmem:[#allocation17_spill] sm:$0xff] %v4422_v35  ;;  %v2326_v53 = vsel %vm283_vm3, %v2186_v7, 0.0 }
 0x15f   : > { %v2324_v22 = vsel %vm283_vm3, %v2185_v9, 0.0  ;;  %v4418_v47 = vpop.f32.mrf.mxu0  ;;  %5902 = vst [vmem:[#allocation18_spill] sm:$0xff] %v4425_v33  ;;  %v2188_v36 = vmul.f32 %v1794_v41, %v1794_v41  ;;  %v1210_v33 = vadd.s32 576, %v4119_v17  ;;  %vm1417_vm9 = vcmp.lt.s32.totalorder %v4222_v5, 2000 }
 0x160   : > { %v2325_v52 = vadd.f32 %v2324_v22, %v2323_v15  ;;  %v1793_v55 = vsel %vm1409_vm0, %v4418_v47, 0.0  ;;  %v1935_v50 = vadd.f32 %v1934_v11, %v1933_v54  ;;  %2571 = vxpose.xlu0.b32.cont [8/16] (narrow) %v4301_v24, 16  ;;  %v1211_v24 = vadd.s32 584, %v4119_v17 }
 0x161   : > { %v1936_v46 = vsel %vm283_vm3, %v1793_v55, 0.0  ;;  %v2187_v51 = vmul.f32 %v1793_v55, %v1793_v55  ;;  %v3261_v9 = vpop.f32.mrf.mxu0  ;;  %v1938_v54 = vsel %vm283_vm3, %v1794_v41, 0.0  ;;  %v4444_v55 = vadd.s32 %v4123_v19, %v1176_v38 }
 0x162   : > { %v1937_v15 = vadd.f32 %v1936_v46, %v1935_v50  ;;  %v2327_v22 = vadd.f32 %v2326_v53, %v2325_v52  ;;  %v1796_v56 = vsel %vm1412_vm1, %v3261_v9, 0.0  ;;  %v4451_v41 = vadd.s32 %v4123_v19, %v1177_v57 }
 0x163   : > { %v2328_v7 = vsel %vm283_vm3, %v2187_v51, 0.0  ;;  %v576_v11 = vpop.f32.mrf.mxu0  ;;  %v2330_v50 = vsel %vm283_vm3, %v2188_v36, 0.0  ;;  %v2190_v53 = vmul.f32 %v1796_v56, %v1796_v56  ;;  %v1942_v57 = vsel %vm283_vm3, %v1796_v56, 0.0 }
 0x164   : > { %v2329_v35 = vadd.f32 %v2328_v7, %v2327_v22  ;;  %v1795_v52 = vsel %vm1411_vm2, %v576_v11, 0.0  ;;  %v1939_v58 = vadd.f32 %v1938_v54, %v1937_v15  ;;  %2572 = vxpose.xlu0.b32.cont [9/16] (narrow) %v4340_v34, 16  ;;  %2596 = vxpose.xlu1.b32.start [1/16] (narrow) %v576_v11, 16  ;;  %v4456_v22 = vpop.f32.mrf.mxu1  ;;  %v4461_v15 = vadd.s32 %v4123_v19, %v1211_v24 }
 0x165   : > { %v1940_v46 = vsel %vm283_vm3, %v1795_v52, 0.0  ;;  %v2189_v38 = vmul.f32 %v1795_v52, %v1795_v52  ;;  %v3264_v51 = vpop.f32.mrf.mxu0  ;;  %vm1420_vm10 = vcmp.lt.s32.totalorder %v4233_v12, 2000  ;;  %v1178_v52 = vadd.s32 320, %v4119_v17 }
 0x166   : > { %v1941_v59 = vadd.f32 %v1940_v46, %v1939_v58  ;;  %v2331_v7 = vadd.f32 %v2330_v50, %v2329_v35  ;;  %v1798_v34 = vsel %vm1414_vm4, %v3264_v51, 0.0  ;;  %v4471_v62 = vadd.s32 %v4123_v19, %v1210_v33  ;;  %v4479_v63 = vpop.f32.mrf.mxu1 }
 0x167   : > { %v2332_v36 = vsel %vm283_vm3, %v2189_v38, 0.0  ;;  %v2192_v54 = vmul.f32 %v1798_v34, %v1798_v34  ;;  %v586_v11 = vpop.f32.mrf.mxu0  ;;  %v2334_v56 = vsel %vm283_vm3, %v2190_v53, 0.0  ;;  %v1946_v24 = vsel %vm283_vm3, %v1798_v34, 0.0 }
 0x168   : > { %v2333_v31 = vadd.f32 %v2332_v36, %v2331_v7  ;;  %v1797_v35 = vsel %vm1413_vm5, %v586_v11, 0.0  ;;  %v1943_v58 = vadd.f32 %v1942_v57, %v1941_v59  ;;  %2573 = vxpose.xlu0.b32.cont [10/16] (narrow) %v4327_v1, 16  ;;  %2597 = vxpose.xlu1.b32.cont [2/16] (narrow) %v3261_v9, 16  ;;  %5903 = vst [vmem:[#allocation19_spill] sm:$0xff] %v4471_v62  ;;  %vm1419_vm11 = vcmp.lt.s32.totalorder %v4236_v13, 2000 }
 0x169   : > { %v1944_v50 = vsel %vm283_vm3, %v1797_v35, 0.0  ;;  %v2191_v46 = vmul.f32 %v1797_v35, %v1797_v35  ;;  %v4476_v38 = vpop.f32.mrf.mxu0  ;;  %v1179_v33 = vadd.s32 328, %v4119_v17  ;;  %v2338_v9 = vsel %vm283_vm3, %v2192_v54, 0.0 }
 0x16a   : > { %v1945_v59 = vadd.f32 %v1944_v50, %v1943_v58  ;;  %v2335_v7 = vadd.f32 %v2334_v56, %v2333_v31  ;;  %v1800_v1 = vsel %vm1416_vm6, %v4476_v38, 0.0  ;;  %vm1422_vm12 = vcmp.lt.s32.totalorder %v4243_v18, 2000 }
 0x16b   : > { %v2336_v53 = vsel %vm283_vm3, %v2191_v46, 0.0  ;;  %v2194_v34 = vmul.f32 %v1800_v1, %v1800_v1  ;;  %v596_v57 = vpop.f32.mrf.mxu0  ;;  %v4489_v36 = vadd.s32 %v4123_v19, %v1178_v52  ;;  %v1213_v3 = vadd.s32 600, %v4119_v17  ;;  %v4500_v52 = vpop.f32.mrf.mxu1 }
 0x16c   : > { %v2337_v35 = vadd.f32 %v2336_v53, %v2335_v7  ;;  %v1799_v31 = vsel %vm1415_vm7, %v596_v57, 0.0  ;;  %v1947_v58 = vadd.f32 %v1946_v24, %v1945_v59  ;;  %2574 = vxpose.xlu0.b32.cont [11/16] (narrow) %v4364_v60, 16  ;;  %2598 = vxpose.xlu1.b32.cont [3/16] (narrow) %v586_v11, 16  ;;  %v1950_v54 = vsel %vm283_vm3, %v1800_v1, 0.0 }
 0x16d   : > { %v1948_v56 = vsel %vm283_vm3, %v1799_v31, 0.0  ;;  %v2193_v50 = vmul.f32 %v1799_v31, %v1799_v31  ;;  %v4497_v46 = vpop.f32.mrf.mxu0  ;;  %vm1421_vm13 = vcmp.lt.s32.totalorder %v4246_v20, 2000  ;;  %v1212_v4 = vadd.s32 592, %v4119_v17 }
 0x16e   : > { %v1949_v7 = vadd.f32 %v1948_v56, %v1947_v58  ;;  %v2339_v24 = vadd.f32 %v2338_v9, %v2337_v35  ;;  %v1802_v60 = vsel %vm1418_vm8, %v4497_v46, 0.0  ;;  %v4507_v11 = vadd.s32 %v4123_v19, %v1179_v33 }
 0x16f   : > { %v2342_v59 = vsel %vm283_vm3, %v2194_v34, 0.0  ;;  %v2340_v1 = vsel %vm283_vm3, %v2193_v50, 0.0  ;;  %v2196_v53 = vmul.f32 %v1802_v60, %v1802_v60  ;;  %v4511_v31 = vpop.f32.mrf.mxu0  ;;  %vm1424_vm14 = vcmp.lt.s32.totalorder %v4257_v29, 2000 }
 0x170   : > { %v1180_v62 = vadd.s32 336, %v4119_v17  ;;  %v2341_v58 = vadd.f32 %v2340_v1, %v2339_v24  ;;  %v1801_v8 = vsel %vm1417_vm9, %v4511_v31, 0.0  ;;  %v1951_v9 = vadd.f32 %v1950_v54, %v1949_v7  ;;  %2575 = vxpose.xlu0.b32.cont [12/16] (narrow) %v4353_v39, 16  ;;  %2599 = vxpose.xlu1.b32.cont [4/16] (narrow) %v3264_v51, 16  ;;  %v4527_v24 = vpop.f32.mrf.mxu1 }
 0x171   : > { %v4520_v33 = vadd.s32 %v4123_v19, %v1213_v3  ;;  %v1954_v34 = vsel %vm283_vm3, %v1802_v60, 0.0  ;;  %v1952_v35 = vsel %vm283_vm3, %v1801_v8, 0.0  ;;  %v2195_v56 = vmul.f32 %v1801_v8, %v1801_v8  ;;  %v4524_v50 = vpop.f32.mrf.mxu0 }
 0x172   : > { %vm1423_vm15 = vcmp.lt.s32.totalorder %v4252_v27, 2000  ;;  %v4530_v5 = vadd.s32 %v4123_v19, %v1212_v4  ;;  %v1953_v54 = vadd.f32 %v1952_v35, %v1951_v9  ;;  %v2343_v39 = vadd.f32 %v2342_v59, %v2341_v58 }
 0x173   : > { %5904 = vst [vmem:[#allocation20_spill] sm:$0xff] %v4520_v33  ;;  %v1804_v51 = vsel %vm1420_vm10, %v4524_v50, 0.0  ;;  %v1181_v3 = vadd.s32 344, %v4119_v17  ;;  %v2346_v7 = vsel %vm283_vm3, %v2196_v53, 0.0  ;;  %v2344_v60 = vsel %vm283_vm3, %v2195_v56, 0.0  ;;  %v4538_v8 = vpop.f32.mrf.mxu0 }
 0x174   : > { %5905 = vst [vmem:[#allocation21_spill] sm:$0xff] %v4530_v5  ;;  %v2198_v1 = vmul.f32 %v1804_v51, %v1804_v51  ;;  %vm1426_vm0 = vcmp.lt.s32.totalorder %v4267_v40, 2000  ;;  %v4542_v4 = vadd.s32 %v4123_v19, %v1180_v62  ;;  %v2345_v9 = vadd.f32 %v2344_v60, %v2343_v39  ;;  %2576 = vxpose.xlu0.b32.cont [13/16] (narrow) %v4393_v37, 16  ;;  %v4554_v62 = vpop.f32.mrf.mxu1 }
 0x175   : > { %v1803_v12 = vsel %vm1419_vm11, %v4538_v8, 0.0  ;;  %v1955_v59 = vadd.f32 %v1954_v34, %v1953_v54  ;;  %2600 = vxpose.xlu1.b32.cont [5/16] (narrow) %v596_v57, 16  ;;  %v1215_v53 = vadd.s32 616, %v4119_v17  ;;  %v1958_v58 = vsel %vm283_vm3, %v1804_v51, 0.0  ;;  %v4551_v5 = vpop.f32.mrf.mxu0 }
 0x176   : > { %v1956_v35 = vsel %vm283_vm3, %v1803_v12, 0.0  ;;  %v2197_v56 = vmul.f32 %v1803_v12, %v1803_v12  ;;  %vm1425_vm1 = vcmp.lt.s32.totalorder %v4260_v30, 2000  ;;  %v1214_v13 = vadd.s32 608, %v4119_v17 }
 0x177   : > { %v1957_v39 = vadd.f32 %v1956_v35, %v1955_v59  ;;  %v2347_v34 = vadd.f32 %v2346_v7, %v2345_v9  ;;  %v1806_v37 = vsel %vm1422_vm12, %v4551_v5, 0.0  ;;  %v4561_v57 = vadd.s32 %v4123_v19, %v1181_v3  ;;  %v4565_v12 = vpop.f32.mrf.mxu0 }
 0x178   : > { %v2350_v54 = vsel %vm283_vm3, %v2198_v1, 0.0  ;;  %v2348_v51 = vsel %vm283_vm3, %v2197_v56, 0.0  ;;  %v2200_v60 = vmul.f32 %v1806_v37, %v1806_v37  ;;  %vm1428_vm2 = vcmp.lt.s32.totalorder %v4297_v14, 2000  ;;  %2577 = vxpose.xlu0.b32.cont [14/16] (narrow) %v4380_v42, 16 }
 0x179   : > { %v1182_v33 = vadd.s32 352, %v4119_v17  ;;  %v2349_v59 = vadd.f32 %v2348_v51, %v2347_v34  ;;  %v1805_v18 = vsel %vm1421_vm13, %v4565_v12, 0.0  ;;  %v1959_v7 = vadd.f32 %v1958_v58, %v1957_v39  ;;  %2601 = vxpose.xlu1.b32.cont [6/16] (narrow) %v4476_v38, 16  ;;  %v4579_v56 = vpop.f32.mrf.mxu0  ;;  %v4582_v34 = vpop.f32.mrf.mxu1 }
 0x17a   : > { %v4575_v3 = vadd.s32 %v4123_v19, %v1215_v53  ;;  %v1962_v1 = vsel %vm283_vm3, %v1806_v37, 0.0  ;;  %v1960_v9 = vsel %vm283_vm3, %v1805_v18, 0.0  ;;  %v2199_v35 = vmul.f32 %v1805_v18, %v1805_v18 }
 0x17b   : > { %vm1427_vm4 = vcmp.lt.s32.totalorder %v4287_v0, 2000  ;;  %v4585_v20 = vadd.s32 %v4123_v19, %v1214_v13  ;;  %v1961_v42 = vadd.f32 %v1960_v9, %v1959_v7  ;;  %v2351_v58 = vadd.f32 %v2350_v54, %v2349_v59  ;;  %v4593_v18 = vpop.f32.mrf.mxu0 }
 0x17c   : > { %5906 = vst [vmem:[#allocation22_spill] sm:$0xff] %v4575_v3  ;;  %v1808_v38 = vsel %vm1424_vm14, %v4579_v56, 0.0  ;;  %v1183_v53 = vadd.s32 360, %v4119_v17  ;;  %v2354_v39 = vsel %vm283_vm3, %v2200_v60, 0.0  ;;  %v2352_v37 = vsel %vm283_vm3, %v2199_v35, 0.0  ;;  %2578 = vxpose.xlu0.b32.cont [15/16] (narrow) %v4418_v47, 16 }
 0x17d   : > { %5907 = vst [vmem:[#allocation23_spill] sm:$0xff] %v4585_v20  ;;  %v2202_v51 = vmul.f32 %v1808_v38, %v1808_v38  ;;  %vm1430_vm5 = vcmp.lt.s32.totalorder %v4349_v23, 2000  ;;  %v4597_v13 = vadd.s32 %v4123_v19, %v1182_v33  ;;  %v2353_v7 = vadd.f32 %v2352_v37, %v2351_v58  ;;  %2602 = vxpose.xlu1.b32.cont [7/16] (narrow) %v4511_v31, 16  ;;  %v4607_v20 = vpop.f32.mrf.mxu0  ;;  %v4610_v33 = vpop.f32.mrf.mxu1 }
 0x17e   : > { %v1807_v29 = vsel %vm1423_vm15, %v4593_v18, 0.0  ;;  %v1963_v54 = vadd.f32 %v1962_v1, %v1961_v42  ;;  %v1217_v60 = vadd.s32 632, %v4119_v17  ;;  %v1966_v59 = vsel %vm283_vm3, %v1808_v38, 0.0 }
 0x17f   : > { %v1964_v9 = vsel %vm283_vm3, %v1807_v29, 0.0  ;;  %v2201_v35 = vmul.f32 %v1807_v29, %v1807_v29  ;;  %vm1429_vm6 = vcmp.lt.s32.totalorder %v4336_v26, 2000  ;;  %v1216_v27 = vadd.s32 624, %v4119_v17  ;;  %v4621_v29 = vpop.f32.mrf.mxu0 }
 0x180   : > { %v1965_v1 = vadd.f32 %v1964_v9, %v1963_v54  ;;  %v2355_v42 = vadd.f32 %v2354_v39, %v2353_v7  ;;  %v1810_v47 = vsel %vm1426_vm0, %v4607_v20, 0.0  ;;  %v4617_v31 = vadd.s32 %v4123_v19, %v1183_v53  ;;  %2579 = vxpose.xlu0.b32.end [16/16] (narrow) %v4407_v10, 16 }
 0x181   : > { %v2358_v58 = vsel %vm283_vm3, %v2202_v51, 0.0  ;;  %v2356_v38 = vsel %vm283_vm3, %v2201_v35, 0.0  ;;  %v2204_v37 = vmul.f32 %v1810_v47, %v1810_v47  ;;  %vm1432_vm7 = vcmp.lt.s32.totalorder %v4403_v6, 2000  ;;  %2603 = vxpose.xlu1.b32.cont [8/16] (narrow) %v4497_v46, 16  ;;  %v4635_v35 = vpop.f32.mrf.mxu0 }
 0x182   : > { %v1184_v3 = vadd.s32 368, %v4119_v17  ;;  %v2357_v54 = vadd.f32 %v2356_v38, %v2355_v42  ;;  %v1809_v40 = vsel %vm1425_vm1, %v4621_v29, 0.0  ;;  %v1967_v39 = vadd.f32 %v1966_v59, %v1965_v1  ;;  %5909 = vst [vmem:[#allocation25_spill] sm:$0xff] %v4635_v35  ;;  %v4638_v42 = vpop.f32.mrf.mxu1 }
 0x183   : > { %v4631_v53 = vadd.s32 %v4123_v19, %v1217_v60  ;;  %v1970_v51 = vsel %vm283_vm3, %v1810_v47, 0.0  ;;  %v1968_v7 = vsel %vm283_vm3, %v1809_v40, 0.0  ;;  %v2203_v9 = vmul.f32 %v1809_v40, %v1809_v40  ;;  %v4649_v40 = vpop.f32.mrf.mxu0 }
 0x184   : > { %vm1431_vm8 = vcmp.lt.s32.totalorder %v4389_v32, 2000  ;;  %v4641_v30 = vadd.s32 %v4123_v19, %v1216_v27  ;;  %v1969_v10 = vadd.f32 %v1968_v7, %v1967_v39  ;;  %v2359_v59 = vadd.f32 %v2358_v58, %v2357_v54  ;;  %2692 = vxpose.xlu0.b32.start [1/16] (narrow) %v4330_v2, 16 }
 0x185   : > { %5908 = vst [vmem:[#allocation24_spill] sm:$0xff] %v4631_v53  ;;  %v1812_v46 = vsel %vm1428_vm2, %v4635_v35, 0.0  ;;  %v1185_v60 = vadd.s32 376, %v4119_v17  ;;  %v2362_v1 = vsel %vm283_vm3, %v2204_v37, 0.0  ;;  %v2360_v47 = vsel %vm283_vm3, %v2203_v9, 0.0  ;;  %2604 = vxpose.xlu1.b32.cont [9/16] (narrow) %v4538_v8, 16  ;;  %v4663_v35 = vpop.f32.mrf.mxu0 }
 0x186   : > { %5910 = vst [vmem:[#allocation26_spill] sm:$0xff] %v4641_v30  ;;  %v2206_v38 = vmul.f32 %v1812_v46, %v1812_v46  ;;  %vm1434_vm9 = vcmp.lt.s32.totalorder %v4451_v41, 2000  ;;  %v4653_v27 = vadd.s32 %v4123_v19, %v1184_v3  ;;  %v2361_v39 = vadd.f32 %v2360_v47, %v2359_v59  ;;  %5911 = vst [vmem:[#allocation27_spill] sm:$0xff] %v4663_v35  ;;  %v4666_v3 = vpop.f32.mrf.mxu1 }
 0x187   : > { %v1811_v14 = vsel %vm1427_vm4, %v4649_v40, 0.0  ;;  %v1971_v58 = vadd.f32 %v1970_v51, %v1969_v10  ;;  %v1219_v37 = vadd.s32 648, %v4119_v17  ;;  %v1974_v54 = vsel %vm283_vm3, %v1812_v46, 0.0  ;;  %v4677_v30 = vpop.f32.mrf.mxu0 }
 0x188   : > { %v1972_v7 = vsel %vm283_vm3, %v1811_v14, 0.0  ;;  %v2205_v9 = vmul.f32 %v1811_v14, %v1811_v14  ;;  %vm1433_vm10 = vcmp.lt.s32.totalorder %v4444_v55, 2000  ;;  %v1218_v0 = vadd.s32 640, %v4119_v17  ;;  %5912 = vst [vmem:[#allocation28_spill] sm:$0xff] %v4677_v30  ;;  %2693 = vxpose.xlu0.b32.cont [2/16] (narrow) %v4304_v25, 16 }
 0x189   : > { %v1973_v51 = vadd.f32 %v1972_v7, %v1971_v58  ;;  %v2363_v10 = vadd.f32 %v2362_v1, %v2361_v39  ;;  %v1814_v8 = vsel %vm1430_vm5, %v4663_v35, 0.0  ;;  %v4673_v59 = vadd.s32 %v4123_v19, %v1185_v60  ;;  %2605 = vxpose.xlu1.b32.cont [10/16] (narrow) %v4524_v50, 16 }
 0x18a   : > { %v2366_v46 = vsel %vm283_vm3, %v2206_v38, 0.0  ;;  %v2364_v47 = vsel %vm283_vm3, %v2205_v9, 0.0  ;;  %v2208_v14 = vmul.f32 %v1814_v8, %v1814_v8  ;;  %vm1436_vm11 = vcmp.lt.s32.totalorder %v4507_v11, 2000  ;;  %v4691_v9 = vpop.f32.mrf.mxu0 }
 0x18b   : > { %v1186_v53 = vadd.s32 384, %v4119_v17  ;;  %v2365_v58 = vadd.f32 %v2364_v47, %v2363_v10  ;;  %v1813_v23 = vsel %vm1429_vm6, %v4677_v30, 0.0  ;;  %v1975_v1 = vadd.f32 %v1974_v54, %v1973_v51  ;;  %5913 = vst [vmem:[#allocation29_spill] sm:$0xff] %v4691_v9  ;;  %v4694_v10 = vpop.f32.mrf.mxu1 }
 0x18c   : > { %v4687_v60 = vadd.s32 %v4123_v19, %v1219_v37  ;;  %v1978_v38 = vsel %vm283_vm3, %v1814_v8, 0.0  ;;  %v1976_v39 = vsel %vm283_vm3, %v1813_v23, 0.0  ;;  %v2207_v7 = vmul.f32 %v1813_v23, %v1813_v23  ;;  %v4705_v35 = vpop.f32.mrf.mxu0  ;;  %2694 = vxpose.xlu0.b32.cont [3/16] (narrow) %v4383_v16, 16 }
 0x18d   : > { %vm1435_vm12 = vcmp.lt.s32.totalorder %v4489_v36, 2000  ;;  %v1187_v26 = vadd.s32 392, %v4119_v17  ;;  %v1977_v54 = vadd.f32 %v1976_v39, %v1975_v1  ;;  %v2367_v51 = vadd.f32 %v2366_v46, %v2365_v58  ;;  %5914 = vst [vmem:[#allocation30_spill] sm:$0xff] %v4705_v35  ;;  %2606 = vxpose.xlu1.b32.cont [11/16] (narrow) %v4565_v12, 16 }
 0x18e   : > { %v1816_v50 = vsel %vm1432_vm7, %v4691_v9, 0.0  ;;  %v4701_v37 = vadd.s32 %v4123_v19, %v1218_v0  ;;  %v2370_v8 = vsel %vm283_vm3, %v2208_v14, 0.0  ;;  %v2368_v47 = vsel %vm283_vm3, %v2207_v7, 0.0  ;;  %v4719_v7 = vpop.f32.mrf.mxu0 }
 0x18f   : > { %v2210_v23 = vmul.f32 %v1816_v50, %v1816_v50  ;;  %vm1438_vm13 = vcmp.lt.s32.totalorder %v4561_v57, 2000  ;;  %v4709_v30 = vadd.s32 %v4123_v19, %v1186_v53  ;;  %v2369_v46 = vadd.f32 %v2368_v47, %v2367_v51  ;;  %5915 = vst [vmem:[#allocation31_spill] sm:$0xff] %v4719_v7  ;;  %v4722_v53 = vpop.f32.mrf.mxu1 }
 0x190   : > { %v1815_v6 = vsel %vm1431_vm8, %v4705_v35, 0.0  ;;  %v1979_v58 = vadd.f32 %v1978_v38, %v1977_v54  ;;  %v1188_v0 = vadd.s32 400, %v4119_v17  ;;  %v1982_v14 = vsel %vm283_vm3, %v1816_v50, 0.0  ;;  %v4733_v9 = vpop.f32.mrf.mxu0  ;;  %2695 = vxpose.xlu0.b32.cont [4/16] (narrow) %v4356_v49, 16 }
 0x191   : > { %v1980_v1 = vsel %vm283_vm3, %v1815_v6, 0.0  ;;  %v2209_v39 = vmul.f32 %v1815_v6, %v1815_v6  ;;  %vm1437_vm14 = vcmp.lt.s32.totalorder %v4542_v4, 2000  ;;  %v4725_v32 = vadd.s32 %v4123_v19, %v1187_v26  ;;  %5916 = vst [vmem:[#allocation32_spill] sm:$0xff] %v4733_v9  ;;  %2607 = vxpose.xlu1.b32.cont [12/16] (narrow) %v4551_v5, 16 }
 0x192   : > { %v1981_v38 = vadd.f32 %v1980_v1, %v1979_v58  ;;  %v2371_v54 = vadd.f32 %v2370_v8, %v2369_v46  ;;  %v1818_v12 = vsel %vm1434_vm9, %v4719_v7, 0.0  ;;  %v1189_v51 = vadd.s32 408, %v4119_v17 }
 0x193   : > { %v2374_v50 = vsel %vm283_vm3, %v2210_v23, 0.0  ;;  %v2372_v47 = vsel %vm283_vm3, %v2209_v39, 0.0  ;;  %v2212_v6 = vmul.f32 %v1818_v12, %v1818_v12  ;;  %vm1440_vm15 = vcmp.lt.s32.totalorder %v4617_v31, 2000  ;;  %v4747_v39 = vpop.f32.mrf.mxu0 }
 0x194   : > { %v1221_v26 = vadd.s32 664, %v4119_v17  ;;  %v2373_v35 = vadd.f32 %v2372_v47, %v2371_v54  ;;  %v1817_v8 = vsel %vm1433_vm10, %v4733_v9, 0.0  ;;  %v1983_v41 = vadd.f32 %v1982_v14, %v1981_v38  ;;  %5917 = vst [vmem:[#allocation33_spill] sm:$0xff] %v4747_v39  ;;  %v4750_v54 = vpop.f32.mrf.mxu1  ;;  %2696 = vxpose.xlu0.b32.cont [5/16] (narrow) %v4435_v43, 16 }
 0x195   : > { %v4743_v23 = vadd.s32 %v4123_v19, %v1188_v0  ;;  %v1986_v46 = vsel %vm283_vm3, %v1818_v12, 0.0  ;;  %v1984_v58 = vsel %vm283_vm3, %v1817_v8, 0.0  ;;  %v2211_v1 = vmul.f32 %v1817_v8, %v1817_v8  ;;  %5918 = vst [vmem:[#allocation34_spill] sm:$0xff] %v4750_v54  ;;  %v4761_v7 = vpop.f32.mrf.mxu0  ;;  %2608 = vxpose.xlu1.b32.cont [13/16] (narrow) %v4593_v18, 16 }
 0x196   : > { %vm1439_vm0 = vcmp.lt.s32.totalorder %v4597_v13, 2000  ;;  %v1220_v55 = vadd.s32 656, %v4119_v17  ;;  %v1985_v14 = vadd.f32 %v1984_v58, %v1983_v41  ;;  %v2375_v38 = vadd.f32 %v2374_v50, %v2373_v35  ;;  %5919 = vst [vmem:[#allocation35_spill] sm:$0xff] %v4761_v7  ;;  %v4764_v9 = vpop.f32.mrf.mxu1 }
 0x197   : > { %v1820_v5 = vsel %vm1436_vm11, %v4747_v39, 0.0  ;;  %v4757_v0 = vadd.s32 %v4123_v19, %v1189_v51  ;;  %v2378_v12 = vsel %vm283_vm3, %v2212_v6, 0.0  ;;  %v2376_v47 = vsel %vm283_vm3, %v2211_v1, 0.0  ;;  %5920 = vst [vmem:[#allocation36_spill] sm:$0xff] %v4764_v9  ;;  %v4777_v39 = vpop.f32.mrf.mxu0 }
 0x198   : > { %v2214_v8 = vmul.f32 %v1820_v5, %v1820_v5  ;;  %vm1442_vm1 = vcmp.lt.s32.totalorder %v4673_v59, 2000  ;;  %v4767_v35 = vadd.s32 %v4123_v19, %v1221_v26  ;;  %v2377_v50 = vadd.f32 %v2376_v47, %v2375_v38  ;;  %5922 = vst [vmem:[#allocation38_spill] sm:$0xff] %v4777_v39  ;;  %2697 = vxpose.xlu0.b32.cont [6/16] (narrow) %v4410_v21, 16 }
 0x199   : > { %v1819_v11 = vsel %vm1435_vm12, %v4761_v7, 0.0  ;;  %v1987_v51 = vadd.f32 %v1986_v46, %v1985_v14  ;;  %v1190_v6 = vadd.s32 416, %v4119_v17  ;;  %v1990_v41 = vsel %vm283_vm3, %v1820_v5, 0.0  ;;  %v4792_v7 = vpop.f32.mrf.mxu1  ;;  %2609 = vxpose.xlu1.b32.cont [14/16] (narrow) %v4579_v56, 16 }
 0x19a   : > { %5921 = vst [vmem:[#allocation37_spill] sm:$0xff] %v4767_v35  ;;  %v1988_v58 = vsel %vm283_vm3, %v1819_v11, 0.0  ;;  %v2213_v1 = vmul.f32 %v1819_v11, %v1819_v11  ;;  %vm1441_vm2 = vcmp.lt.s32.totalorder %v4653_v27, 2000  ;;  %v1191_v26 = vadd.s32 424, %v4119_v17  ;;  %v4789_v11 = vpop.f32.mrf.mxu0  ;;  %5925 = vst [vmem:[#allocation41_spill] sm:$0xff] %v4792_v7 }
 0x19b   : > { %v1989_v36 = vadd.f32 %v1988_v58, %v1987_v51  ;;  %v2379_v38 = vadd.f32 %v2378_v12, %v2377_v50  ;;  %v1822_v46 = vsel %vm1438_vm13, %v4777_v39, 0.0  ;;  %v4785_v18 = vadd.s32 %v4123_v19, %v1220_v55  ;;  %5924 = vst [vmem:[#allocation40_spill] sm:$0xff] %v4789_v11 }
 0x19c   : > { %v2382_v14 = vsel %vm283_vm3, %v2214_v8, 0.0  ;;  %v2380_v5 = vsel %vm283_vm3, %v2213_v1, 0.0  ;;  %v2216_v47 = vmul.f32 %v1822_v46, %v1822_v46  ;;  %vm1444_vm4 = vcmp.lt.s32.totalorder %v4725_v32, 2000  ;;  %v4805_v39 = vpop.f32.mrf.mxu0  ;;  %2698 = vxpose.xlu0.b32.cont [7/16] (narrow) %v4479_v63, 16 }
 0x19d   : > { %5923 = vst [vmem:[#allocation39_spill] sm:$0xff] %v4785_v18  ;;  %v1192_v12 = vadd.s32 432, %v4119_v17  ;;  %v2381_v50 = vadd.f32 %v2380_v5, %v2379_v38  ;;  %v1821_v57 = vsel %vm1437_vm14, %v4789_v11, 0.0  ;;  %v1991_v55 = vadd.f32 %v1990_v41, %v1989_v36  ;;  %5926 = vst [vmem:[#allocation42_spill] sm:$0xff] %v4805_v39  ;;  %v4811_v41 = vpop.f32.mrf.mxu1  ;;  %2610 = vxpose.xlu1.b32.cont [15/16] (narrow) %v4621_v29, 16 }
 0x19e   : > { %v4801_v8 = vadd.s32 %v4123_v19, %v1190_v6  ;;  %v1994_v51 = vsel %vm283_vm3, %v1822_v46, 0.0  ;;  %v1992_v58 = vsel %vm283_vm3, %v1821_v57, 0.0  ;;  %v2215_v1 = vmul.f32 %v1821_v57, %v1821_v57  ;;  %v4819_v11 = vpop.f32.mrf.mxu0 }
 0x19f   : > { %vm1443_vm5 = vcmp.lt.s32.totalorder %v4709_v30, 2000  ;;  %v4809_v4 = vadd.s32 %v4123_v19, %v1191_v26  ;;  %v1993_v36 = vadd.f32 %v1992_v58, %v1991_v55  ;;  %v2383_v38 = vadd.f32 %v2382_v14, %v2381_v50  ;;  %5927 = vst [vmem:[#allocation43_spill] sm:$0xff] %v4819_v11 }
 0x1a0   : > { %v1824_v56 = vsel %vm1440_vm15, %v4805_v39, 0.0  ;;  %v1193_v6 = vadd.s32 440, %v4119_v17  ;;  %v2386_v46 = vsel %vm283_vm3, %v2216_v47, 0.0  ;;  %v2384_v5 = vsel %vm283_vm3, %v2215_v1, 0.0  ;;  %v4833_v39 = vpop.f32.mrf.mxu0  ;;  %2699 = vxpose.xlu0.b32.cont [8/16] (narrow) %v4456_v22, 16 }
 0x1a1   : > { %v2218_v57 = vmul.f32 %v1824_v56, %v1824_v56  ;;  %vm1446_vm6 = vcmp.lt.s32.totalorder %v4757_v0, 2000  ;;  %v4823_v26 = vadd.s32 %v4123_v19, %v1192_v12  ;;  %v2385_v55 = vadd.f32 %v2384_v5, %v2383_v38  ;;  %5928 = vst [vmem:[#allocation44_spill] sm:$0xff] %v4833_v39  ;;  %v4836_v12 = vpop.f32.mrf.mxu1  ;;  %2611 = vxpose.xlu1.b32.end [16/16] (narrow) %v4607_v20, 16 }
 0x1a2   : > { %v1823_v31 = vsel %vm1439_vm0, %v4819_v11, 0.0  ;;  %v1995_v14 = vadd.f32 %v1994_v51, %v1993_v36  ;;  %v1223_v47 = vadd.s32 680, %v4119_v17  ;;  %v1998_v50 = vsel %vm283_vm3, %v1824_v56, 0.0  ;;  %5929 = vst [vmem:[#allocation45_spill] sm:$0xff] %v4836_v12  ;;  %v4847_v11 = vpop.f32.mrf.mxu0 }
 0x1a3   : > { %v1996_v58 = vsel %vm283_vm3, %v1823_v31, 0.0  ;;  %v2217_v1 = vmul.f32 %v1823_v31, %v1823_v31  ;;  %vm1445_vm7 = vcmp.lt.s32.totalorder %v4743_v23, 2000  ;;  %v1222_v13 = vadd.s32 672, %v4119_v17  ;;  %5930 = vst [vmem:[#allocation46_spill] sm:$0xff] %v4847_v11 }
 0x1a4   : > { %v1997_v51 = vadd.f32 %v1996_v58, %v1995_v14  ;;  %v2387_v36 = vadd.f32 %v2386_v46, %v2385_v55  ;;  %v1826_v29 = vsel %vm1442_vm1, %v4833_v39, 0.0  ;;  %v4843_v38 = vadd.s32 %v4123_v19, %v1193_v6  ;;  %v4851_v14 = vpop.f32.mrf.mxu1  ;;  %v4861_v39 = vpop.f32.mrf.mxu0  ;;  %2700 = vxpose.xlu0.b32.cont [9/16] (narrow) %v4527_v24, 16 }
 0x1a5   : > { %v2390_v56 = vsel %vm283_vm3, %v2218_v57, 0.0  ;;  %v2388_v5 = vsel %vm283_vm3, %v2217_v1, 0.0  ;;  %v2220_v31 = vmul.f32 %v1826_v29, %v1826_v29  ;;  %vm1448_vm8 = vcmp.lt.s32.totalorder %v4809_v4, 2000  ;;  %5931 = vst [vmem:[#allocation47_spill] sm:$0xff] %v4861_v39  ;;  %2724 = vxpose.xlu1.b32.start [1/16] (narrow) %v4750_v54, 16 }
 0x1a6   : > { %v1195_v18 = vadd.s32 456, %v4119_v17  ;;  %v2389_v46 = vadd.f32 %v2388_v5, %v2387_v36  ;;  %v1825_v59 = vsel %vm1441_vm2, %v4847_v11, 0.0  ;;  %v1999_v6 = vadd.f32 %v1998_v50, %v1997_v51  ;;  %v4875_v11 = vpop.f32.mrf.mxu0 }
 0x1a7   : > { %v1194_v57 = vadd.s32 448, %v4119_v17  ;;  %v2002_v55 = vsel %vm283_vm3, %v1826_v29, 0.0  ;;  %v2000_v58 = vsel %vm283_vm3, %v1825_v59, 0.0  ;;  %v2219_v1 = vmul.f32 %v1825_v59, %v1825_v59  ;;  %5932 = vst [vmem:[#allocation48_spill] sm:$0xff] %v4875_v11 }
 0x1a8   : > { %vm1447_vm9 = vcmp.lt.s32.totalorder %v4801_v8, 2000  ;;  %v4865_v36 = vadd.s32 %v4123_v19, %v1223_v47  ;;  %v2001_v27 = vadd.f32 %v2000_v58, %v1999_v6  ;;  %v2391_v50 = vadd.f32 %v2390_v56, %v2389_v46  ;;  %v4880_v47 = vpop.f32.mrf.mxu1  ;;  %v4892_v58 = vpop.f32.mrf.mxu0  ;;  %2701 = vxpose.xlu0.b32.cont [10/16] (narrow) %v4500_v52, 16 }
 0x1a9   : > { %v1828_v20 = vsel %vm1444_vm4, %v4861_v39, 0.0  ;;  %v4871_v51 = vadd.s32 %v4123_v19, %v1222_v13  ;;  %v2394_v29 = vsel %vm283_vm3, %v2220_v31, 0.0  ;;  %v2392_v5 = vsel %vm283_vm3, %v2219_v1, 0.0  ;;  %5933 = vst [vmem:[#allocation49_spill] sm:$0xff] %v4892_v58  ;;  %2725 = vxpose.xlu1.b32.cont [2/16] (narrow) %v4722_v53, 16 }
 0x1aa   : > { %v2222_v59 = vmul.f32 %v1828_v20, %v1828_v20  ;;  %v4878_v35 = vadd.s32 %v4123_v19, %v1195_v18  ;;  %v2393_v56 = vadd.f32 %v2392_v5, %v2391_v50  ;;  %v1827_v32 = vsel %vm1443_vm5, %v4875_v11, 0.0  ;;  %v4896_v1 = vpop.f32.mrf.mxu1 }
 0x1ab   : > { %v2003_v46 = vadd.f32 %v2002_v55, %v2001_v27  ;;  %v4888_v13 = vadd.s32 %v4123_v19, %v1194_v57  ;;  %v2006_v31 = vsel %vm283_vm3, %v1828_v20, 0.0  ;;  %v2004_v18 = vsel %vm283_vm3, %v1827_v32, 0.0 }
 0x1ac   : > { %v2221_v6 = vmul.f32 %v1827_v32, %v1827_v32  ;;  %vm1449_vm10 = vcmp.lt.s32.totalorder %v4823_v26, 2000  ;;  %v1196_v30 = vadd.s32 464, %v4119_v17  ;;  %v2395_v27 = vadd.f32 %v2394_v29, %v2393_v56  ;;  %v4904_v32 = vpop.f32.mrf.mxu0  ;;  %v4921_v23 = vpop.f32.mrf.mxu1  ;;  %2702 = vxpose.xlu0.b32.cont [11/16] (narrow) %v4582_v34, 16 }
 0x1ad   : > { %v2005_v55 = vadd.f32 %v2004_v18, %v2003_v46  ;;  %v1830_v57 = vsel %vm1446_vm6, %v4892_v58, 0.0  ;;  %vm1450_vm11 = vcmp.lt.s32.totalorder %v4843_v38, 2000  ;;  %v2398_v50 = vsel %vm283_vm3, %v2222_v59, 0.0  ;;  %5934 = vst [vmem:[#allocation50_spill] sm:$0xff] %v4904_v32  ;;  %2726 = vxpose.xlu1.b32.cont [3/16] (narrow) %v4792_v7, 16 }
 0x1ae   : > { %v2396_v20 = vsel %vm283_vm3, %v2221_v6, 0.0  ;;  %v2224_v5 = vmul.f32 %v1830_v57, %v1830_v57  ;;  %vm1452_vm12 = vcmp.lt.s32.totalorder %v4878_v35, 2000  ;;  %v1829_v29 = vsel %vm1445_vm7, %v4904_v32, 0.0  ;;  %v4915_v6 = vpop.f32.mrf.mxu0  ;;  %v4934_v54 = vpop.f32.mrf.mxu1 }
 0x1af   : > { %v2397_v39 = vadd.f32 %v2396_v20, %v2395_v27  ;;  %v2007_v56 = vadd.f32 %v2006_v31, %v2005_v55  ;;  %v1197_v0 = vadd.s32 472, %v4119_v17  ;;  %v2010_v59 = vsel %vm283_vm3, %v1830_v57, 0.0  ;;  %5935 = vst [vmem:[#allocation51_spill] sm:$0xff] %v4915_v6 }
 0x1b0   : > { %v2008_v46 = vsel %vm283_vm3, %v1829_v29, 0.0  ;;  %v2223_v18 = vmul.f32 %v1829_v29, %v1829_v29  ;;  %vm1451_vm13 = vcmp.lt.s32.totalorder %v4888_v13, 2000  ;;  %v4919_v27 = vadd.s32 %v4123_v19, %v1196_v30  ;;  %v4929_v11 = vpop.f32.mrf.mxu0  ;;  %v4958_v7 = vpop.f32.mrf.mxu1  ;;  %2703 = vxpose.xlu0.b32.cont [12/16] (narrow) %v4554_v62, 16 }
 0x1b1   : > { %v2009_v31 = vadd.f32 %v2008_v46, %v2007_v56  ;;  %v2399_v55 = vadd.f32 %v2398_v50, %v2397_v39  ;;  %v1832_v20 = vsel %vm1448_vm8, %v4915_v6, 0.0  ;;  %v1225_v57 = vadd.s32 696, %v4119_v17  ;;  %5936 = vst [vmem:[#allocation52_spill] sm:$0xff] %v4929_v11  ;;  %2727 = vxpose.xlu1.b32.cont [4/16] (narrow) %v4764_v9, 16 }
 0x1b2   : > { %v2402_v58 = vsel %vm283_vm3, %v2224_v5, 0.0  ;;  %v2400_v29 = vsel %vm283_vm3, %v2223_v18, 0.0  ;;  %v2226_v32 = vmul.f32 %v1832_v20, %v1832_v20  ;;  %v4932_v30 = vadd.s32 688, %v4119_v17  ;;  %v4944_v6 = vpop.f32.mrf.mxu0 }
 0x1b3   : > { %v2401_v56 = vadd.f32 %v2400_v29, %v2399_v55  ;;  %v1831_v39 = vsel %vm1447_vm9, %v4929_v11, 0.0  ;;  %v2011_v4 = vadd.f32 %v2010_v59, %v2009_v31  ;;  %v1326_v50 = vadd.s32 %v4123_v19, %v1197_v0  ;;  %5937 = vst [vmem:[#allocation53_spill] sm:$0xff] %v4944_v6 }
 0x1b4   : > { %v2014_v5 = vsel %vm283_vm3, %v1832_v20, 0.0  ;;  %v2012_v46 = vsel %vm283_vm3, %v1831_v39, 0.0  ;;  %v2225_v18 = vmul.f32 %v1831_v39, %v1831_v39  ;;  %vm1453_vm14 = vcmp.lt.s32.totalorder %v4919_v27, 2000  ;;  %v4953_v11 = vpop.f32.mrf.mxu0  ;;  %2704 = vxpose.xlu0.b32.cont [13/16] (narrow) %v4638_v42, 16 }
 0x1b5   : > { %v2013_v55 = vadd.f32 %v2012_v46, %v2011_v4  ;;  %v2403_v29 = vadd.f32 %v2402_v58, %v2401_v56  ;;  %v1834_v8 = vsel %vm1450_vm11, %v4944_v6, 0.0  ;;  %v1199_v59 = vadd.s32 488, %v4119_v17  ;;  %5938 = vst [vmem:[#allocation54_spill] sm:$0xff] %v4953_v11  ;;  %2728 = vxpose.xlu1.b32.cont [5/16] (narrow) %v4836_v12, 16 }
 0x1b6   : > { %v2406_v31 = vsel %vm283_vm3, %v2226_v32, 0.0  ;;  %v2404_v0 = vsel %vm283_vm3, %v2225_v18, 0.0  ;;  %v2228_v20 = vmul.f32 %v1834_v8, %v1834_v8  ;;  %v4956_v39 = vadd.s32 %v4123_v19, %v1225_v57  ;;  %v4968_v18 = vpop.f32.mrf.mxu0 }
 0x1b7   : > { %v2405_v4 = vadd.f32 %v2404_v0, %v2403_v29  ;;  %v1833_v38 = vsel %vm1449_vm10, %v4953_v11, 0.0  ;;  %v2015_v58 = vadd.f32 %v2014_v5, %v2013_v55  ;;  %v1198_v32 = vadd.s32 480, %v4119_v17  ;;  %5939 = vst [vmem:[#allocation55_spill] sm:$0xff] %v4968_v18  ;;  %v4970_v29 = vpop.f32.mrf.mxu1 }
 0x1b8   : > { %v2018_v56 = vsel %vm283_vm3, %v1834_v8, 0.0  ;;  %v2016_v46 = vsel %vm283_vm3, %v1833_v38, 0.0  ;;  %v2227_v57 = vmul.f32 %v1833_v38, %v1833_v38  ;;  %vm1454_vm15 = vcmp.lt.s32.totalorder %v1326_v50, 2000  ;;  %5940 = vst [vmem:[#allocation56_spill] sm:$0xff] %v4970_v29  ;;  %v4978_v9 = vpop.f32.mrf.mxu0  ;;  %2705 = vxpose.xlu0.b32.cont [14/16] (narrow) %v4610_v33, 16 }
 0x1b9   : > { %v2017_v0 = vadd.f32 %v2016_v46, %v2015_v58  ;;  %v2407_v26 = vadd.f32 %v2406_v31, %v2405_v4  ;;  %v1836_v5 = vsel %vm1452_vm12, %v4968_v18, 0.0  ;;  %v1328_v55 = vadd.s32 %v4123_v19, %v1199_v59  ;;  %5941 = vst [vmem:[#allocation57_spill] sm:$0xff] %v4978_v9  ;;  %v4994_v13 = vpop.f32.mrf.mxu1  ;;  %2729 = vxpose.xlu1.b32.cont [6/16] (narrow) %v4811_v41, 16 }
 0x1ba   : > { %v2410_v6 = vsel %vm283_vm3, %v2228_v20, 0.0  ;;  %v2408_v8 = vsel %vm283_vm3, %v2227_v57, 0.0  ;;  %v2230_v11 = vmul.f32 %v1836_v5, %v1836_v5  ;;  %v1201_v38 = vadd.s32 504, %v4119_v17  ;;  %v4991_v46 = vpop.f32.mrf.mxu0 }
 0x1bb   : > { %vm1460_vm0 = vcmp.lt.s32.totalorder %v4270_v28, 2000  ;;  %v2409_v29 = vadd.f32 %v2408_v8, %v2407_v26  ;;  %v1835_v31 = vsel %vm1451_vm13, %v4978_v9, 0.0  ;;  %v2019_v35 = vadd.f32 %v2018_v56, %v2017_v0  ;;  %5942 = vst [vmem:[#allocation58_spill] sm:$0xff] %v4991_v46  ;;  %v5005_v9 = vpop.f32.mrf.mxu1 }
 0x1bc   : > { %v1327_v59 = vadd.s32 %v4123_v19, %v1198_v32  ;;  %vm1459_vm1 = vcmp.lt.s32.totalorder %v4276_v48, 2000  ;;  %v2022_v20 = vsel %vm283_vm3, %v1836_v5, 0.0  ;;  %v2020_v4 = vsel %vm283_vm3, %v1835_v31, 0.0  ;;  %5944 = vst [vmem:[#allocation60_spill] sm:$0xff] %v5005_v9  ;;  %2706 = vxpose.xlu0.b32.cont [15/16] (narrow) %v4694_v10, 16 }
 0x1bd   : > { %v2229_v58 = vmul.f32 %v1835_v31, %v1835_v31  ;;  %v1200_v57 = vadd.s32 496, %v4119_v17  ;;  %vm1462_vm2 = vcmp.lt.s32.totalorder %v4316_v44, 2000  ;;  %v2021_v56 = vadd.f32 %v2020_v4, %v2019_v35  ;;  %v5002_v31 = vpop.f32.mrf.mxu0  ;;  %2730 = vxpose.xlu1.b32.cont [7/16] (narrow) %v4880_v47, 16 }
 0x1be   : > { %v2411_v0 = vadd.f32 %v2410_v6, %v2409_v29  ;;  %v1838_v32 = vsel %vm1454_vm15, %v4991_v46, 0.0  ;;  %vm1456_vm4 = vcmp.lt.s32.totalorder %v1328_v55, 2000  ;;  %vm1461_vm5 = vcmp.lt.s32.totalorder %v4319_v45, 2000  ;;  %5943 = vst [vmem:[#allocation59_spill] sm:$0xff] %v5002_v31 }
 0x1bf   : > { %v2414_v26 = vsel %vm283_vm3, %v2230_v11, 0.0  ;;  %v2412_v5 = vsel %vm283_vm3, %v2229_v58, 0.0  ;;  %v2232_v8 = vmul.f32 %v1838_v32, %v1838_v32  ;;  %v1330_v18 = vadd.s32 %v4123_v19, %v1201_v38  ;;  %v5015_v35 = vpop.f32.mrf.mxu0 }
 0x1c0   : > { %v2413_v12 = vadd.f32 %v2412_v5, %v2411_v0  ;;  %v1837_v6 = vsel %vm1453_vm14, %v5002_v31, 0.0  ;;  %v2023_v50 = vadd.f32 %v2022_v20, %v2021_v56  ;;  %vm1455_vm6 = vcmp.lt.s32.totalorder %v1327_v59, 2000  ;;  %5945 = vst [vmem:[#allocation61_spill] sm:$0xff] %v5015_v35  ;;  %v5946_v0 = vld [vmem:[#allocation16_spill] sm:$0xff]  ;;  %v5947_v5 = vld [vmem:[#allocation17_spill] sm:$0xff]  ;;  %2707 = vxpose.xlu0.b32.end [16/16] (narrow) %v4666_v3, 16 }
 0x1c1   : > { %vm1464_vm7 = vcmp.lt.s32.totalorder %v4368_v61, 2000  ;;  %v2026_v11 = vsel %vm283_vm3, %v1838_v32, 0.0  ;;  %v2024_v29 = vsel %vm283_vm3, %v1837_v6, 0.0  ;;  %v2231_v38 = vmul.f32 %v1837_v6, %v1837_v6  ;;  %v5028_v31 = vpop.f32.mrf.mxu0  ;;  %2731 = vxpose.xlu1.b32.cont [8/16] (narrow) %v4851_v14, 16 }
 0x1c2   : > { %v1329_v4 = vadd.s32 %v4123_v19, %v1200_v57  ;;  %v2025_v58 = vadd.f32 %v2024_v29, %v2023_v50  ;;  %v2415_v27 = vadd.f32 %v2414_v26, %v2413_v12  ;;  %v1840_v20 = vsel %vm1456_vm4, %v5015_v35, 0.0  ;;  %5948 = vst [vmem:[#allocation16_spill] sm:$0xff] %v5028_v31  ;;  %v5030_v12 = vpop.f32.mrf.mxu1 }
 0x1c3   : > { %v5022_v56 = vadd.s32 %v4123_v19, %v4932_v30  ;;  %vm1463_vm8 = vcmp.lt.s32.totalorder %v5946_v0, 2000  ;;  %vm1466_vm9 = vcmp.lt.s32.totalorder %v5947_v5, 2000  ;;  %v2418_v32 = vsel %vm283_vm3, %v2232_v8, 0.0  ;;  %v5949_v8 = vld [vmem:[#allocation18_spill] sm:$0xff]  ;;  %v5040_v35 = vpop.f32.mrf.mxu0 }
 0x1c4   : > { %v2416_v6 = vsel %vm283_vm3, %v2231_v38, 0.0  ;;  %v2234_v46 = vmul.f32 %v1840_v20, %v1840_v20  ;;  %vm1458_vm10 = vcmp.lt.s32.totalorder %v1330_v18, 2000  ;;  %v1839_v57 = vsel %vm1455_vm6, %v5028_v31, 0.0  ;;  %5950 = vst [vmem:[#allocation17_spill] sm:$0xff] %v5040_v35  ;;  %v5952_v31 = vld [vmem:[#allocation19_spill] sm:$0xff]  ;;  %2628 = vxpose.xlu0.b32.start [1/16] (narrow) %v4649_v40, 16 }
 0x1c5   : > { %v2417_v55 = vadd.f32 %v2416_v6, %v2415_v27  ;;  %v2027_v30 = vadd.f32 %v2026_v11, %v2025_v58  ;;  %v1227_v26 = vadd.s32 712, %v4119_v17  ;;  %vm1465_vm11 = vcmp.lt.s32.totalorder %v5949_v8, 2000  ;;  %v5042_v27 = vpop.f32.mrf.mxu1  ;;  %v5054_v9 = vpop.f32.mrf.mxu0  ;;  %2732 = vxpose.xlu1.b32.cont [9/16] (narrow) %v4921_v23, 16 }
 0x1c6   : > { %v2030_v50 = vsel %vm283_vm3, %v1840_v20, 0.0  ;;  %v2028_v29 = vsel %vm283_vm3, %v1839_v57, 0.0  ;;  %v2233_v38 = vmul.f32 %v1839_v57, %v1839_v57  ;;  %vm1457_vm12 = vcmp.lt.s32.totalorder %v1329_v4, 2000  ;;  %5951 = vst [vmem:[#allocation18_spill] sm:$0xff] %v5042_v27  ;;  %5953 = vst [vmem:[#allocation19_spill] sm:$0xff] %v5054_v9 }
 0x1c7   : > { %vm1468_vm13 = vcmp.lt.s32.totalorder %v4461_v15, 2000  ;;  %v2029_v59 = vadd.f32 %v2028_v29, %v2027_v30  ;;  %v2419_v11 = vadd.f32 %v2418_v32, %v2417_v55  ;;  %v1842_v58 = vsel %vm1458_vm10, %v5040_v35, 0.0  ;;  %v5956_v35 = vld [vmem:[#allocation22_spill] sm:$0xff] }
 0x1c8   : > { %v1226_v6 = vadd.s32 704, %v4119_v17  ;;  %v1844_v20 = vsel %vm1460_vm0, %v4304_v25, 0.0  ;;  %vm1467_vm14 = vcmp.lt.s32.totalorder %v5952_v31, 2000  ;;  %v2422_v57 = vsel %vm283_vm3, %v2234_v46, 0.0  ;;  %v5954_v25 = vld [vmem:[#allocation20_spill] sm:$0xff] }
 0x1c9   : > { %v2420_v4 = vsel %vm283_vm3, %v2233_v38, 0.0  ;;  %v2236_v27 = vmul.f32 %v1842_v58, %v1842_v58  ;;  %v1843_v18 = vsel %vm1459_vm1, %v4330_v2, 0.0  ;;  %v1841_v55 = vsel %vm1457_vm12, %v5054_v9, 0.0  ;;  %v5068_v2 = vpop.f32.mrf.mxu1  ;;  %2733 = vxpose.xlu1.b32.cont [10/16] (narrow) %v4896_v1, 16 }
 0x1ca   : > { %v2421_v32 = vadd.f32 %v2420_v4, %v2419_v11  ;;  %v2031_v30 = vadd.f32 %v2030_v50, %v2029_v59  ;;  %v1846_v28 = vsel %vm1462_vm2, %v4356_v49, 0.0  ;;  %vm1470_vm15 = vcmp.lt.s32.totalorder %v5954_v25, 2000  ;;  %v5955_v4 = vld [vmem:[#allocation21_spill] sm:$0xff] }
 0x1cb   : > { %v2034_v46 = vsel %vm283_vm3, %v1842_v58, 0.0  ;;  %v2032_v29 = vsel %vm283_vm3, %v1841_v55, 0.0  ;;  %v2235_v48 = vmul.f32 %v1841_v55, %v1841_v55  ;;  %v1845_v50 = vsel %vm1461_vm5, %v4383_v16, 0.0 }
 0x1cc   : > { %v2033_v38 = vadd.f32 %v2032_v29, %v2031_v30  ;;  %v2423_v59 = vadd.f32 %v2422_v57, %v2421_v32  ;;  %v5074_v11 = vadd.s32 %v4123_v19, %v1227_v26  ;;  %v2238_v44 = vmul.f32 %v1844_v20, %v1844_v20  ;;  %v5957_v29 = vld [vmem:[#allocation23_spill] sm:$0xff] }
 0x1cd   : > { %v2237_v49 = vmul.f32 %v1843_v18, %v1843_v18  ;;  %vm1469_vm0 = vcmp.lt.s32.totalorder %v5955_v4, 2000  ;;  %vm1472_vm1 = vcmp.lt.s32.totalorder %v5956_v35, 2000  ;;  %v2426_v58 = vsel %vm283_vm3, %v2236_v27, 0.0  ;;  %2734 = vxpose.xlu1.b32.cont [11/16] (narrow) %v4958_v7, 16 }
 0x1ce   : > { %v2424_v55 = vsel %vm283_vm3, %v2235_v48, 0.0  ;;  %v2240_v9 = vmul.f32 %v1846_v28, %v1846_v28  ;;  %v1848_v45 = vsel %vm1464_vm7, %v4410_v21, 0.0  ;;  %v2035_v16 = vadd.f32 %v2034_v46, %v2033_v38  ;;  %v5091_v48 = vpop.f32.mrf.mxu1 }
 0x1cf   : > { %v2425_v57 = vadd.f32 %v2424_v55, %v2423_v59  ;;  %v2038_v26 = vsel %vm283_vm3, %v1844_v20, 0.0  ;;  %v2036_v32 = vsel %vm283_vm3, %v1843_v18, 0.0  ;;  %v2239_v30 = vmul.f32 %v1845_v50, %v1845_v50  ;;  %v5958_v59 = vld [vmem:[#allocation24_spill] sm:$0xff]  ;;  %v5959_v55 = vld [vmem:[#allocation26_spill] sm:$0xff] }
 0x1d0   : > { %vm1471_vm2 = vcmp.lt.s32.totalorder %v5957_v29, 2000  ;;  %v5089_v27 = vadd.s32 %v4123_v19, %v1226_v6  ;;  %v1847_v61 = vsel %vm1463_vm8, %v4435_v43, 0.0  ;;  %v1850_v21 = vsel %vm1466_vm9, %v4456_v22, 0.0 }
 0x1d1   : > { %v2037_v40 = vadd.f32 %v2036_v32, %v2035_v16  ;;  %v2427_v20 = vadd.f32 %v2426_v58, %v2425_v57  ;;  %v2430_v18 = vsel %vm283_vm3, %v2238_v44, 0.0  ;;  %v2428_v46 = vsel %vm283_vm3, %v2237_v49, 0.0  ;;  %v5960_v44 = vld [vmem:[#allocation25_spill] sm:$0xff]  ;;  %2735 = vxpose.xlu1.b32.cont [12/16] (narrow) %v4934_v54, 16 }
 0x1d2   : > { %v2042_v38 = vsel %vm283_vm3, %v1846_v28, 0.0  ;;  %v2242_v6 = vmul.f32 %v1848_v45, %v1848_v45  ;;  %vm1474_vm4 = vcmp.lt.s32.totalorder %v5958_v59, 2000  ;;  %vm1473_vm5 = vcmp.lt.s32.totalorder %v5959_v55, 2000  ;;  %2629 = vxpose.xlu0.b32.cont [2/16] (narrow) %v5960_v44, 16 }
 0x1d3   : > { %v2434_v0 = vsel %vm283_vm3, %v2240_v9, 0.0  ;;  %v1849_v43 = vsel %vm1465_vm11, %v4479_v63, 0.0  ;;  %v2039_v22 = vadd.f32 %v2038_v26, %v2037_v40  ;;  %v2429_v5 = vadd.f32 %v2428_v46, %v2427_v20  ;;  %v5116_v9 = vpop.f32.mrf.mxu1  ;;  %v5961_v40 = vld [vmem:[#allocation37_spill] sm:$0xff]  ;;  %v5962_v46 = vld [vmem:[#allocation39_spill] sm:$0xff] }
 0x1d4   : > { %v2040_v49 = vsel %vm283_vm3, %v1845_v50, 0.0  ;;  %v2241_v28 = vmul.f32 %v1847_v61, %v1847_v61  ;;  %v2244_v58 = vmul.f32 %v1850_v21, %v1850_v21  ;;  %v1852_v16 = vsel %vm1468_vm13, %v4500_v52, 0.0 }
 0x1d5   : > { %vm1476_vm6 = vcmp.lt.s32.totalorder %v4687_v60, 2000  ;;  %vm1475_vm7 = vcmp.lt.s32.totalorder %v4701_v37, 2000  ;;  %v2432_v63 = vsel %vm283_vm3, %v2239_v30, 0.0  ;;  %v1851_v8 = vsel %vm1467_vm14, %v4527_v24, 0.0  ;;  %2736 = vxpose.xlu1.b32.cont [13/16] (narrow) %v4994_v13, 16  ;;  %v5967_v37 = vld [vmem:[#allocation36_spill] sm:$0xff] }
 0x1d6   : > { %v2041_v57 = vadd.f32 %v2040_v49, %v2039_v22  ;;  %v2431_v50 = vadd.f32 %v2430_v18, %v2429_v5  ;;  %v2046_v26 = vsel %vm283_vm3, %v1848_v45, 0.0  ;;  %v2438_v32 = vsel %vm283_vm3, %v2242_v6, 0.0  ;;  %v5963_v18 = vld [vmem:[#allocation28_spill] sm:$0xff]  ;;  %v5135_v5 = vpop.f32.mrf.mxu1 }
 0x1d7   : > { %v2044_v15 = vsel %vm283_vm3, %v1847_v61, 0.0  ;;  %v2243_v52 = vmul.f32 %v1849_v43, %v1849_v43  ;;  %vm1478_vm8 = vcmp.lt.s32.totalorder %v5961_v40, 2000  ;;  %v2246_v20 = vmul.f32 %v1852_v16, %v1852_v16  ;;  %2630 = vxpose.xlu0.b32.cont [3/16] (narrow) %v5963_v18, 16 }
 0x1d8   : > { %v1854_v30 = vsel %vm1470_vm15, %v4554_v62, 0.0  ;;  %vm1477_vm9 = vcmp.lt.s32.totalorder %v5962_v46, 2000  ;;  %v2043_v31 = vadd.f32 %v2042_v38, %v2041_v57  ;;  %v2433_v24 = vadd.f32 %v2432_v63, %v2431_v50  ;;  %v5156_v50 = vpop.f32.mrf.mxu1 }
 0x1d9   : > { %v2436_v45 = vsel %vm283_vm3, %v2241_v28, 0.0  ;;  %v2050_v61 = vsel %vm283_vm3, %v1850_v21, 0.0  ;;  %v2442_v6 = vsel %vm283_vm3, %v2244_v58, 0.0  ;;  %v2245_v22 = vmul.f32 %v1851_v8, %v1851_v8 }
 0x1da   : > { %v1853_v62 = vsel %vm1469_vm0, %v4582_v34, 0.0  ;;  %v1856_v25 = vsel %vm1472_vm1, %v4610_v33, 0.0  ;;  %v2045_v38 = vadd.f32 %v2044_v15, %v2043_v31  ;;  %v2435_v44 = vadd.f32 %v2434_v0, %v2433_v24  ;;  %v5964_v33 = vld [vmem:[#allocation27_spill] sm:$0xff]  ;;  %v5179_v60 = vpop.f32.mrf.mxu1 }
 0x1db   : > { %v2048_v49 = vsel %vm283_vm3, %v1849_v43, 0.0  ;;  %v2440_v28 = vsel %vm283_vm3, %v2243_v52, 0.0  ;;  %v2054_v21 = vsel %vm283_vm3, %v1852_v16, 0.0  ;;  %v2248_v58 = vmul.f32 %v1854_v30, %v1854_v30  ;;  %2631 = vxpose.xlu0.b32.cont [4/16] (narrow) %v5964_v33, 16 }
 0x1dc   : > { %vm1480_vm10 = vcmp.lt.s32.totalorder %v4865_v36, 2000  ;;  %v2446_v63 = vsel %vm283_vm3, %v2246_v20, 0.0  ;;  %v1855_v34 = vsel %vm1471_vm2, %v4638_v42, 0.0  ;;  %v2047_v4 = vadd.f32 %v2046_v26, %v2045_v38 }
 0x1dd   : > { %v2437_v35 = vadd.f32 %v2436_v45, %v2435_v44  ;;  %v2052_v0 = vsel %vm283_vm3, %v1851_v8, 0.0  ;;  %v2444_v43 = vsel %vm283_vm3, %v2245_v22, 0.0  ;;  %v2247_v16 = vmul.f32 %v1853_v62, %v1853_v62 }
 0x1de   : > { %v2250_v57 = vmul.f32 %v1856_v25, %v1856_v25  ;;  %vm1479_vm11 = vcmp.lt.s32.totalorder %v4871_v51, 2000  ;;  %v1858_v42 = vsel %vm1474_vm4, %v4666_v3, 0.0  ;;  %v1857_v29 = vsel %vm1473_vm5, %v4694_v10, 0.0  ;;  %v5965_v3 = vld [vmem:[#allocation34_spill] sm:$0xff] }
 0x1df   : > { %v2049_v26 = vadd.f32 %v2048_v49, %v2047_v4  ;;  %v2439_v15 = vadd.f32 %v2438_v32, %v2437_v35  ;;  %v2058_v8 = vsel %vm283_vm3, %v1854_v30, 0.0  ;;  %v2450_v52 = vsel %vm283_vm3, %v2248_v58, 0.0  ;;  %v5966_v30 = vld [vmem:[#allocation30_spill] sm:$0xff]  ;;  %v5968_v58 = vld [vmem:[#allocation41_spill] sm:$0xff] }
 0x1e0   : > { %v2056_v20 = vsel %vm283_vm3, %v1853_v62, 0.0  ;;  %v2249_v31 = vmul.f32 %v1855_v34, %v1855_v34  ;;  %vm1482_vm12 = vcmp.lt.s32.totalorder %v4956_v39, 2000  ;;  %v1860_v59 = vsel %vm1476_vm6, %v4722_v53, 0.0  ;;  %2632 = vxpose.xlu0.b32.cont [5/16] (narrow) %v5966_v30, 16  ;;  %v5973_v39 = vld [vmem:[#allocation60_spill] sm:$0xff] }
 0x1e1   : > { %v1859_v55 = vsel %vm1475_vm7, %v5965_v3, 0.0  ;;  %vm1481_vm13 = vcmp.lt.s32.totalorder %v5022_v56, 2000  ;;  %v2051_v10 = vadd.f32 %v2050_v61, %v2049_v26  ;;  %v2441_v32 = vadd.f32 %v2440_v28, %v2439_v15  ;;  %v5204_v26 = vpop.f32.mrf.mxu1 }
 0x1e2   : > { %v2448_v24 = vsel %vm283_vm3, %v2247_v16, 0.0  ;;  %v2062_v18 = vsel %vm283_vm3, %v1856_v25, 0.0  ;;  %v2252_v45 = vmul.f32 %v1858_v42, %v1858_v42  ;;  %v2251_v22 = vmul.f32 %v1857_v29, %v1857_v29 }
 0x1e3   : > { %v5182_v53 = vsel %vm283_vm3, %v2250_v57, 0.0  ;;  %v1862_v61 = vsel %vm1478_vm8, %v5967_v37, 0.0  ;;  %v2053_v62 = vadd.f32 %v2052_v0, %v2051_v10  ;;  %v2443_v38 = vadd.f32 %v2442_v6, %v2441_v32  ;;  %v5969_v6 = vld [vmem:[#allocation56_spill] sm:$0xff]  ;;  %v5971_v32 = vld [vmem:[#allocation45_spill] sm:$0xff]  ;;  %v5236_v51 = vpop.f32.mrf.mxu1 }
 0x1e4   : > { %v2060_v44 = vsel %vm283_vm3, %v1855_v34, 0.0  ;;  %v2254_v49 = vmul.f32 %v1860_v59, %v1860_v59  ;;  %v2253_v28 = vmul.f32 %v1859_v55, %v1859_v55  ;;  %v1861_v25 = vsel %vm1477_vm9, %v5968_v58, 0.0  ;;  %2737 = vxpose.xlu1.b32.cont [14/16] (narrow) %v5969_v6, 16  ;;  %v5970_v34 = vld [vmem:[#allocation29_spill] sm:$0xff] }
 0x1e5   : > { %vm1484_vm14 = vcmp.lt.s32.totalorder %v5074_v11, 2000  ;;  %v2452_v4 = vsel %vm283_vm3, %v2249_v31, 0.0  ;;  %v5194_v35 = vsel %vm283_vm3, %v1858_v42, 0.0  ;;  %v2055_v33 = vadd.f32 %v2054_v21, %v2053_v62  ;;  %2633 = vxpose.xlu0.b32.cont [6/16] (narrow) %v5970_v34, 16 }
 0x1e6   : > { %v2445_v40 = vadd.f32 %v2444_v43, %v2443_v38  ;;  %vm1483_vm15 = vcmp.lt.s32.totalorder %v5089_v27, 2000  ;;  %v5200_v0 = vsel %vm283_vm3, %v2252_v45, 0.0  ;;  %v2064_v46 = vsel %vm283_vm3, %v1857_v29, 0.0 }
 0x1e7   : > { %v2456_v16 = vsel %vm283_vm3, %v2251_v22, 0.0  ;;  %v2256_v57 = vmul.f32 %v1862_v61, %v1862_v61  ;;  %v2255_v42 = vmul.f32 %v1861_v25, %v1861_v25  ;;  %v1864_v21 = vsel %vm1480_vm10, %v4811_v41, 0.0 }
 0x1e8   : > { %v2057_v43 = vadd.f32 %v2056_v20, %v2055_v33  ;;  %v2447_v15 = vadd.f32 %v2446_v63, %v2445_v40  ;;  %v5210_v31 = vsel %vm283_vm3, %v1860_v59, 0.0  ;;  %v5213_v3 = vsel %vm283_vm3, %v2254_v49, 0.0  ;;  %2738 = vxpose.xlu1.b32.cont [15/16] (narrow) %v5030_v12, 16  ;;  %v5972_v20 = vld [vmem:[#allocation32_spill] sm:$0xff] }
 0x1e9   : > { %v5216_v29 = vsel %vm283_vm3, %v1859_v55, 0.0  ;;  %v5219_v10 = vsel %vm283_vm3, %v2253_v28, 0.0  ;;  %v1863_v30 = vsel %vm1479_vm11, %v5971_v32, 0.0  ;;  %v1229_v63 = vadd.s32 728, %v4119_v17  ;;  %2634 = vxpose.xlu0.b32.cont [7/16] (narrow) %v5972_v20, 16 }
 0x1ea   : > { %v2059_v36 = vadd.f32 %v2058_v8, %v2057_v43  ;;  %v2449_v41 = vadd.f32 %v2448_v24, %v2447_v15  ;;  %v5228_v59 = vsel %vm283_vm3, %v1862_v61, 0.0  ;;  %v5231_v55 = vsel %vm283_vm3, %v2256_v57, 0.0 }
 0x1eb   : > { %v5234_v45 = vsel %vm283_vm3, %v1861_v25, 0.0  ;;  %v2258_v22 = vmul.f32 %v1864_v21, %v1864_v21  ;;  %v5239_v8 = vsel %vm283_vm3, %v2255_v42, 0.0  ;;  %v1866_v24 = vsel %vm1482_vm12, %v4851_v14, 0.0  ;;  %v5974_v14 = vld [vmem:[#allocation31_spill] sm:$0xff] }
 0x1ec   : > { %v2451_v37 = vadd.f32 %v2450_v52, %v2449_v41  ;;  %v2061_v61 = vadd.f32 %v2060_v44, %v2059_v36  ;;  %v5245_v62 = vsel %vm283_vm3, %v1864_v21, 0.0  ;;  %v2257_v38 = vmul.f32 %v1863_v30, %v1863_v30  ;;  %2739 = vxpose.xlu1.b32.end [16/16] (narrow) %v5973_v39, 16  ;;  %v2580_v52 = vpop.trf.xlu0  ;;  %v2612_v44 = vpop.trf.xlu1  ;;  %v5975_v36 = vld [vmem:[#allocation35_spill] sm:$0xff]  ;;  %v5976_v41 = vld [vmem:[#allocation48_spill] sm:$0xff] }
 0x1ed   : > { %v1865_v49 = vsel %vm1481_vm13, %v4880_v47, 0.0  ;;  %v1228_v28 = vadd.s32 720, %v4119_v17  ;;  %v1358_v33 = vadd.s32 %v4123_v19, %v1229_v63  ;;  %v1231_v40 = vadd.s32 744, %v4119_v17  ;;  %2635 = vxpose.xlu0.b32.cont [8/16] (narrow) %v5974_v14, 16  ;;  %2820 = vst [vmem:[%s5269_s29] sm:$0xff] %v2580_v52  ;;  %2821 = vst [vmem:[%s5269_s29 + $0x8] sm:$0xff] %v2612_v44  ;;  %v5977_v52 = vld [vmem:[#allocation33_spill] sm:$0xff] }
 0x1ee   : > { %v2063_v58 = vadd.f32 %v2062_v18, %v2061_v61  ;;  %v2453_v25 = vadd.f32 %v2452_v4, %v2451_v37  ;;  %v5257_v34 = vsel %vm283_vm3, %v2258_v22, 0.0  ;;  %v5260_v47 = vsel %vm283_vm3, %v1863_v30, 0.0  ;;  %v5263_v4 = vpop.f32.mrf.mxu1 }
 0x1ef   : > { %v2260_v56 = vmul.f32 %v1866_v24, %v1866_v24  ;;  %v1230_v18 = vadd.s32 736, %v4119_v17  ;;  %v2259_v57 = vmul.f32 %v1865_v49, %v1865_v49  ;;  %v1868_v42 = vsel %vm1484_vm14, %v4896_v1, 0.0 }
 0x1f0   : > { %v2065_v21 = vadd.f32 %v2064_v46, %v2063_v58  ;;  %v2455_v43 = vadd.f32 %v5182_v53, %v2453_v25  ;;  %v5274_v15 = vsel %vm283_vm3, %v2257_v38, 0.0  ;;  %v5277_v32 = vsel %vm283_vm3, %v1866_v24, 0.0  ;;  %2660 = vxpose.xlu1.b32.start [1/16] (narrow) %v5976_v41, 16  ;;  %v2581_v63 = vpop.trf.xlu0  ;;  %v2613_v20 = vpop.trf.xlu1 }
 0x1f1   : > { %v1867_v1 = vsel %vm1483_vm15, %v4921_v23, 0.0  ;;  %v1357_v11 = vadd.s32 %v4123_v19, %v1228_v28  ;;  %vm1486_vm0 = vcmp.lt.s32.totalorder %v1358_v33, 2000  ;;  %v1360_v30 = vadd.s32 %v4123_v19, %v1231_v40  ;;  %2636 = vxpose.xlu0.b32.cont [9/16] (narrow) %v5975_v36, 16  ;;  %v5292_v37 = vpop.f32.mrf.mxu1  ;;  %2828 = vst [vmem:[%s5269_s29 + $0x40] sm:$0xff] %v2581_v63  ;;  %2829 = vst [vmem:[%s5269_s29 + $0x48] sm:$0xff] %v2613_v20 }
 0x1f2   : > { %v2067_v53 = vadd.f32 %v5194_v35, %v2065_v21  ;;  %v2457_v46 = vadd.f32 %v2456_v16, %v2455_v43  ;;  %v5288_v22 = vsel %vm283_vm3, %v2260_v56, 0.0  ;;  %v2262_v27 = vmul.f32 %v1868_v42, %v1868_v42 }
 0x1f3   : > { %v1359_v23 = vadd.s32 %v4123_v19, %v1230_v18  ;;  %v1233_v24 = vadd.s32 760, %v4119_v17  ;;  %v2080_v35 = vsel %vm283_vm3, %v1865_v49, 0.0  ;;  %v5298_v16 = vsel %vm283_vm3, %v2259_v57, 0.0  ;;  %v5317_v33 = vpop.f32.mrf.mxu1 }
 0x1f4   : > { %v2069_v61 = vadd.f32 %v5216_v29, %v2067_v53  ;;  %v2459_v38 = vadd.f32 %v5200_v0, %v2457_v46  ;;  %v5303_v28 = vsel %vm283_vm3, %v1868_v42, 0.0  ;;  %v2261_v58 = vmul.f32 %v1867_v1, %v1867_v1  ;;  %v5978_v29 = vld [vmem:[#allocation47_spill] sm:$0xff] }
 0x1f5   : > { %v1870_v25 = vsel %vm1486_vm0, %v4934_v54, 0.0  ;;  %vm1485_vm1 = vcmp.lt.s32.totalorder %v1357_v11, 2000  ;;  %vm1488_vm2 = vcmp.lt.s32.totalorder %v1360_v30, 2000  ;;  %v1232_v49 = vadd.s32 752, %v4119_v17  ;;  %2637 = vxpose.xlu0.b32.cont [10/16] (narrow) %v5977_v52, 16  ;;  %2661 = vxpose.xlu1.b32.cont [2/16] (narrow) %v5978_v29, 16  ;;  %v5334_v36 = vpop.f32.mrf.mxu1 }
 0x1f6   : > { %v2071_v40 = vadd.f32 %v5210_v31, %v2069_v61  ;;  %v2461_v14 = vadd.f32 %v5219_v10, %v2459_v38  ;;  %v5313_v0 = vsel %vm283_vm3, %v2262_v27, 0.0  ;;  %vm1487_vm4 = vcmp.lt.s32.totalorder %v1359_v23, 2000  ;;  %v5982_v38 = vld [vmem:[#allocation49_spill] sm:$0xff] }
 0x1f7   : > { %v1362_v44 = vadd.s32 %v4123_v19, %v1233_v24  ;;  %v1235_v54 = vadd.s32 776, %v4119_v17  ;;  %v2084_v10 = vsel %vm283_vm3, %v1867_v1, 0.0  ;;  %v1869_v18 = vsel %vm1485_vm1, %v4958_v7, 0.0  ;;  %v5979_v1 = vld [vmem:[#allocation40_spill] sm:$0xff] }
 0x1f8   : > { %v2073_v31 = vadd.f32 %v5234_v45, %v2071_v40  ;;  %v2463_v56 = vadd.f32 %v5213_v3, %v2461_v14  ;;  %v2476_v57 = vsel %vm283_vm3, %v2261_v58, 0.0  ;;  %v2264_v42 = vmul.f32 %v1870_v25, %v1870_v25  ;;  %v5980_v3 = vld [vmem:[#allocation50_spill] sm:$0xff]  ;;  %v5354_v14 = vpop.f32.mrf.mxu1 }
 0x1f9   : > { %v1872_v21 = vsel %vm1488_vm2, %v5969_v6, 0.0  ;;  %v1234_v43 = vadd.s32 768, %v4119_v17  ;;  %v1871_v46 = vsel %vm1487_vm4, %v4994_v13, 0.0  ;;  %v1361_v45 = vadd.s32 %v4123_v19, %v1232_v49  ;;  %2638 = vxpose.xlu0.b32.cont [11/16] (narrow) %v5979_v1, 16  ;;  %2662 = vxpose.xlu1.b32.cont [3/16] (narrow) %v5980_v3, 16 }
 0x1fa   : > { %v2075_v11 = vadd.f32 %v5228_v59, %v2073_v31  ;;  %v2465_v53 = vadd.f32 %v5239_v8, %v2463_v56  ;;  %v2263_v7 = vmul.f32 %v1869_v18, %v1869_v18  ;;  %vm1490_vm5 = vcmp.lt.s32.totalorder %v1362_v44, 2000 }
 0x1fb   : > { %v1364_v30 = vadd.s32 %v4123_v19, %v1235_v54  ;;  %v1237_v6 = vadd.s32 792, %v4119_v17  ;;  %v5339_v13 = vsel %vm283_vm3, %v1870_v25, 0.0  ;;  %v2266_v41 = vmul.f32 %v1872_v21, %v1872_v21 }
 0x1fc   : > { %v2077_v59 = vadd.f32 %v5260_v47, %v2075_v11  ;;  %v2467_v8 = vadd.f32 %v5231_v55, %v2465_v53  ;;  %v5342_v63 = vsel %vm283_vm3, %v2264_v42, 0.0  ;;  %v2088_v20 = vsel %vm283_vm3, %v1869_v18, 0.0  ;;  %v5981_v55 = vld [vmem:[#allocation38_spill] sm:$0xff] }
 0x1fd   : > { %v2265_v27 = vmul.f32 %v1871_v46, %v1871_v46  ;;  %v1363_v23 = vadd.s32 %v4123_v19, %v1234_v43  ;;  %v1874_v47 = vsel %vm1490_vm5, %v5973_v39, 0.0  ;;  %vm1489_vm6 = vcmp.lt.s32.totalorder %v1361_v45, 2000  ;;  %2639 = vxpose.xlu0.b32.cont [12/16] (narrow) %v5981_v55, 16  ;;  %2663 = vxpose.xlu1.b32.cont [4/16] (narrow) %v5982_v38, 16  ;;  %v5985_v18 = vld [vmem:[#allocation18_spill] sm:$0xff] }
 0x1fe   : > { %v2079_v24 = vadd.f32 %v5245_v62, %v2077_v59  ;;  %v2469_v61 = vadd.f32 %v5274_v15, %v2467_v8  ;;  %v2480_v58 = vsel %vm283_vm3, %v2263_v7, 0.0  ;;  %vm1492_vm7 = vcmp.lt.s32.totalorder %v1364_v30, 2000  ;;  %v5986_v59 = vld [vmem:[#allocation42_spill] sm:$0xff] }
 0x1ff   : > { %v1366_v25 = vadd.s32 %v4123_v19, %v1237_v6  ;;  %v1236_v40 = vadd.s32 784, %v4119_v17  ;;  %v5358_v15 = vsel %vm283_vm3, %v1872_v21, 0.0  ;;  %v5361_v39 = vsel %vm283_vm3, %v2266_v41, 0.0 }
 0x200   : > { %v2081_v49 = vadd.f32 %v2080_v35, %v2079_v24  ;;  %v2471_v62 = vadd.f32 %v5257_v34, %v2469_v61  ;;  %v2092_v52 = vsel %vm283_vm3, %v1871_v46, 0.0  ;;  %v2484_v29 = vsel %vm283_vm3, %v2265_v27, 0.0  ;;  %v5983_v35 = vld [vmem:[#allocation43_spill] sm:$0xff]  ;;  %v5984_v34 = vld [vmem:[#allocation52_spill] sm:$0xff] }
 0x201   : > { %v2268_v44 = vmul.f32 %v1874_v47, %v1874_v47  ;;  %v1873_v54 = vsel %vm1489_vm6, %v5030_v12, 0.0  ;;  %2640 = vxpose.xlu0.b32.cont [13/16] (narrow) %v5983_v35, 16  ;;  %2664 = vxpose.xlu1.b32.cont [5/16] (narrow) %v5984_v34, 16  ;;  %v1876_v42 = vsel %vm1492_vm7, %v5985_v18, 0.0  ;;  %vm1491_vm8 = vcmp.lt.s32.totalorder %v1363_v23, 2000  ;;  %v5375_v12 = vpop.f32.mrf.mxu1 }
 0x202   : > { %v2083_v31 = vadd.f32 %v5277_v32, %v2081_v49  ;;  %v2473_v56 = vadd.f32 %v5298_v16, %v2471_v62  ;;  %vm1494_vm9 = vcmp.lt.s32.totalorder %v1366_v25, 2000  ;;  %v1365_v21 = vadd.s32 %v4123_v19, %v1236_v40 }
 0x203   : > { %v1239_v43 = vadd.s32 808, %v4119_v17  ;;  %v1238_v11 = vadd.s32 800, %v4119_v17  ;;  %v5379_v53 = vsel %vm283_vm3, %v1874_v47, 0.0  ;;  %v2267_v46 = vmul.f32 %v1873_v54, %v1873_v54 }
 0x204   : > { %v2085_v32 = vadd.f32 %v2084_v10, %v2083_v31  ;;  %v2475_v16 = vadd.f32 %v5288_v22, %v2473_v56  ;;  %v5382_v45 = vsel %vm283_vm3, %v2268_v44, 0.0  ;;  %v2096_v1 = vsel %vm283_vm3, %v1873_v54, 0.0  ;;  %v5987_v10 = vld [vmem:[#allocation51_spill] sm:$0xff]  ;;  %v5988_v44 = vld [vmem:[#allocation46_spill] sm:$0xff] }
 0x205   : > { %v2270_v3 = vmul.f32 %v1876_v42, %v1876_v42  ;;  %v1241_v7 = vadd.s32 824, %v4119_v17  ;;  %2641 = vxpose.xlu0.b32.cont [14/16] (narrow) %v5986_v59, 16  ;;  %2665 = vxpose.xlu1.b32.cont [6/16] (narrow) %v5987_v10, 16  ;;  %v1875_v22 = vsel %vm1491_vm8, %v5068_v2, 0.0  ;;  %v1878_v8 = vsel %vm1494_vm9, %v5091_v48, 0.0 }
 0x206   : > { %v2477_v30 = vadd.f32 %v2476_v57, %v2475_v16  ;;  %v2087_v6 = vadd.f32 %v5303_v28, %v2085_v32  ;;  %vm1493_vm10 = vcmp.lt.s32.totalorder %v1365_v21, 2000  ;;  %v1368_v41 = vadd.s32 %v4123_v19, %v1239_v43  ;;  %v5396_v57 = vpop.f32.mrf.mxu1 }
 0x207   : > { %v1367_v27 = vadd.s32 %v4123_v19, %v1238_v11  ;;  %v1240_v24 = vadd.s32 816, %v4119_v17  ;;  %v2488_v47 = vsel %vm283_vm3, %v2267_v46, 0.0  ;;  %v5401_v23 = vsel %vm283_vm3, %v1876_v42, 0.0  ;;  %v5990_v46 = vld [vmem:[#allocation44_spill] sm:$0xff] }
 0x208   : > { %v2089_v28 = vadd.f32 %v2088_v20, %v2087_v6  ;;  %v2479_v61 = vadd.f32 %v5313_v0, %v2477_v30  ;;  %v5404_v55 = vsel %vm283_vm3, %v2270_v3, 0.0  ;;  %v2269_v38 = vmul.f32 %v1875_v22, %v1875_v22  ;;  %v5989_v20 = vld [vmem:[#allocation54_spill] sm:$0xff]  ;;  %v5415_v35 = vpop.f32.mrf.mxu1 }
 0x209   : > { %v1370_v25 = vadd.s32 %v4123_v19, %v1241_v7  ;;  %v1243_v40 = vadd.s32 840, %v4119_v17  ;;  %2642 = vxpose.xlu0.b32.cont [15/16] (narrow) %v5988_v44, 16  ;;  %2666 = vxpose.xlu1.b32.cont [7/16] (narrow) %v5989_v20, 16  ;;  %v2272_v0 = vmul.f32 %v1878_v8, %v1878_v8  ;;  %v1877_v54 = vsel %vm1493_vm10, %v5116_v9, 0.0  ;;  %v2708_v7 = vpop.trf.xlu0 }
 0x20a   : > { %v2481_v49 = vadd.f32 %v2480_v58, %v2479_v61  ;;  %v2091_v62 = vadd.f32 %v5339_v13, %v2089_v28  ;;  %vm1496_vm11 = vcmp.lt.s32.totalorder %v1368_v41, 2000  ;;  %vm1495_vm12 = vcmp.lt.s32.totalorder %v1367_v27, 2000  ;;  %2824 = vst [vmem:[%s5269_s29 + $0x20] sm:$0xff] %v2708_v7 }
 0x20b   : > { %v1369_v31 = vadd.s32 %v4123_v19, %v1240_v24  ;;  %v1242_v56 = vadd.s32 832, %v4119_v17  ;;  %v2100_v13 = vsel %vm283_vm3, %v1875_v22, 0.0  ;;  %v5420_v42 = vsel %vm283_vm3, %v1878_v8, 0.0 }
 0x20c   : > { %v2093_v34 = vadd.f32 %v2092_v52, %v2091_v62  ;;  %v2483_v58 = vadd.f32 %v5342_v63, %v2481_v49  ;;  %v2492_v43 = vsel %vm283_vm3, %v2269_v38, 0.0  ;;  %v2271_v21 = vmul.f32 %v1877_v54, %v1877_v54  ;;  %v5991_v52 = vld [vmem:[#allocation53_spill] sm:$0xff] }
 0x20d   : > { %vm1498_vm13 = vcmp.lt.s32.totalorder %v1370_v25, 2000  ;;  %v1372_v11 = vadd.s32 %v4123_v19, %v1243_v40  ;;  %2643 = vxpose.xlu0.b32.end [16/16] (narrow) %v5990_v46, 16  ;;  %2667 = vxpose.xlu1.b32.cont [8/16] (narrow) %v5991_v52, 16  ;;  %v1880_v63 = vsel %vm1496_vm11, %v5135_v5, 0.0  ;;  %v1879_v3 = vsel %vm1495_vm12, %v5156_v50, 0.0  ;;  %v2709_v40 = vpop.trf.xlu0 }
 0x20e   : > { %v2485_v32 = vadd.f32 %v2484_v29, %v2483_v58  ;;  %v2095_v16 = vadd.f32 %v5358_v15, %v2093_v34  ;;  %v5432_v30 = vsel %vm283_vm3, %v2272_v0, 0.0  ;;  %vm1497_vm14 = vcmp.lt.s32.totalorder %v1369_v31, 2000  ;;  %v5436_v15 = vpop.f32.mrf.mxu1  ;;  %2832 = vst [vmem:[%s5269_s29 + $0x60] sm:$0xff] %v2709_v40 }
 0x20f   : > { %v1371_v6 = vadd.s32 %v4123_v19, %v1242_v56  ;;  %v1245_v29 = vadd.s32 856, %v4119_v17  ;;  %v2104_v22 = vsel %vm283_vm3, %v1877_v54, 0.0  ;;  %v1882_v8 = vsel %vm1498_vm13, %v5179_v60, 0.0 }
 0x210   : > { %v2097_v59 = vadd.f32 %v2096_v1, %v2095_v16  ;;  %v2487_v10 = vadd.f32 %v5361_v39, %v2485_v32  ;;  %v2496_v41 = vsel %vm283_vm3, %v2271_v21, 0.0  ;;  %v2274_v27 = vmul.f32 %v1880_v63, %v1880_v63  ;;  %v5444_v28 = vpop.f32.mrf.mxu1  ;;  %v5992_v1 = vld [vmem:[#allocation57_spill] sm:$0xff] }
 0x211   : > { %v2273_v24 = vmul.f32 %v1879_v3, %v1879_v3  ;;  %vm1500_vm15 = vcmp.lt.s32.totalorder %v1372_v11, 2000  ;;  %2756 = vxpose.xlu0.b32.start [1/16] (narrow) %v5068_v2, 16  ;;  %2668 = vxpose.xlu1.b32.cont [9/16] (narrow) %v5992_v1, 16  ;;  %v2110_v39 = vsel %vm283_vm3, %v1880_v63, 0.0  ;;  %v1881_v25 = vsel %vm1497_vm14, %v5204_v26, 0.0 }
 0x212   : > { %v2489_v61 = vadd.f32 %v2488_v47, %v2487_v10  ;;  %v2099_v38 = vadd.f32 %v5379_v53, %v2097_v59  ;;  %v2276_v49 = vmul.f32 %v1882_v8, %v1882_v8  ;;  %vm1499_vm0 = vcmp.lt.s32.totalorder %v1371_v6, 2000  ;;  %v5462_v34 = vpop.f32.mrf.mxu1 }
 0x213   : > { %v1374_v62 = vadd.s32 %v4123_v19, %v1245_v29  ;;  %v1244_v44 = vadd.s32 848, %v4119_v17  ;;  %v1884_v2 = vsel %vm1500_vm15, %v5236_v51, 0.0  ;;  %v1247_v20 = vadd.s32 872, %v4119_v17 }
 0x214   : > { %v2101_v47 = vadd.f32 %v2100_v13, %v2099_v38  ;;  %v2491_v53 = vadd.f32 %v5382_v45, %v2489_v61  ;;  %v2502_v0 = vsel %vm283_vm3, %v2274_v27, 0.0  ;;  %v2108_v54 = vsel %vm283_vm3, %v1879_v3, 0.0  ;;  %v5993_v45 = vld [vmem:[#allocation55_spill] sm:$0xff]  ;;  %v5483_v29 = vpop.f32.mrf.mxu1 }
 0x215   : > { %v2500_v31 = vsel %vm283_vm3, %v2273_v24, 0.0  ;;  %v2275_v56 = vmul.f32 %v1881_v25, %v1881_v25  ;;  %2757 = vxpose.xlu0.b32.cont [2/16] (narrow) %v5985_v18, 16  ;;  %2669 = vxpose.xlu1.b32.cont [10/16] (narrow) %v5993_v45, 16  ;;  %v2114_v21 = vsel %vm283_vm3, %v1882_v8, 0.0  ;;  %v1883_v11 = vsel %vm1499_vm0, %v5263_v4, 0.0 }
 0x216   : > { %v2493_v58 = vadd.f32 %v2492_v43, %v2491_v53  ;;  %v2103_v13 = vadd.f32 %v5401_v23, %v2101_v47  ;;  %v2278_v32 = vmul.f32 %v1884_v2, %v1884_v2  ;;  %vm1502_vm1 = vcmp.lt.s32.totalorder %v1374_v62, 2000  ;;  %v5500_v40 = vpop.f32.mrf.mxu1 }
 0x217   : > { %v1373_v16 = vadd.s32 %v4123_v19, %v1244_v44  ;;  %v1246_v46 = vadd.s32 864, %v4119_v17  ;;  %v2506_v23 = vsel %vm283_vm3, %v2276_v49, 0.0  ;;  %v1376_v18 = vadd.s32 %v4123_v19, %v1247_v20  ;;  %v5995_v44 = vld [vmem:[#allocation58_spill] sm:$0xff] }
 0x218   : > { %v2105_v52 = vadd.f32 %v2104_v22, %v2103_v13  ;;  %v2495_v43 = vadd.f32 %v5404_v55, %v2493_v58  ;;  %v2112_v63 = vsel %vm283_vm3, %v1881_v25, 0.0  ;;  %v2504_v3 = vsel %vm283_vm3, %v2275_v56, 0.0  ;;  %v5994_v55 = vld [vmem:[#allocation59_spill] sm:$0xff] }
 0x219   : > { %v5481_v7 = vsel %vm283_vm3, %v1884_v2, 0.0  ;;  %v2277_v6 = vmul.f32 %v1883_v11, %v1883_v11  ;;  %2758 = vxpose.xlu0.b32.cont [3/16] (narrow) %v5116_v9, 16  ;;  %2670 = vxpose.xlu1.b32.cont [11/16] (narrow) %v5994_v55, 16  ;;  %v1886_v22 = vsel %vm1502_vm1, %v5292_v37, 0.0  ;;  %v1249_v8 = vadd.s32 888, %v4119_v17 }
 0x21a   : > { %v2497_v59 = vadd.f32 %v2496_v41, %v2495_v43  ;;  %v2107_v10 = vadd.f32 %v5420_v42, %v2105_v52  ;;  %v5492_v27 = vsel %vm283_vm3, %v2278_v32, 0.0  ;;  %vm1501_vm2 = vcmp.lt.s32.totalorder %v1373_v16, 2000  ;;  %v5525_v32 = vpop.f32.mrf.mxu1  ;;  %v5996_v52 = vld [vmem:[#allocation16_spill] sm:$0xff] }
 0x21b   : > { %v1375_v24 = vadd.s32 %v4123_v19, %v1246_v46  ;;  %v1248_v41 = vadd.s32 880, %v4119_v17  ;;  %vm1504_vm4 = vcmp.lt.s32.totalorder %v1376_v18, 2000  ;;  %v1251_v9 = vadd.s32 904, %v4119_v17 }
 0x21c   : > { %v2109_v61 = vadd.f32 %v2108_v54, %v2107_v10  ;;  %v2499_v42 = vadd.f32 %v5432_v30, %v2497_v59  ;;  %v2116_v38 = vsel %vm283_vm3, %v1883_v11, 0.0  ;;  %v2508_v1 = vsel %vm283_vm3, %v2277_v6, 0.0 }
 0x21d   : > { %v2280_v25 = vmul.f32 %v1886_v22, %v1886_v22  ;;  %2759 = vxpose.xlu0.b32.cont [4/16] (narrow) %v5091_v48, 16  ;;  %2671 = vxpose.xlu1.b32.cont [12/16] (narrow) %v5995_v44, 16  ;;  %v1885_v47 = vsel %vm1501_vm2, %v5317_v33, 0.0  ;;  %v1378_v30 = vadd.s32 %v4123_v19, %v1249_v8  ;;  %v3746_v53 = vmov 0.0  }
 0x21e   : > { %v2501_v49 = vadd.f32 %v2500_v31, %v2499_v42  ;;  %v2111_v62 = vadd.f32 %v2110_v39, %v2109_v61  ;;  %284 = vst.msk [vmem:[%s5507_s25] sm:$0xff] %vm283_vm3, %v3746_v53  ;;  %285 = vst.msk [vmem:[%s5512_s9] sm:$0xff] %vm283_vm3, %v3746_v53  ;;  %v1888_v48 = vsel %vm1504_vm4, %v5334_v36, 0.0  ;;  %vm1503_vm5 = vcmp.lt.s32.totalorder %v1375_v24, 2000 }
 0x21f   : > { %v1377_v39 = vadd.s32 %v4123_v19, %v1248_v41  ;;  %v1250_v2 = vadd.s32 896, %v4119_v17  ;;  %v1380_v31 = vadd.s32 %v4123_v19, %v1251_v9  ;;  %v1253_v56 = vadd.s32 920, %v4119_v17  ;;  %v5997_v41 = vld [vmem:[#allocation61_spill] sm:$0xff] }
 0x220   : > { %v2113_v20 = vadd.f32 %v2112_v63, %v2111_v62  ;;  %v2503_v54 = vadd.f32 %v2502_v0, %v2501_v49  ;;  %v2122_v58 = vsel %vm283_vm3, %v1886_v22, 0.0  ;;  %v2514_v13 = vsel %vm283_vm3, %v2280_v25, 0.0  ;;  %v5537_v22 = vpop.f32.mrf.mxu1 }
 0x221   : > { %v2120_v45 = vsel %vm283_vm3, %v1885_v47, 0.0  ;;  %v2279_v11 = vmul.f32 %v1885_v47, %v1885_v47  ;;  %2760 = vxpose.xlu0.b32.cont [5/16] (narrow) %v5156_v50, 16  ;;  %2672 = vxpose.xlu1.b32.cont [13/16] (narrow) %v5996_v52, 16  ;;  %v1887_v0 = vsel %vm1503_vm5, %v5354_v14, 0.0  ;;  %vm1506_vm6 = vcmp.lt.s32.totalorder %v1378_v30, 2000 }
 0x222   : > { %v2505_v16 = vadd.f32 %v2504_v3, %v2503_v54  ;;  %v2115_v46 = vadd.f32 %v2114_v21, %v2113_v20  ;;  %v2282_v43 = vmul.f32 %v1888_v48, %v1888_v48  ;;  %vm1505_vm7 = vcmp.lt.s32.totalorder %v1377_v39, 2000  ;;  %v5552_v47 = vpop.f32.mrf.mxu1  ;;  %v5998_v39 = vld [vmem:[#allocation19_spill] sm:$0xff] }
 0x223   : > { %v1379_v18 = vadd.s32 %v4123_v19, %v1250_v2  ;;  %v1252_v63 = vadd.s32 912, %v4119_v17  ;;  %vm1508_vm8 = vcmp.lt.s32.totalorder %v1380_v31, 2000  ;;  %v1382_v3 = vadd.s32 %v4123_v19, %v1253_v56 }
 0x224   : > { %v2117_v6 = vadd.f32 %v2116_v38, %v2115_v46  ;;  %v2507_v59 = vadd.f32 %v2506_v23, %v2505_v16  ;;  %v2512_v21 = vsel %vm283_vm3, %v2279_v11, 0.0  ;;  %v2126_v50 = vsel %vm283_vm3, %v1888_v48, 0.0  ;;  %v5567_v52 = vpop.f32.mrf.mxu1 }
 0x225   : > { %v2281_v10 = vmul.f32 %v1887_v0, %v1887_v0  ;;  %v1890_v55 = vsel %vm1506_vm6, %v5375_v12, 0.0  ;;  %2761 = vxpose.xlu0.b32.cont [6/16] (narrow) %v5135_v5, 16  ;;  %2673 = vxpose.xlu1.b32.cont [14/16] (narrow) %v5997_v41, 16  ;;  %v1889_v23 = vsel %vm1505_vm7, %v5396_v57, 0.0  ;;  %v1255_v61 = vadd.s32 936, %v4119_v17 }
 0x226   : > { %v2509_v8 = vadd.f32 %v2508_v1, %v2507_v59  ;;  %v2119_v24 = vadd.f32 %v5481_v7, %v2117_v6  ;;  %v2518_v42 = vsel %vm283_vm3, %v2282_v43, 0.0  ;;  %v1892_v9 = vsel %vm1508_vm8, %v5415_v35, 0.0 }
 0x227   : > { %vm1507_vm9 = vcmp.lt.s32.totalorder %v1379_v18, 2000  ;;  %v1381_v38 = vadd.s32 %v4123_v19, %v1252_v63  ;;  %vm1510_vm10 = vcmp.lt.s32.totalorder %v1382_v3, 2000  ;;  %v1254_v5 = vadd.s32 928, %v4119_v17 }
 0x228   : > { %v2121_v25 = vadd.f32 %v2120_v45, %v2119_v24  ;;  %v2511_v1 = vadd.f32 %v5492_v27, %v2509_v8  ;;  %v2124_v7 = vsel %vm283_vm3, %v1887_v0, 0.0  ;;  %v2516_v49 = vsel %vm283_vm3, %v2281_v10, 0.0 }
 0x229   : > { %v2284_v62 = vmul.f32 %v1890_v55, %v1890_v55  ;;  %v2283_v44 = vmul.f32 %v1889_v23, %v1889_v23  ;;  %v2130_v48 = vsel %vm283_vm3, %v1890_v55, 0.0  ;;  %2762 = vxpose.xlu0.b32.cont [7/16] (narrow) %v5204_v26, 16  ;;  %2674 = vxpose.xlu1.b32.cont [15/16] (narrow) %v5998_v39, 16  ;;  %v1384_v27 = vadd.s32 %v4123_v19, %v1255_v61 }
 0x22a   : > { %v2513_v30 = vadd.f32 %v2512_v21, %v2511_v1  ;;  %v2123_v53 = vadd.f32 %v2122_v58, %v2121_v25  ;;  %v2286_v2 = vmul.f32 %v1892_v9, %v1892_v9  ;;  %v1891_v20 = vsel %vm1507_vm9, %v5436_v15, 0.0 }
 0x22b   : > { %v1894_v54 = vsel %vm1510_vm10, %v5444_v28, 0.0  ;;  %vm1509_vm11 = vcmp.lt.s32.totalorder %v1381_v38, 2000  ;;  %v1383_v45 = vadd.s32 %v4123_v19, %v1254_v5  ;;  %v1256_v58 = vadd.s32 944, %v4119_v17 }
 0x22c   : > { %v2125_v31 = vadd.f32 %v2124_v7, %v2123_v53  ;;  %v2515_v56 = vadd.f32 %v2514_v13, %v2513_v30  ;;  %v2522_v11 = vsel %vm283_vm3, %v2284_v62, 0.0  ;;  %v2128_v26 = vsel %vm283_vm3, %v1889_v23, 0.0  ;;  %v5999_v13 = vld [vmem:[#allocation17_spill] sm:$0xff]  ;;  %v2740_v63 = vpop.trf.xlu1  ;;  %v5581_v23 = vpop.f32.mrf.mxu1 }
 0x22d   : > { %v2520_v16 = vsel %vm283_vm3, %v2283_v44, 0.0  ;;  %v1257_v46 = vadd.s32 952, %v4119_v17  ;;  %v2134_v18 = vsel %vm283_vm3, %v1892_v9, 0.0  ;;  %2763 = vxpose.xlu0.b32.cont [8/16] (narrow) %v5179_v60, 16  ;;  %2675 = vxpose.xlu1.b32.end [16/16] (narrow) %v5999_v13, 16  ;;  %vm1512_vm12 = vcmp.lt.s32.totalorder %v1384_v27, 2000 }
 0x22e   : > { %v2517_v0 = vadd.f32 %v2516_v49, %v2515_v56  ;;  %v2127_v43 = vadd.f32 %v2126_v50, %v2125_v31  ;;  %v2526_v6 = vsel %vm283_vm3, %v2286_v2, 0.0  ;;  %v2285_v59 = vmul.f32 %v1891_v20, %v1891_v20  ;;  %2825 = vst [vmem:[%s5269_s29 + $0x28] sm:$0xff] %v2740_v63  ;;  %v5594_v53 = vpop.f32.mrf.mxu1 }
 0x22f   : > { %v2288_v3 = vmul.f32 %v1894_v54, %v1894_v54  ;;  %v1893_v21 = vsel %vm1509_vm11, %v5462_v34, 0.0  ;;  %vm1511_vm13 = vcmp.lt.s32.totalorder %v1383_v45, 2000  ;;  %v1385_v50 = vadd.s32 %v4123_v19, %v1256_v58 }
 0x230   : > { %v2129_v10 = vadd.f32 %v2128_v26, %v2127_v43  ;;  %v2519_v55 = vadd.f32 %v2518_v42, %v2517_v0  ;;  %v2132_v8 = vsel %vm283_vm3, %v1891_v20, 0.0  ;;  %v1896_v60 = vsel %vm1512_vm12, %v5483_v29, 0.0  ;;  %v2741_v25 = vpop.trf.xlu1 }
 0x231   : > { %v1386_v24 = vadd.s32 %v4123_v19, %v1257_v46  ;;  %v1258_v41 = vadd.s32 960, %v4119_v17  ;;  %2764 = vxpose.xlu0.b32.cont [9/16] (narrow) %v5263_v4, 16  ;;  %2788 = vxpose.xlu1.b32.start [1/16] (narrow) %v5436_v15, 16  ;;  %v2138_v42 = vsel %vm283_vm3, %v1894_v54, 0.0  ;;  %v2287_v38 = vmul.f32 %v1893_v21, %v1893_v21  ;;  %2833 = vst [vmem:[%s5269_s29 + $0x68] sm:$0xff] %v2741_v25  ;;  %v5609_v46 = vpop.f32.mrf.mxu1 }
 0x232   : > { %v2521_v61 = vadd.f32 %v2520_v16, %v2519_v55  ;;  %v2131_v9 = vadd.f32 %v2130_v48, %v2129_v10  ;;  %v2524_v1 = vsel %vm283_vm3, %v2285_v59, 0.0  ;;  %v2530_v5 = vsel %vm283_vm3, %v2288_v3, 0.0 }
 0x233   : > { %v1895_v7 = vsel %vm1511_vm13, %v5500_v40, 0.0  ;;  %v1259_v49 = vadd.s32 968, %v4119_v17  ;;  %v2290_v30 = vmul.f32 %v1896_v60, %v1896_v60  ;;  %vm1513_vm14 = vcmp.lt.s32.totalorder %v1385_v50, 2000 }
 0x234   : > { %v2133_v62 = vadd.f32 %v2132_v8, %v2131_v9  ;;  %v2523_v44 = vadd.f32 %v2522_v11, %v2521_v61  ;;  %v2136_v4 = vsel %vm283_vm3, %v1893_v21, 0.0  ;;  %vm1514_vm15 = vcmp.lt.s32.totalorder %v1386_v24, 2000 }
 0x235   : > { %v1387_v15 = vadd.s32 %v4123_v19, %v1258_v41  ;;  %v1260_v48 = vadd.s32 976, %v4119_v17  ;;  %v2528_v2 = vsel %vm283_vm3, %v2287_v38, 0.0  ;;  %2765 = vxpose.xlu0.b32.cont [10/16] (narrow) %v5236_v51, 16  ;;  %2789 = vxpose.xlu1.b32.cont [2/16] (narrow) %v5415_v35, 16  ;;  %v2289_v20 = vmul.f32 %v1895_v7, %v1895_v7 }
 0x236   : > { %v2525_v39 = vadd.f32 %v2524_v1, %v2523_v44  ;;  %v2135_v27 = vadd.f32 %v2134_v18, %v2133_v62  ;;  %v2142_v54 = vsel %vm283_vm3, %v1896_v60, 0.0  ;;  %v1897_v31 = vsel %vm1513_vm14, %v5537_v22, 0.0 }
 0x237   : > { %v1388_v56 = vadd.s32 %v4123_v19, %v1259_v49  ;;  %v1261_v45 = vadd.s32 984, %v4119_v17  ;;  %v2534_v26 = vsel %vm283_vm3, %v2290_v30, 0.0  ;;  %v1898_v16 = vsel %vm1514_vm15, %v5525_v32, 0.0 }
 0x238   : > { %v2137_v58 = vadd.f32 %v2136_v4, %v2135_v27  ;;  %v2527_v11 = vadd.f32 %v2526_v6, %v2525_v39  ;;  %v2140_v51 = vsel %vm283_vm3, %v1895_v7, 0.0  ;;  %vm1515_vm0 = vcmp.lt.s32.totalorder %v1387_v15, 2000 }
 0x239   : > { %v1389_v35 = vadd.s32 %v4123_v19, %v1260_v48  ;;  %v1262_v0 = vadd.s32 992, %v4119_v17  ;;  %v2532_v13 = vsel %vm283_vm3, %v2289_v20, 0.0  ;;  %2766 = vxpose.xlu0.b32.cont [11/16] (narrow) %v5317_v33, 16  ;;  %2790 = vxpose.xlu1.b32.cont [3/16] (narrow) %v5462_v34, 16  ;;  %v2291_v63 = vmul.f32 %v1897_v31, %v1897_v31  ;;  %v5621_v33 = vpop.f32.mrf.mxu1 }
 0x23a   : > { %v2529_v43 = vadd.f32 %v2528_v2, %v2527_v11  ;;  %v2139_v18 = vadd.f32 %v2138_v42, %v2137_v58  ;;  %v2146_v6 = vsel %vm283_vm3, %v1898_v16, 0.0  ;;  %vm1516_vm1 = vcmp.lt.s32.totalorder %v1388_v56, 2000 }
 0x23b   : > { %v1390_v59 = vadd.s32 %v4123_v19, %v1261_v45  ;;  %v1263_v3 = vadd.s32 1000, %v4119_v17  ;;  %v2292_v55 = vmul.f32 %v1898_v16, %v1898_v16  ;;  %v1899_v50 = vsel %vm1515_vm0, %v5567_v52, 0.0 }
 0x23c   : > { %v2141_v21 = vadd.f32 %v2140_v51, %v2139_v18  ;;  %v2531_v10 = vadd.f32 %v2530_v5, %v2529_v43  ;;  %v2144_v8 = vsel %vm283_vm3, %v1897_v31, 0.0  ;;  %vm1517_vm2 = vcmp.lt.s32.totalorder %v1389_v35, 2000 }
 0x23d   : > { %v1391_v34 = vadd.s32 %v4123_v19, %v1262_v0  ;;  %v1264_v60 = vadd.s32 1008, %v4119_v17  ;;  %v2536_v61 = vsel %vm283_vm3, %v2291_v63, 0.0  ;;  %2767 = vxpose.xlu0.b32.cont [12/16] (narrow) %v5292_v37, 16  ;;  %2791 = vxpose.xlu1.b32.cont [4/16] (narrow) %v5444_v28, 16  ;;  %v1900_v9 = vsel %vm1516_vm1, %v5552_v47, 0.0  ;;  %v5636_v28 = vpop.f32.mrf.mxu1 }
 0x23e   : > { %v2533_v24 = vadd.f32 %v2532_v13, %v2531_v10  ;;  %v2143_v41 = vadd.f32 %v2142_v54, %v2141_v21  ;;  %v2293_v42 = vmul.f32 %v1899_v50, %v1899_v50  ;;  %vm1518_vm4 = vcmp.lt.s32.totalorder %v1390_v59, 2000 }
 0x23f   : > { %v1392_v38 = vadd.s32 %v4123_v19, %v1263_v3  ;;  %v1265_v25 = vadd.s32 1016, %v4119_v17  ;;  %v2538_v1 = vsel %vm283_vm3, %v2292_v55, 0.0  ;;  %v1901_v49 = vsel %vm1517_vm2, %v5594_v53, 0.0  ;;  %v5649_v45 = vpop.f32.mrf.mxu1 }
 0x240   : > { %v2145_v5 = vadd.f32 %v2144_v8, %v2143_v41  ;;  %v2535_v7 = vadd.f32 %v2534_v26, %v2533_v24  ;;  %v2294_v62 = vmul.f32 %v1900_v9, %v1900_v9  ;;  %v2148_v37 = vsel %vm283_vm3, %v1899_v50, 0.0 }
 0x241   : > { %vm1519_vm5 = vcmp.lt.s32.totalorder %v1391_v34, 2000  ;;  %v1393_v44 = vadd.s32 %v4123_v19, %v1264_v60  ;;  %v2150_v4 = vsel %vm283_vm3, %v1900_v9, 0.0  ;;  %2768 = vxpose.xlu0.b32.cont [13/16] (narrow) %v5354_v14, 16  ;;  %2792 = vxpose.xlu1.b32.cont [5/16] (narrow) %v5500_v40, 16  ;;  %v1902_v17 = vsel %vm1518_vm4, %v5581_v23, 0.0 }
 0x242   : > { %v2537_v30 = vadd.f32 %v2536_v61, %v2535_v7  ;;  %v2147_v15 = vadd.f32 %v2146_v6, %v2145_v5  ;;  %v2540_v48 = vsel %vm283_vm3, %v2293_v42, 0.0  ;;  %v2295_v39 = vmul.f32 %v1901_v49, %v1901_v49 }
 0x243   : > { %vm1520_vm6 = vcmp.lt.s32.totalorder %v1392_v38, 2000  ;;  %v1394_v27 = vadd.s32 %v4123_v19, %v1265_v25  ;;  %v1903_v54 = vsel %vm1519_vm5, %v5621_v33, 0.0  ;;  %v2542_v31 = vsel %vm283_vm3, %v2294_v62, 0.0 }
 0x244   : > { %v2149_v2 = vadd.f32 %v2148_v37, %v2147_v15  ;;  %v2539_v20 = vadd.f32 %v2538_v1, %v2537_v30  ;;  %v2296_v56 = vmul.f32 %v1902_v17, %v1902_v17  ;;  %v2152_v14 = vsel %vm283_vm3, %v1901_v49, 0.0  ;;  %v1907_v30 = vld [vmem:[%s5507_s25] sm:$0xff] }
 0x245   : > { %vm1521_vm7 = vcmp.lt.s32.totalorder %v1393_v44, 2000  ;;  %2769 = vxpose.xlu0.b32.cont [14/16] (narrow) %v5334_v36, 16  ;;  %2793 = vxpose.xlu1.b32.cont [6/16] (narrow) %v5483_v29, 16  ;;  %v1904_v19 = vsel %vm1520_vm6, %v5609_v46, 0.0  ;;  %v2154_v11 = vsel %vm283_vm3, %v1902_v17, 0.0  ;;  %v2544_v26 = vsel %vm283_vm3, %v2295_v39, 0.0 }
 0x246   : > { %v2541_v40 = vadd.f32 %v2540_v48, %v2539_v20  ;;  %v2151_v58 = vadd.f32 %v2150_v4, %v2149_v2  ;;  %v2297_v16 = vmul.f32 %v1903_v54, %v1903_v54  ;;  %vm1522_vm8 = vcmp.lt.s32.totalorder %v1394_v27, 2000 }
 0x247   : > { %v1905_v0 = vsel %vm1521_vm7, %v5649_v45, 0.0  ;;  %v2546_v43 = vsel %vm283_vm3, %v2296_v56, 0.0  ;;  %v2298_v18 = vmul.f32 %v1904_v19, %v1904_v19  ;;  %v2156_v13 = vsel %vm283_vm3, %v1903_v54, 0.0 }
 0x248   : > { %v2153_v51 = vadd.f32 %v2152_v14, %v2151_v58  ;;  %v2543_v35 = vadd.f32 %v2542_v31, %v2541_v40  ;;  %v1906_v29 = vsel %vm1522_vm8, %v5636_v28, 0.0  ;;  %v2158_v6 = vsel %vm283_vm3, %v1904_v19, 0.0 }
 0x249   : > { %2770 = vxpose.xlu0.b32.cont [15/16] (narrow) %v5396_v57, 16  ;;  %2794 = vxpose.xlu1.b32.cont [7/16] (narrow) %v5537_v22, 16  ;;  %v2548_v59 = vsel %vm283_vm3, %v2297_v16, 0.0  ;;  %v2299_v3 = vmul.f32 %v1905_v0, %v1905_v0  ;;  %v2550_v55 = vsel %vm283_vm3, %v2298_v18, 0.0  ;;  %v2300_v50 = vmul.f32 %v1906_v29, %v1906_v29 }
 0x24a   : > { %v2545_v36 = vadd.f32 %v2544_v26, %v2543_v35  ;;  %v2155_v63 = vadd.f32 %v2154_v11, %v2153_v51  ;;  %v2160_v8 = vsel %vm283_vm3, %v1905_v0, 0.0  ;;  %v2162_v60 = vsel %vm283_vm3, %v1906_v29, 0.0 }
 0x24b   : > { %v2552_v24 = vsel %vm283_vm3, %v2299_v3, 0.0  ;;  %v2554_v9 = vsel %vm283_vm3, %v2300_v50, 0.0 }
 0x24c   : > { %v2157_v21 = vadd.f32 %v2156_v13, %v2155_v63  ;;  %v2547_v10 = vadd.f32 %v2546_v43, %v2545_v36 }
 0x24d   : > { %2771 = vxpose.xlu0.b32.end [16/16] (narrow) %v5375_v12, 16  ;;  %2795 = vxpose.xlu1.b32.cont [8/16] (narrow) %v5525_v32, 16  ;;  %v2644_v22 = vpop.trf.xlu0 }
 0x24e   : > { %v2549_v34 = vadd.f32 %v2548_v59, %v2547_v10  ;;  %v2159_v57 = vadd.f32 %v2158_v6, %v2157_v21  ;;  %2822 = vst [vmem:[%s5269_s29 + $0x10] sm:$0xff] %v2644_v22 }
 0x250   : > { %v2161_v41 = vadd.f32 %v2160_v8, %v2159_v57  ;;  %v2551_v61 = vadd.f32 %v2550_v55, %v2549_v34 }
 0x251   : > { %2796 = vxpose.xlu1.b32.cont [9/16] (narrow) %v5567_v52, 16  ;;  %v2645_v25 = vpop.trf.xlu0 }
 0x252   : > { %v2163_v42 = vadd.f32 %v2162_v60, %v2161_v41  ;;  %v2553_v38 = vadd.f32 %v2552_v24, %v2551_v61  ;;  %2830 = vst [vmem:[%s5269_s29 + $0x50] sm:$0xff] %v2645_v25 }
 0x254   : > { %v2164_v12 = vrot.slane %v2163_v42, 4  ;;  %v2555_v32 = vadd.f32 %v2554_v9, %v2553_v38 }
 0x255   : > { %2797 = vxpose.xlu1.b32.cont [10/16] (narrow) %v5552_v47, 16  ;;  %v2172_v47 = vld [vmem:[%s5512_s9] sm:$0xff] }
 0x256   : > { %v2165_v1 = vadd.f32 %v2164_v12, %v2163_v42  ;;  %v2556_v5 = vrot.slane %v2555_v32, 4 }
 0x258   : > { %v2166_v7 = vrot.slane %v2165_v1, 2  ;;  %v2557_v49 = vadd.f32 %v2556_v5, %v2555_v32 }
 0x259   : > { %2798 = vxpose.xlu1.b32.cont [11/16] (narrow) %v5594_v53, 16 }
 0x25a   : > { %v2167_v62 = vadd.f32 %v2166_v7, %v2165_v1  ;;  %v2558_v37 = vrot.slane %v2557_v49, 2 }
 0x25c   : > { %v2168_v52 = vrot.slane %v2167_v62, 1  ;;  %v2559_v44 = vadd.f32 %v2558_v37, %v2557_v49 }
 0x25d   : > { %2799 = vxpose.xlu1.b32.cont [12/16] (narrow) %v5581_v23, 16 }
 0x25e   : > { %v2169_v4 = vadd.f32 %v2168_v52, %v2167_v62  ;;  %v2560_v15 = vrot.slane %v2559_v44, 1 }
 0x260   : > { %v2561_v17 = vadd.f32 %v2560_v15, %v2559_v44  ;;  %v2170_v48 = vadd.f32 %v2169_v4, %v1907_v30 }
 0x261   : > { %2800 = vxpose.xlu1.b32.cont [13/16] (narrow) %v5621_v33, 16 }
 0x262   : > { %2171 = vst.msk [vmem:[%s5507_s25] sm:$0xff] %vm283_vm3, %v2170_v48  ;;  %v2562_v53 = vadd.f32 %v2561_v17, %v2172_v47 }
 0x263   : > { %3594 = shalt.err (!%p3591_p7)
}
 0x264   : > { %s3595_s25 = scalar_lea.hbm %s5686_s20, 128  ;;  %s3599_s24 = scalar_lea.hbm %s5829_s3, 256 }
 0x265   : > { %p3596_p9 = scmp.ne.s32.totalorder %s5686_s20, %s3595_s25  ;;  %p3600_p0 = scmp.lt.s32.totalorder %s5686_s20, %s5829_s3 }
 0x266   : > { %p3601_p1 = scmp.lt.s32.totalorder %s3599_s24, %s3595_s25 }
 0x267   : > { %p3597_p10 = pnand %p3596_p9, %p3880_p4 }
 0x268   : > { %p3602_p8 = por %p3601_p1, %p3600_p0 }
 0x269   : > { %p3598_p11 = pneg %p3597_p10 }
 0x26b   : > { %p3603_p13 = pnand %p3602_p8, %p3598_p11 }
 0x26d   : > { %3606 = shalt.err (!%p3603_p13)
}
 0x26e   : > { %3461 = dma.vmem_to_hbm [thread:$0]  (%p3880_p4), %s5688_s26, 128, %s5686_s20, %s5700_s11   ;;  %2563 = vst.msk [vmem:[%s5512_s9] sm:$0xff] %vm283_vm3, %v2562_v53 }
 0x26f   : > { %s3607_s0 = scalar_lea.vmem %s5698_s28, 128  ;;  %s3748_s1 = smov [#allocation8]  }
 0x270   : > { %p3608_p2 = scmp.ne.s32.totalorder %s5698_s28, %s3607_s0  ;;  %s3611_s5 = sshll.u32 %s3748_s1, 4  ;;  %s3612_s5 = int_to_ptr.vmem [resolvable:$false] %s3611_s5 }
 0x271   : > { %s3613_s25 = scalar_lea.vmem %s3612_s5, 256  ;;  %p3614_p3 = scmp.lt.s32.totalorder %s5698_s28, %s3612_s5 }
 0x272   : > { %p3609_p5 = pnand %p3608_p2, %p3880_p4  ;;  %p3615_p7 = scmp.lt.s32.totalorder %s3613_s25, %s3607_s0 }
 0x274   : > { %p3610_p6 = pneg %p3609_p5  ;;  %p3616_p9 = por %p3615_p7, %p3614_p3 }
 0x276   : > { %p3617_p10 = pnand %p3616_p9, %p3610_p6 }
 0x278   : > { %3620 = shalt.err (!%p3617_p10)
}
 0x279   : > { %s3621_s26 = scalar_lea.hbm %s5696_s30, 128  ;;  %s3625_s27 = scalar_lea.hbm %s5830_s4, 256 }
 0x27a   : > { %p3622_p11 = scmp.ne.s32.totalorder %s5696_s30, %s3621_s26  ;;  %p3626_p8 = scmp.lt.s32.totalorder %s5696_s30, %s5830_s4 }
 0x27b   : > { %p3627_p13 = scmp.lt.s32.totalorder %s3625_s27, %s3621_s26 }
 0x27c   : > { %p3623_p0 = pnand %p3622_p11, %p3880_p4 }
 0x27d   : > { %p3628_p2 = por %p3627_p13, %p3626_p8 }
 0x27e   : > { %p3624_p1 = pneg %p3623_p0 }
 0x280   : > { %p3629_p5 = pnand %p3628_p2, %p3624_p1 }
 0x282   : > { %3632 = shalt.err (!%p3629_p5)
}
 0x283   : > { %3462 = dma.vmem_to_hbm [thread:$0]  (%p3880_p4), %s5698_s28, 128, %s5696_s30, %s5700_s11   ;;  %2801 = vxpose.xlu1.b32.cont [14/16] (narrow) %v5609_v46, 16  ;;  %v2676_v23 = vpop.trf.xlu1 }
 0x284   : > { %2823 = vst [vmem:[%s5269_s29 + $0x18] sm:$0xff] %v2676_v23  ;;  %p2855_p6 = scmp.lt.s32.totalorder %s3733_s21, 1  ;;  %s2863_s28 = sshll.u32 %s5269_s29, 4  ;;  %s5762_s28 = int_to_ptr.vmem [resolvable:$true] %s2863_s28 }
 0x285   : > { %s2837_s10 = scalar_lea.sflag [#allocation4], %s3933_s15  ;;  %s3633_s0 = scalar_lea.vmem %s5762_s28, 2048 }
 0x286   : > { %s6019_s21 = smov (!%p2855_p6, %s3733_s21), 1  ;;  %p3634_p4 = scmp.ne.s32.totalorder %s5762_s28, %s3633_s0 }
 0x287   : > { %2802 = vxpose.xlu1.b32.cont [15/16] (narrow) %v5649_v45, 16  ;;  %v2677_v33 = vpop.trf.xlu1  ;;  %s3058_s13 = sshll.u32 %s6019_s21, 10  ;;  %s3749_s21 = smov [#allocation5]  }
 0x288   : > { %2831 = vst [vmem:[%s5269_s29 + $0x58] sm:$0xff] %v2677_v33  ;;  %s5760_s22 = scalar_lea.hbm %s5828_s2, %s3058_s13  ;;  %p3635_p3 = pnand %p3634_p4, %p3857_p12 }
 0x289   : > { %s3637_s1 = sshll.u32 %s3749_s21, 4  ;;  %s3638_s1 = int_to_ptr.vmem [resolvable:$false] %s3637_s1 }
 0x28a   : > { %p3636_p7 = pneg %p3635_p3  ;;  %s3639_s5 = scalar_lea.vmem %s3638_s1, 4096 }
 0x28b   : > { %2803 = vxpose.xlu1.b32.end [16/16] (narrow) %v5636_v28, 16  ;;  %p3640_p9 = scmp.lt.s32.totalorder %s5762_s28, %s3638_s1  ;;  %p3641_p10 = scmp.lt.s32.totalorder %s3639_s5, %s3633_s0 }
 0x28d   : > { %v2772_v39 = vpop.trf.xlu0  ;;  %p3642_p11 = por %p3641_p10, %p3640_p9 }
 0x28e   : > { %2826 = vst [vmem:[%s5269_s29 + $0x30] sm:$0xff] %v2772_v39 }
 0x28f   : > { %p3643_p0 = pnand %p3642_p11, %p3636_p7 }
 0x291   : > { %v2773_v27 = vpop.trf.xlu0 }
 0x292   : > { %2834 = vst [vmem:[%s5269_s29 + $0x70] sm:$0xff] %v2773_v27 }
 0x2cb   : > { %v2804_v46 = vpop.trf.xlu1 }
 0x2cc   : > { %2827 = vst [vmem:[%s5269_s29 + $0x38] sm:$0xff] %v2804_v46 }
 0x2cf   : > { %v2805_v28 = vpop.trf.xlu1 }
 0x2d0   : > { %2835 = vst [vmem:[%s5269_s29 + $0x78] sm:$0xff] %v2805_v28 }
 0x2d1   : > { %3646 = shalt.err (!%p3643_p0)
}
 0x2d2   : > { %s3647_s29 = scalar_lea.hbm %s5760_s22, 2048  ;;  %s3651_s9 = scalar_lea.hbm %s5828_s2, 4096 }
 0x2d3   : > { %p3648_p1 = scmp.ne.s32.totalorder %s5760_s22, %s3647_s29  ;;  %p3652_p2 = scmp.lt.s32.totalorder %s5760_s22, %s5828_s2 }
 0x2d4   : > { %p3653_p5 = scmp.lt.s32.totalorder %s3651_s9, %s3647_s29 }
 0x2d5   : > { %p3649_p8 = pnand %p3648_p1, %p3857_p12 }
 0x2d6   : > { %p3654_p6 = por %p3653_p5, %p3652_p2 }
 0x2d7   : > { %p3650_p13 = pneg %p3649_p8 }
 0x2d9   : > { %p3655_p4 = pnand %p3654_p6, %p3650_p13 }
 0x2db   : > { %3658 = shalt.err (!%p3655_p4)
}
 0x2dc   : > { %s3750_s6 = smov 1024   ;;  %s3751_s24 = smov 2048  }
 0x2dd   : > { %s3752_s13 = smov 64  }
 0x2de   : > { %3460 = dma.vmem_to_hbm [thread:$0]  (%p3857_p12), %s5762_s28, 2048, %s5760_s22, %s2837_s10, %s3750_s6, %s3751_s24, %s3752_s13  }
 0x2df PF: > { %s2904_s30 = sand.u32 1, %s3721_s18   ;;  %p6000_p3 = scmp.ne.s32.totalorder %s5894_s8, 0 }
 0x2e0   : > { %p6001_p7 = scmp.ge.s32.totalorder %s3741_s23, 2  ;;  %s2905_s11 = scalar_lea.sflag [#allocation4], %s2904_s30 }
 0x2e2   : > { %p3467_p9 = pnand %p6001_p7, %p6000_p3 }
 0x2e4   : > { %p3468_p10 = pneg %p3467_p9 }
 0x2e6   : > { %3700 = dma.done.wait (%p3468_p10), %s2905_s11, 2048  }
 0x2e7   : > { %3702 = vsyncadd (%p3468_p10), %s2905_s11, 4294965248  ;;  %s6002_s0 = sadd.s32 4294967294, %s3741_s23   ;;  %p6003_p11 = scmp.ne.s32.totalorder %s5897_s14, 0 }
 0x2e8   : > { %s2913_s21 = sand.u32 1, %s6002_s0   ;;  %p6004_p0 = pmov %p6001_p7 }
 0x2e9   : > { %s2914_s7 = scalar_lea.sflag [#allocation7], %s2913_s21 }
 0x2ea   : > { %p3470_p12 = pnand %p6004_p0, %p6003_p11 }
 0x2ec   : > { %p3471_p1 = pneg %p3470_p12 }
 0x2ee   : > { %3704 = dma.done.wait (%p3471_p1), %s2914_s7, 256  }
 0x2ef   : > { %3706 = vsyncadd (%p3471_p1), %s2914_s7, 4294967040  ;;  %s24_s23 = sadd.s32 1, %s3741_s23   ;;  %s6005_s8 = sld [smem:[#allocation12_spill]] }
 0x2f0   : > { %p21_p8 = scmp.ge.s32.totalorder %s24_s23, 4   ;;  %s6006_s20 = sld [smem:[#allocation15_spill]] }
 0x2f1   : > { %s6007_s21 = sld [smem:[#allocation13_spill]]  ;;  %s6009_s15 = smov %s3713_s16 }
 0x2f2   : > { %s6008_s22 = sld [smem:[#allocation14_spill]]  ;;  %s6010_s16 = smov %s3717_s17 }
 0x2f3   : > { %s6011_s17 = smov %s3876_s12  ;;  %s6012_s18 = smov %s3725_s19 }
 0x2f4   :  { %23 = sbr.rel (!%p21_p8) target bundleno = 13 (0xd), region = 109 }
 0x2f5   : > { %s6013_s19 = smov %s6005_s8 }
 0x2f9   :  { %2928 = vsyncpa [#allocation3], 1 }
 0x2fa   :  { %2930 = vsyncpa [#allocation3 + $0x1], 1 }
 0x2fb   :  { %2931 = vsyncpa [#allocation4], 1 }
 0x2fc   :  { %2933 = vsyncpa [#allocation4 + $0x1], 1 }
 0x2fd   :  { %2934 = vsyncpa [#allocation7], 1 }
 0x2fe   :  { %2936 = vsyncpa [#allocation7 + $0x1], 1 }

</bundles_post_ra>
